<compile_context>
chip_gen: v6e
topology: v6e:2x2x1
jax: 0.10.0
libtpu: 0.0.40
codegen_flags: <defaults>
</compile_context>

<pallas_src>
import functools

import jax
import jax.numpy as jnp
from jax import lax
from jax.experimental import pallas as pl
from jax.experimental.pallas import tpu as pltpu


# ---------------------------------------------------------------------------
# Kernel
# ---------------------------------------------------------------------------
def _residual_stack_kernel(x_ref, w1_ref, w2_ref, o_ref, hp_ref, im_ref, *,
                           num_layers, Bt, H, W, C, Cres, precision):
    """One batch tile (Bt elements) per grid step.

    x_ref : (Bt, H, W, C)        input tile (VMEM), x.dtype (f32)
    w1_ref: (L, 9*C, Cres)       fused im2col 3x3 weights (VMEM, resident)
    w2_ref: (L, Cres, C)         1x1 conv weights (VMEM, resident)
    o_ref : (Bt, H, W, C)        output tile (VMEM)
    hp_ref: (Bt, H+2, W+2, C)    scratch: halo-padded ReLU(x), MXU dtype
    im_ref: (Bt, H, W, 9*C)      scratch: im2col LHS staging, MXU dtype
    """
    rows = Bt * H * W
    mxu_dt = im_ref.dtype

    # Zero ONLY the 1-pixel halo of the padded scratch.  This runs once per
    # GRID STEP (the body executes at every grid point) and must remain
    # unconditional: gating it on pl.program_id(0) == 0 would be unsafe under
    # megacore ('parallel' axis -> a core may start at step 1 with an unzeroed
    # halo).  The (H, W) interior is fully overwritten below on every layer.
    hp_ref[:, 0:1, :, :] = jnp.zeros((Bt, 1, W + 2, C), mxu_dt)
    hp_ref[:, H + 1:H + 2, :, :] = jnp.zeros((Bt, 1, W + 2, C), mxu_dt)
    hp_ref[:, :, 0:1, :] = jnp.zeros((Bt, H + 2, 1, C), mxu_dt)
    hp_ref[:, :, W + 1:W + 2, :] = jnp.zeros((Bt, H + 2, 1, C), mxu_dt)

    # Residual stream carried in f32 as flat pixel rows: (Bt*H*W, C).
    # (Reshape keeps the last/lane dim unchanged -> cheap.)
    x = x_ref[...].astype(jnp.float32).reshape(rows, C)

    # Tap order is dh-major, then dw, then cin: im2col column t*C + cin with
    # t = dh*3 + dw.  This matches w1.reshape(L, 9*C, Cres) in the wrapper.
    taps = [(dh, dw) for dh in range(3) for dw in range(3)]
    # Pair consecutive taps into single 2*C-wide, 128-lane-aligned stores when
    # every paired store becomes full width (e.g. C == 64 -> 2*C == 128).
    pair_taps = (C % 128 != 0) and ((2 * C) % 128 == 0)

    # num_residual_layers == 2 in the module spec -> static unroll is fine.
    # For deep stacks switch to lax.fori_loop with dynamic w1_ref[l]/w2_ref[l].
    for l in range(num_layers):
        # --- ReLU(x) -> interior of the halo-padded buffer; cast ONCE to the
        # MXU dtype here (not per tap in the im2col loop).
        hp_ref[:, 1:H + 1, 1:W + 1, :] = (
            jnp.maximum(x, 0.0).astype(mxu_dt).reshape(Bt, H, W, C))

        # --- im2col: stage (Bt, H, W, 9*C) so the 3x3 conv is ONE MXU matmul.
        if pair_taps:
            for p in range(4):
                (dh0, dw0), (dh1, dw1) = taps[2 * p], taps[2 * p + 1]
                a = hp_ref[:, dh0:dh0 + H, dw0:dw0 + W, :]
                b = hp_ref[:, dh1:dh1 + H, dw1:dw1 + W, :]
                im_ref[:, :, :, 2 * p * C:(2 * p + 2) * C] = (
                    jnp.concatenate((a, b), axis=-1))
            dh, dw = taps[8]
            im_ref[:, :, :, 8 * C:9 * C] = hp_ref[:, dh:dh + H, dw:dw + W, :]
        else:
            for dh, dw in taps:
                t = dh * 3 + dw
                im_ref[:, :, :, t * C:(t + 1) * C] = (
                    hp_ref[:, dh:dh + H, dw:dw + W, :])

        lhs = im_ref[...].reshape(rows, 9 * C)           # (rows, 9*C)

        # --- Conv3x3 as a single MXU matmul (contraction = 9*C) + ReLU ------
        y = jnp.maximum(
            jnp.dot(lhs, w1_ref[l], preferred_element_type=jnp.float32,
                    precision=precision), 0.0)

        # --- Conv1x1 + residual add (accumulation / residual stay f32) ------
        x = x + jnp.dot(y.astype(w2_ref.dtype), w2_ref[l],
                        preferred_element_type=jnp.float32,
                        precision=precision)

    # Final ReLU of the stack.
    o_ref[...] = jnp.maximum(x, 0.0).reshape(Bt, H, W, C).astype(o_ref.dtype)


# ---------------------------------------------------------------------------
# Generation-aware planning
# ---------------------------------------------------------------------------
def _device_plan():
    """Tiling targets per TPU generation.  Any failure here only changes the
    tiling choice, never correctness, so everything is wrapped defensively."""
    kind = ""
    try:
        kind = jax.devices()[0].device_kind.lower()
    except Exception:
        pass
    try:
        vmem_cap = int(pltpu.get_tpu_info().vmem_capacity_bytes)
    except Exception:
        vmem_cap = 64 << 20   # v7x per-core physical; conservative elsewhere
    # MXU rows per pass: v6e/v7x have a 2x256^2 MXU; older chips target 128.
    rows_target = 256 if ("v6" in kind or "v7" in kind) else 128
    # Chips with a single TensorCore per device (no megacore split to feed).
    single_core = ("lite" in kind) or ("v5e" in kind) or ("v6e" in kind)
    cores = 1 if single_core else (
        2 if any(g in kind for g in ("v4", "v5", "v7")) else 1)
    return cores, rows_target, vmem_cap


def _pick_batch_tile(B, H, W, C, mxu_itemsize, io_itemsize, *,
                     cores, rows_target, vmem_budget):
    rows_per_b = H * W
    # Per-batch-element VMEM footprint of one grid step: im2col + halo scratch
    # + double-buffered input and output blocks.
    per_b = ((H * W * 9 * C + (H + 2) * (W + 2) * C) * mxu_itemsize
             + 2 * 2 * H * W * C * io_itemsize)
    cap = max(1, vmem_budget // max(per_b, 1))

    if cores <= 1:
        # Single-TensorCore chips (v5e/v6e): take the whole batch per grid
        # step when VMEM allows -> per-step overhead paid once, MXU rows full.
        bt = min(B, cap)
    else:
        # v7x / megacore: fill >= rows_target MXU rows per step, but keep at
        # least `cores` grid steps so every TensorCore gets work.
        want = max(1, pl.cdiv(rows_target, rows_per_b))
        bt = min(B, want, cap)
        while bt > 1 and (B // bt) < cores:
            bt -= 1
    bt = max(1, bt)
    while B % bt:
        bt -= 1
    if cores > 1 and (B // bt) % cores != 0:
        # Prefer a step count divisible by the core count (equal work split).
        for cand in range(bt - 1, 0, -1):
            if B % cand == 0 and (B // cand) % cores == 0:
                bt = cand
                break
    return bt


# ---------------------------------------------------------------------------
# Wrapper
# ---------------------------------------------------------------------------
def residual_stack(x, w1, w2, *, mxu_dtype=jnp.bfloat16, batch_tile=None,
                   precision=None):
    """x: (B, H, W, C) NHWC f32, w1: (L,3,3,C,Cres) HWIO, w2: (L,Cres,C).

    mxu_dtype: dtype of the MXU operands (weights + im2col LHS).  The MXU is
    bf16-native on v5e/v6e/v7x, so bfloat16 is the default; pass jnp.float32
    (optionally with precision=lax.Precision.HIGHEST) for bit-faithful f32
    convolutions.  Accumulation, the residual stream and the ReLUs stay f32.
    """
    B, H, W, C = x.shape
    L, kh, kw, Cin, Cres = w1.shape
    assert (kh, kw) == (3, 3) and Cin == C and w2.shape == (L, Cres, C)

    cores, rows_target, vmem_cap = _device_plan()
    mxu_itemsize = jnp.dtype(mxu_dtype).itemsize
    if batch_tile is None:
        batch_tile = _pick_batch_tile(
            B, H, W, C, mxu_itemsize, x.dtype.itemsize,
            cores=cores, rows_target=rows_target, vmem_budget=vmem_cap // 2)
    assert B % batch_tile == 0
    nb = B // batch_tile

    # Fused im2col weight layout (L, 9*C, Cres); row order (dh, dw, cin)
    # matches the tap order built in the kernel.
    w1_r = w1.reshape(L, 9 * C, Cres).astype(mxu_dtype)
    w2_c = w2.astype(mxu_dtype)

    kernel = functools.partial(
        _residual_stack_kernel, num_layers=L, Bt=batch_tile, H=H, W=W, C=C,
        Cres=Cres, precision=precision)

    # Explicit VMEM budget: the 9*C im2col scratch is the binding consumer at
    # real VQ-VAE sizes (especially on v7x's 64 MiB); raise the scoped limit
    # only when the footprint outgrows the conservative default.
    need = ((w1_r.size + w2_c.size) * mxu_itemsize
            + batch_tile * ((H + 2) * (W + 2) * C + H * W * 9 * C) * mxu_itemsize
            + 2 * 2 * batch_tile * H * W * C * x.dtype.itemsize)
    vmem_limit = None
    if need > (12 << 20):
        vmem_limit = int(min(need + need // 4, (vmem_cap * 3) // 4))

    return pl.pallas_call(
        kernel,
        out_shape=jax.ShapeDtypeStruct((B, H, W, C), x.dtype),
        grid_spec=pltpu.PrefetchScalarGridSpec(
            num_scalar_prefetch=0,
            grid=(nb,),
            in_specs=[
                pl.BlockSpec((batch_tile, H, W, C), lambda b: (b, 0, 0, 0)),
                # Constant index_map -> weights DMA'd once, stay VMEM-resident.
                pl.BlockSpec((L, 9 * C, Cres), lambda b: (0, 0, 0)),
                pl.BlockSpec((L, Cres, C), lambda b: (0, 0, 0)),
            ],
            out_specs=pl.BlockSpec((batch_tile, H, W, C),
                                   lambda b: (b, 0, 0, 0)),
            scratch_shapes=[
                pltpu.VMEM((batch_tile, H + 2, W + 2, C), mxu_dtype),
                pltpu.VMEM((batch_tile, H, W, 9 * C), mxu_dtype),
            ],
        ),
        compiler_params=pltpu.CompilerParams(
            dimension_semantics=("parallel",),
            vmem_limit_bytes=vmem_limit),
    )(x, w1_r, w2_c)


# ---------------------------------------------------------------------------
# Pure-JAX reference (lax.conv) matching the PyTorch module semantics.
# ---------------------------------------------------------------------------
def residual_stack_reference(x, w1, w2):
    L = w1.shape[0]
    for l in range(L):
        h = jax.nn.relu(x)
        c1 = lax.conv_general_dilated(
            h, w1[l], window_strides=(1, 1), padding='SAME',
            dimension_numbers=('NHWC', 'HWIO', 'NHWC'))
        c1 = jax.nn.relu(c1)
        c2 = lax.conv_general_dilated(
            c1, w2[l][None, None], window_strides=(1, 1), padding='VALID',
            dimension_numbers=('NHWC', 'HWIO', 'NHWC'))
        x = x + c2
    return jax.nn.relu(x)


if __name__ == "__main__":
    # Shapes consistent with the module constants:
    #   in_channels = num_hiddens = 64, num_residual_hiddens = 32,
    #   num_residual_layers = 2; small batch and spatial extent.
    B, H, W = 2, 8, 8
    num_hiddens = 64
    num_residual_hiddens = 32
    num_residual_layers = 2

    key = jax.random.PRNGKey(0)
    kx, k1, k2 = jax.random.split(key, 3)

    x = jax.random.normal(kx, (B, H, W, num_hiddens), dtype=jnp.float32)

    # Deterministic, fan-in scaled synthetic weights (no checkpoint load).
    fan1 = 3 * 3 * num_hiddens
    w1 = jax.random.normal(
        k1, (num_residual_layers, 3, 3, num_hiddens, num_residual_hiddens),
        dtype=jnp.float32) * (1.0 / jnp.sqrt(fan1))
    fan2 = num_residual_hiddens
    w2 = jax.random.normal(
        k2, (num_residual_layers, num_residual_hiddens, num_hiddens),
        dtype=jnp.float32) * (1.0 / jnp.sqrt(fan2))

    ref = jax.block_until_ready(residual_stack_reference(x, w1, w2))

    # Default path: bf16 MXU operands (full-rate MXU on every generation);
    # f32 accumulation/residual, so only conv inputs/weights are quantized.
    out = jax.block_until_ready(residual_stack(x, w1, w2))
    assert out.shape == (B, H, W, num_hiddens)
    assert jnp.allclose(out, ref, atol=1e-1, rtol=1e-1), (
        float(jnp.max(jnp.abs(out - ref))))

    # f32 MXU-operand path: tight check against the lax.conv reference.
    out_f32 = jax.block_until_ready(
        residual_stack(x, w1, w2, mxu_dtype=jnp.float32))
    assert out_f32.shape == (B, H, W, num_hiddens)
    assert jnp.allclose(out_f32, ref, atol=1e-4, rtol=1e-4), (
        float(jnp.max(jnp.abs(out_f32 - ref))))

    print("KERNEL_OK")
</pallas_src>

<mosaic_0001>
module attributes {stable_mosaic.version = 11 : i64} {
  func.func @_residual_stack_kernel(%arg0: i32, %arg1: memref<2x8x8x64xf32, #tpu.memory_space<vmem>>, %arg2: memref<2x576x32xbf16, #tpu.memory_space<vmem>>, %arg3: memref<2x32x64xbf16, #tpu.memory_space<vmem>>, %arg4: memref<2x8x8x64xf32, #tpu.memory_space<vmem>>, %arg5: memref<2x10x10x64xbf16, #tpu.memory_space<vmem>>, %arg6: memref<2x8x8x576xbf16, #tpu.memory_space<vmem>>) attributes {dimension_semantics = [#tpu.dimension_semantics<parallel>], iteration_bounds = array<i64: 1>, scalar_prefetch = 0 : i64, scratch_operands = 2 : i64, tpu.core_type = #tpu.core_type<tc>, window_params = [{transform_indices = @transform_0, window_bounds = array<i64: 2, 8, 8, 64>}, {pipeline_mode = #tpu.pipeline_mode<synchronous>, transform_indices = @transform_1, window_bounds = array<i64: 2, 576, 32>}, {pipeline_mode = #tpu.pipeline_mode<synchronous>, transform_indices = @transform_2, window_bounds = array<i64: 2, 32, 64>}, {transform_indices = @transform_3, window_bounds = array<i64: 2, 8, 8, 64>}]} {
    %cst = arith.constant 0.000000e+00 : bf16
    %0 = vector.broadcast %cst : bf16 to vector<2x1x10x64xbf16>
    %c0 = arith.constant 0 : index
    %c0_0 = arith.constant 0 : index
    %c0_1 = arith.constant 0 : index
    %c0_2 = arith.constant 0 : index
    %1 = vector.load %arg5[%c0, %c0_0, %c0_1, %c0_2] : memref<2x10x10x64xbf16, #tpu.memory_space<vmem>>, vector<2x1x10x64xbf16>
    tpu.vector_store %arg5[%c0, %c0_0, %c0_1, %c0_2], %0 {strides = array<i32>} : memref<2x10x10x64xbf16, #tpu.memory_space<vmem>>, vector<2x1x10x64xbf16>,
    %cst_3 = arith.constant 0.000000e+00 : bf16
    %2 = vector.broadcast %cst_3 : bf16 to vector<2x1x10x64xbf16>
    %c0_4 = arith.constant 0 : index
    %c9 = arith.constant 9 : index
    %c0_5 = arith.constant 0 : index
    %c0_6 = arith.constant 0 : index
    %3 = vector.load %arg5[%c0_4, %c9, %c0_5, %c0_6] : memref<2x10x10x64xbf16, #tpu.memory_space<vmem>>, vector<2x1x10x64xbf16>
    tpu.vector_store %arg5[%c0_4, %c9, %c0_5, %c0_6], %2 {strides = array<i32>} : memref<2x10x10x64xbf16, #tpu.memory_space<vmem>>, vector<2x1x10x64xbf16>,
    %cst_7 = arith.constant 0.000000e+00 : bf16
    %4 = vector.broadcast %cst_7 : bf16 to vector<2x10x1x64xbf16>
    %c0_8 = arith.constant 0 : index
    %c0_9 = arith.constant 0 : index
    %c0_10 = arith.constant 0 : index
    %c0_11 = arith.constant 0 : index
    %5 = vector.load %arg5[%c0_8, %c0_9, %c0_10, %c0_11] : memref<2x10x10x64xbf16, #tpu.memory_space<vmem>>, vector<2x10x1x64xbf16>
    tpu.vector_store %arg5[%c0_8, %c0_9, %c0_10, %c0_11], %4 {strides = array<i32>} : memref<2x10x10x64xbf16, #tpu.memory_space<vmem>>, vector<2x10x1x64xbf16>,
    %cst_12 = arith.constant 0.000000e+00 : bf16
    %6 = vector.broadcast %cst_12 : bf16 to vector<2x10x1x64xbf16>
    %c0_13 = arith.constant 0 : index
    %c0_14 = arith.constant 0 : index
    %c9_15 = arith.constant 9 : index
    %c0_16 = arith.constant 0 : index
    %7 = vector.load %arg5[%c0_13, %c0_14, %c9_15, %c0_16] : memref<2x10x10x64xbf16, #tpu.memory_space<vmem>>, vector<2x10x1x64xbf16>
    tpu.vector_store %arg5[%c0_13, %c0_14, %c9_15, %c0_16], %6 {strides = array<i32>} : memref<2x10x10x64xbf16, #tpu.memory_space<vmem>>, vector<2x10x1x64xbf16>,
    %c0_17 = arith.constant 0 : index
    %c0_18 = arith.constant 0 : index
    %c0_19 = arith.constant 0 : index
    %c0_20 = arith.constant 0 : index
    %8 = vector.load %arg1[%c0_17, %c0_18, %c0_19, %c0_20] : memref<2x8x8x64xf32, #tpu.memory_space<vmem>>, vector<2x8x8x64xf32>
    %9 = vector.shape_cast %8 : vector<2x8x8x64xf32> to vector<128x64xf32>
    %cst_21 = arith.constant 0.000000e+00 : f32
    %10 = vector.broadcast %cst_21 : f32 to vector<128x64xf32>
    %11 = arith.maximumf %9, %10 : vector<128x64xf32>
    %12 = arith.truncf %11 : vector<128x64xf32> to vector<128x64xbf16>
    %13 = vector.shape_cast %12 : vector<128x64xbf16> to vector<2x8x8x64xbf16>
    %c0_22 = arith.constant 0 : index
    %c1 = arith.constant 1 : index
    %c1_23 = arith.constant 1 : index
    %c0_24 = arith.constant 0 : index
    %14 = vector.load %arg5[%c0_22, %c1, %c1_23, %c0_24] : memref<2x10x10x64xbf16, #tpu.memory_space<vmem>>, vector<2x8x8x64xbf16>
    tpu.vector_store %arg5[%c0_22, %c1, %c1_23, %c0_24], %13 {strides = array<i32>} : memref<2x10x10x64xbf16, #tpu.memory_space<vmem>>, vector<2x8x8x64xbf16>,
    %c0_25 = arith.constant 0 : index
    %c0_26 = arith.constant 0 : index
    %c0_27 = arith.constant 0 : index
    %c0_28 = arith.constant 0 : index
    %15 = vector.load %arg5[%c0_25, %c0_26, %c0_27, %c0_28] : memref<2x10x10x64xbf16, #tpu.memory_space<vmem>>, vector<2x8x8x64xbf16>
    %c0_29 = arith.constant 0 : index
    %c0_30 = arith.constant 0 : index
    %c1_31 = arith.constant 1 : index
    %c0_32 = arith.constant 0 : index
    %16 = vector.load %arg5[%c0_29, %c0_30, %c1_31, %c0_32] : memref<2x10x10x64xbf16, #tpu.memory_space<vmem>>, vector<2x8x8x64xbf16>
    %17 = tpu.concatenate %15, %16 in 3 : vector<2x8x8x64xbf16>, vector<2x8x8x64xbf16> -> vector<2x8x8x128xbf16>
    %c0_33 = arith.constant 0 : index
    %c0_34 = arith.constant 0 : index
    %c0_35 = arith.constant 0 : index
    %c0_36 = arith.constant 0 : index
    %18 = vector.load %arg6[%c0_33, %c0_34, %c0_35, %c0_36] : memref<2x8x8x576xbf16, #tpu.memory_space<vmem>>, vector<2x8x8x128xbf16>
    tpu.vector_store %arg6[%c0_33, %c0_34, %c0_35, %c0_36], %17 {strides = array<i32>} : memref<2x8x8x576xbf16, #tpu.memory_space<vmem>>, vector<2x8x8x128xbf16>,
    %c0_37 = arith.constant 0 : index
    %c0_38 = arith.constant 0 : index
    %c2 = arith.constant 2 : index
    %c0_39 = arith.constant 0 : index
    %19 = vector.load %arg5[%c0_37, %c0_38, %c2, %c0_39] : memref<2x10x10x64xbf16, #tpu.memory_space<vmem>>, vector<2x8x8x64xbf16>
    %c0_40 = arith.constant 0 : index
    %c1_41 = arith.constant 1 : index
    %c0_42 = arith.constant 0 : index
    %c0_43 = arith.constant 0 : index
    %20 = vector.load %arg5[%c0_40, %c1_41, %c0_42, %c0_43] : memref<2x10x10x64xbf16, #tpu.memory_space<vmem>>, vector<2x8x8x64xbf16>
    %21 = tpu.concatenate %19, %20 in 3 : vector<2x8x8x64xbf16>, vector<2x8x8x64xbf16> -> vector<2x8x8x128xbf16>
    %c0_44 = arith.constant 0 : index
    %c0_45 = arith.constant 0 : index
    %c0_46 = arith.constant 0 : index
    %c128 = arith.constant 128 : index
    %22 = vector.load %arg6[%c0_44, %c0_45, %c0_46, %c128] : memref<2x8x8x576xbf16, #tpu.memory_space<vmem>>, vector<2x8x8x128xbf16>
    tpu.vector_store %arg6[%c0_44, %c0_45, %c0_46, %c128], %21 {strides = array<i32>} : memref<2x8x8x576xbf16, #tpu.memory_space<vmem>>, vector<2x8x8x128xbf16>,
    %c0_47 = arith.constant 0 : index
    %c1_48 = arith.constant 1 : index
    %c1_49 = arith.constant 1 : index
    %c0_50 = arith.constant 0 : index
    %23 = vector.load %arg5[%c0_47, %c1_48, %c1_49, %c0_50] : memref<2x10x10x64xbf16, #tpu.memory_space<vmem>>, vector<2x8x8x64xbf16>
    %c0_51 = arith.constant 0 : index
    %c1_52 = arith.constant 1 : index
    %c2_53 = arith.constant 2 : index
    %c0_54 = arith.constant 0 : index
    %24 = vector.load %arg5[%c0_51, %c1_52, %c2_53, %c0_54] : memref<2x10x10x64xbf16, #tpu.memory_space<vmem>>, vector<2x8x8x64xbf16>
    %25 = tpu.concatenate %23, %24 in 3 : vector<2x8x8x64xbf16>, vector<2x8x8x64xbf16> -> vector<2x8x8x128xbf16>
    %c0_55 = arith.constant 0 : index
    %c0_56 = arith.constant 0 : index
    %c0_57 = arith.constant 0 : index
    %c256 = arith.constant 256 : index
    %26 = vector.load %arg6[%c0_55, %c0_56, %c0_57, %c256] : memref<2x8x8x576xbf16, #tpu.memory_space<vmem>>, vector<2x8x8x128xbf16>
    tpu.vector_store %arg6[%c0_55, %c0_56, %c0_57, %c256], %25 {strides = array<i32>} : memref<2x8x8x576xbf16, #tpu.memory_space<vmem>>, vector<2x8x8x128xbf16>,
    %c0_58 = arith.constant 0 : index
    %c2_59 = arith.constant 2 : index
    %c0_60 = arith.constant 0 : index
    %c0_61 = arith.constant 0 : index
    %27 = vector.load %arg5[%c0_58, %c2_59, %c0_60, %c0_61] : memref<2x10x10x64xbf16, #tpu.memory_space<vmem>>, vector<2x8x8x64xbf16>
    %c0_62 = arith.constant 0 : index
    %c2_63 = arith.constant 2 : index
    %c1_64 = arith.constant 1 : index
    %c0_65 = arith.constant 0 : index
    %28 = vector.load %arg5[%c0_62, %c2_63, %c1_64, %c0_65] : memref<2x10x10x64xbf16, #tpu.memory_space<vmem>>, vector<2x8x8x64xbf16>
    %29 = tpu.concatenate %27, %28 in 3 : vector<2x8x8x64xbf16>, vector<2x8x8x64xbf16> -> vector<2x8x8x128xbf16>
    %c0_66 = arith.constant 0 : index
    %c0_67 = arith.constant 0 : index
    %c0_68 = arith.constant 0 : index
    %c384 = arith.constant 384 : index
    %30 = vector.load %arg6[%c0_66, %c0_67, %c0_68, %c384] : memref<2x8x8x576xbf16, #tpu.memory_space<vmem>>, vector<2x8x8x128xbf16>
    tpu.vector_store %arg6[%c0_66, %c0_67, %c0_68, %c384], %29 {strides = array<i32>} : memref<2x8x8x576xbf16, #tpu.memory_space<vmem>>, vector<2x8x8x128xbf16>,
    %c0_69 = arith.constant 0 : index
    %c2_70 = arith.constant 2 : index
    %c2_71 = arith.constant 2 : index
    %c0_72 = arith.constant 0 : index
    %31 = vector.load %arg5[%c0_69, %c2_70, %c2_71, %c0_72] : memref<2x10x10x64xbf16, #tpu.memory_space<vmem>>, vector<2x8x8x64xbf16>
    %c0_73 = arith.constant 0 : index
    %c0_74 = arith.constant 0 : index
    %c0_75 = arith.constant 0 : index
    %c512 = arith.constant 512 : index
    %32 = vector.load %arg6[%c0_73, %c0_74, %c0_75, %c512] : memref<2x8x8x576xbf16, #tpu.memory_space<vmem>>, vector<2x8x8x64xbf16>
    tpu.vector_store %arg6[%c0_73, %c0_74, %c0_75, %c512], %31 {strides = array<i32>} : memref<2x8x8x576xbf16, #tpu.memory_space<vmem>>, vector<2x8x8x64xbf16>,
    %c0_76 = arith.constant 0 : index
    %c0_77 = arith.constant 0 : index
    %c0_78 = arith.constant 0 : index
    %c0_79 = arith.constant 0 : index
    %33 = vector.load %arg6[%c0_76, %c0_77, %c0_78, %c0_79] : memref<2x8x8x576xbf16, #tpu.memory_space<vmem>>, vector<2x8x8x576xbf16>
    %34 = vector.shape_cast %33 : vector<2x8x8x576xbf16> to vector<128x576xbf16>
    %c0_80 = arith.constant 0 : index
    %c0_81 = arith.constant 0 : index
    %c0_82 = arith.constant 0 : index
    %35 = vector.load %arg2[%c0_80, %c0_81, %c0_82] : memref<2x576x32xbf16, #tpu.memory_space<vmem>>, vector<1x576x32xbf16>
    %36 = vector.shape_cast %35 : vector<1x576x32xbf16> to vector<576x32xbf16>
    %cst_83 = arith.constant dense<0.000000e+00> : vector<128x32xf32>
    %37 = tpu.matmul %34, %36, %cst_83 {dimension_numbers = #tpu.dot_dimension_numbers<[1], [0], [0], [1], [0, 0, 1, 1], [], []>} : vector<128x576xbf16>, vector<576x32xbf16>, vector<128x32xf32> -> vector<128x32xf32>
    %cst_84 = arith.constant 0.000000e+00 : f32
    %38 = vector.broadcast %cst_84 : f32 to vector<128x32xf32>
    %39 = arith.maximumf %37, %38 : vector<128x32xf32>
    %40 = arith.truncf %39 : vector<128x32xf32> to vector<128x32xbf16>
    %c0_85 = arith.constant 0 : index
    %c0_86 = arith.constant 0 : index
    %c0_87 = arith.constant 0 : index
    %41 = vector.load %arg3[%c0_85, %c0_86, %c0_87] : memref<2x32x64xbf16, #tpu.memory_space<vmem>>, vector<1x32x64xbf16>
    %42 = vector.shape_cast %41 : vector<1x32x64xbf16> to vector<32x64xbf16>
    %cst_88 = arith.constant dense<0.000000e+00> : vector<128x64xf32>
    %43 = tpu.matmul %40, %42, %cst_88 {dimension_numbers = #tpu.dot_dimension_numbers<[1], [0], [0], [1], [0, 0, 1, 1], [], []>} : vector<128x32xbf16>, vector<32x64xbf16>, vector<128x64xf32> -> vector<128x64xf32>
    %44 = arith.addf %9, %43 : vector<128x64xf32>
    %cst_89 = arith.constant 0.000000e+00 : f32
    %45 = vector.broadcast %cst_89 : f32 to vector<128x64xf32>
    %46 = arith.maximumf %44, %45 : vector<128x64xf32>
    %47 = arith.truncf %46 : vector<128x64xf32> to vector<128x64xbf16>
    %48 = vector.shape_cast %47 : vector<128x64xbf16> to vector<2x8x8x64xbf16>
    %c0_90 = arith.constant 0 : index
    %c1_91 = arith.constant 1 : index
    %c1_92 = arith.constant 1 : index
    %c0_93 = arith.constant 0 : index
    %49 = vector.load %arg5[%c0_90, %c1_91, %c1_92, %c0_93] : memref<2x10x10x64xbf16, #tpu.memory_space<vmem>>, vector<2x8x8x64xbf16>
    tpu.vector_store %arg5[%c0_90, %c1_91, %c1_92, %c0_93], %48 {strides = array<i32>} : memref<2x10x10x64xbf16, #tpu.memory_space<vmem>>, vector<2x8x8x64xbf16>,
    %c0_94 = arith.constant 0 : index
    %c0_95 = arith.constant 0 : index
    %c0_96 = arith.constant 0 : index
    %c0_97 = arith.constant 0 : index
    %50 = vector.load %arg5[%c0_94, %c0_95, %c0_96, %c0_97] : memref<2x10x10x64xbf16, #tpu.memory_space<vmem>>, vector<2x8x8x64xbf16>
    %c0_98 = arith.constant 0 : index
    %c0_99 = arith.constant 0 : index
    %c1_100 = arith.constant 1 : index
    %c0_101 = arith.constant 0 : index
    %51 = vector.load %arg5[%c0_98, %c0_99, %c1_100, %c0_101] : memref<2x10x10x64xbf16, #tpu.memory_space<vmem>>, vector<2x8x8x64xbf16>
    %52 = tpu.concatenate %50, %51 in 3 : vector<2x8x8x64xbf16>, vector<2x8x8x64xbf16> -> vector<2x8x8x128xbf16>
    %c0_102 = arith.constant 0 : index
    %c0_103 = arith.constant 0 : index
    %c0_104 = arith.constant 0 : index
    %c0_105 = arith.constant 0 : index
    %53 = vector.load %arg6[%c0_102, %c0_103, %c0_104, %c0_105] : memref<2x8x8x576xbf16, #tpu.memory_space<vmem>>, vector<2x8x8x128xbf16>
    tpu.vector_store %arg6[%c0_102, %c0_103, %c0_104, %c0_105], %52 {strides = array<i32>} : memref<2x8x8x576xbf16, #tpu.memory_space<vmem>>, vector<2x8x8x128xbf16>,
    %c0_106 = arith.constant 0 : index
    %c0_107 = arith.constant 0 : index
    %c2_108 = arith.constant 2 : index
    %c0_109 = arith.constant 0 : index
    %54 = vector.load %arg5[%c0_106, %c0_107, %c2_108, %c0_109] : memref<2x10x10x64xbf16, #tpu.memory_space<vmem>>, vector<2x8x8x64xbf16>
    %c0_110 = arith.constant 0 : index
    %c1_111 = arith.constant 1 : index
    %c0_112 = arith.constant 0 : index
    %c0_113 = arith.constant 0 : index
    %55 = vector.load %arg5[%c0_110, %c1_111, %c0_112, %c0_113] : memref<2x10x10x64xbf16, #tpu.memory_space<vmem>>, vector<2x8x8x64xbf16>
    %56 = tpu.concatenate %54, %55 in 3 : vector<2x8x8x64xbf16>, vector<2x8x8x64xbf16> -> vector<2x8x8x128xbf16>
    %c0_114 = arith.constant 0 : index
    %c0_115 = arith.constant 0 : index
    %c0_116 = arith.constant 0 : index
    %c128_117 = arith.constant 128 : index
    %57 = vector.load %arg6[%c0_114, %c0_115, %c0_116, %c128_117] : memref<2x8x8x576xbf16, #tpu.memory_space<vmem>>, vector<2x8x8x128xbf16>
    tpu.vector_store %arg6[%c0_114, %c0_115, %c0_116, %c128_117], %56 {strides = array<i32>} : memref<2x8x8x576xbf16, #tpu.memory_space<vmem>>, vector<2x8x8x128xbf16>,
    %c0_118 = arith.constant 0 : index
    %c1_119 = arith.constant 1 : index
    %c1_120 = arith.constant 1 : index
    %c0_121 = arith.constant 0 : index
    %58 = vector.load %arg5[%c0_118, %c1_119, %c1_120, %c0_121] : memref<2x10x10x64xbf16, #tpu.memory_space<vmem>>, vector<2x8x8x64xbf16>
    %c0_122 = arith.constant 0 : index
    %c1_123 = arith.constant 1 : index
    %c2_124 = arith.constant 2 : index
    %c0_125 = arith.constant 0 : index
    %59 = vector.load %arg5[%c0_122, %c1_123, %c2_124, %c0_125] : memref<2x10x10x64xbf16, #tpu.memory_space<vmem>>, vector<2x8x8x64xbf16>
    %60 = tpu.concatenate %58, %59 in 3 : vector<2x8x8x64xbf16>, vector<2x8x8x64xbf16> -> vector<2x8x8x128xbf16>
    %c0_126 = arith.constant 0 : index
    %c0_127 = arith.constant 0 : index
    %c0_128 = arith.constant 0 : index
    %c256_129 = arith.constant 256 : index
    %61 = vector.load %arg6[%c0_126, %c0_127, %c0_128, %c256_129] : memref<2x8x8x576xbf16, #tpu.memory_space<vmem>>, vector<2x8x8x128xbf16>
    tpu.vector_store %arg6[%c0_126, %c0_127, %c0_128, %c256_129], %60 {strides = array<i32>} : memref<2x8x8x576xbf16, #tpu.memory_space<vmem>>, vector<2x8x8x128xbf16>,
    %c0_130 = arith.constant 0 : index
    %c2_131 = arith.constant 2 : index
    %c0_132 = arith.constant 0 : index
    %c0_133 = arith.constant 0 : index
    %62 = vector.load %arg5[%c0_130, %c2_131, %c0_132, %c0_133] : memref<2x10x10x64xbf16, #tpu.memory_space<vmem>>, vector<2x8x8x64xbf16>
    %c0_134 = arith.constant 0 : index
    %c2_135 = arith.constant 2 : index
    %c1_136 = arith.constant 1 : index
    %c0_137 = arith.constant 0 : index
    %63 = vector.load %arg5[%c0_134, %c2_135, %c1_136, %c0_137] : memref<2x10x10x64xbf16, #tpu.memory_space<vmem>>, vector<2x8x8x64xbf16>
    %64 = tpu.concatenate %62, %63 in 3 : vector<2x8x8x64xbf16>, vector<2x8x8x64xbf16> -> vector<2x8x8x128xbf16>
    %c0_138 = arith.constant 0 : index
    %c0_139 = arith.constant 0 : index
    %c0_140 = arith.constant 0 : index
    %c384_141 = arith.constant 384 : index
    %65 = vector.load %arg6[%c0_138, %c0_139, %c0_140, %c384_141] : memref<2x8x8x576xbf16, #tpu.memory_space<vmem>>, vector<2x8x8x128xbf16>
    tpu.vector_store %arg6[%c0_138, %c0_139, %c0_140, %c384_141], %64 {strides = array<i32>} : memref<2x8x8x576xbf16, #tpu.memory_space<vmem>>, vector<2x8x8x128xbf16>,
    %c0_142 = arith.constant 0 : index
    %c2_143 = arith.constant 2 : index
    %c2_144 = arith.constant 2 : index
    %c0_145 = arith.constant 0 : index
    %66 = vector.load %arg5[%c0_142, %c2_143, %c2_144, %c0_145] : memref<2x10x10x64xbf16, #tpu.memory_space<vmem>>, vector<2x8x8x64xbf16>
    %c0_146 = arith.constant 0 : index
    %c0_147 = arith.constant 0 : index
    %c0_148 = arith.constant 0 : index
    %c512_149 = arith.constant 512 : index
    %67 = vector.load %arg6[%c0_146, %c0_147, %c0_148, %c512_149] : memref<2x8x8x576xbf16, #tpu.memory_space<vmem>>, vector<2x8x8x64xbf16>
    tpu.vector_store %arg6[%c0_146, %c0_147, %c0_148, %c512_149], %66 {strides = array<i32>} : memref<2x8x8x576xbf16, #tpu.memory_space<vmem>>, vector<2x8x8x64xbf16>,
    %c0_150 = arith.constant 0 : index
    %c0_151 = arith.constant 0 : index
    %c0_152 = arith.constant 0 : index
    %c0_153 = arith.constant 0 : index
    %68 = vector.load %arg6[%c0_150, %c0_151, %c0_152, %c0_153] : memref<2x8x8x576xbf16, #tpu.memory_space<vmem>>, vector<2x8x8x576xbf16>
    %69 = vector.shape_cast %68 : vector<2x8x8x576xbf16> to vector<128x576xbf16>
    %c1_154 = arith.constant 1 : index
    %c0_155 = arith.constant 0 : index
    %c0_156 = arith.constant 0 : index
    %70 = vector.load %arg2[%c1_154, %c0_155, %c0_156] : memref<2x576x32xbf16, #tpu.memory_space<vmem>>, vector<1x576x32xbf16>
    %71 = vector.shape_cast %70 : vector<1x576x32xbf16> to vector<576x32xbf16>
    %cst_157 = arith.constant dense<0.000000e+00> : vector<128x32xf32>
    %72 = tpu.matmul %69, %71, %cst_157 {dimension_numbers = #tpu.dot_dimension_numbers<[1], [0], [0], [1], [0, 0, 1, 1], [], []>} : vector<128x576xbf16>, vector<576x32xbf16>, vector<128x32xf32> -> vector<128x32xf32>
    %cst_158 = arith.constant 0.000000e+00 : f32
    %73 = vector.broadcast %cst_158 : f32 to vector<128x32xf32>
    %74 = arith.maximumf %72, %73 : vector<128x32xf32>
    %75 = arith.truncf %74 : vector<128x32xf32> to vector<128x32xbf16>
    %c1_159 = arith.constant 1 : index
    %c0_160 = arith.constant 0 : index
    %c0_161 = arith.constant 0 : index
    %76 = vector.load %arg3[%c1_159, %c0_160, %c0_161] : memref<2x32x64xbf16, #tpu.memory_space<vmem>>, vector<1x32x64xbf16>
    %77 = vector.shape_cast %76 : vector<1x32x64xbf16> to vector<32x64xbf16>
    %cst_162 = arith.constant dense<0.000000e+00> : vector<128x64xf32>
    %78 = tpu.matmul %75, %77, %cst_162 {dimension_numbers = #tpu.dot_dimension_numbers<[1], [0], [0], [1], [0, 0, 1, 1], [], []>} : vector<128x32xbf16>, vector<32x64xbf16>, vector<128x64xf32> -> vector<128x64xf32>
    %79 = arith.addf %44, %78 : vector<128x64xf32>
    %cst_163 = arith.constant 0.000000e+00 : f32
    %80 = vector.broadcast %cst_163 : f32 to vector<128x64xf32>
    %81 = arith.maximumf %79, %80 : vector<128x64xf32>
    %82 = vector.shape_cast %81 : vector<128x64xf32> to vector<2x8x8x64xf32>
    %c0_164 = arith.constant 0 : index
    %c0_165 = arith.constant 0 : index
    %c0_166 = arith.constant 0 : index
    %c0_167 = arith.constant 0 : index
    %83 = vector.load %arg4[%c0_164, %c0_165, %c0_166, %c0_167] : memref<2x8x8x64xf32, #tpu.memory_space<vmem>>, vector<2x8x8x64xf32>
    tpu.vector_store %arg4[%c0_164, %c0_165, %c0_166, %c0_167], %82 {strides = array<i32>} : memref<2x8x8x64xf32, #tpu.memory_space<vmem>>, vector<2x8x8x64xf32>,
    return
  }
  func.func @transform_0(%arg0: i32) -> (i32, i32, i32, i32) {
    %c0_i32 = arith.constant 0 : i32
    %c0_i32_0 = arith.constant 0 : i32
    %c0_i32_1 = arith.constant 0 : i32
    %c0_i32_2 = arith.constant 0 : i32
    return %arg0, %c0_i32, %c0_i32_0, %c0_i32_1 : i32, i32, i32, i32
  }
  func.func @transform_1(%arg0: i32) -> (i32, i32, i32) {
    %c0_i32 = arith.constant 0 : i32
    %c0_i32_0 = arith.constant 0 : i32
    %c0_i32_1 = arith.constant 0 : i32
    %c0_i32_2 = arith.constant 0 : i32
    return %c0_i32, %c0_i32_0, %c0_i32_1 : i32, i32, i32
  }
  func.func @transform_2(%arg0: i32) -> (i32, i32, i32) {
    %c0_i32 = arith.constant 0 : i32
    %c0_i32_0 = arith.constant 0 : i32
    %c0_i32_1 = arith.constant 0 : i32
    %c0_i32_2 = arith.constant 0 : i32
    return %c0_i32, %c0_i32_0, %c0_i32_1 : i32, i32, i32
  }
  func.func @transform_3(%arg0: i32) -> (i32, i32, i32, i32) {
    %c0_i32 = arith.constant 0 : i32
    %c0_i32_0 = arith.constant 0 : i32
    %c0_i32_1 = arith.constant 0 : i32
    %c0_i32_2 = arith.constant 0 : i32
    return %arg0, %c0_i32, %c0_i32_0, %c0_i32_1 : i32, i32, i32, i32
  }
}

</mosaic_0001>

<bundles_post_ra>
// kernel: tpu_custom_call.1
= control target key start
LH: loop header
LB: loop body
LE: loop exit
PB: predicated region body
PF: predicated region fallthrough
CT: control target
= control target key end

     0   :  { %vm18_vm0 = vcmask 516096   ;;  %vm28_vm1 = vsmask.f32 256  ;;  %v42_v0 = vld [vmem:[#allocation2 + $0x20] sm:$0x1]  ;;  %vm16_vm2 = vcmask 519168   ;;  %s10301_s0 = inlined_call_operand.vmem [shape: f32[2,8,8,64], index: 0, kind: input, shape index: {}]   ;;  %s10302_s1 = inlined_call_operand.vmem [shape: bf16[2,576,32], index: 1, kind: input, shape index: {}]   ;;  %s10303_s2 = inlined_call_operand.vmem [shape: bf16[2,32,64], index: 2, kind: input, shape index: {}]   ;;  %s10304_s3 = inlined_call_operand.hbm [shape: f32[2,8,8,64], index: 3, kind: output, shape index: {}]  }
   0x1   :  { %vm8528_vm3 = vmand %vm18_vm0, %vm28_vm1  ;;  %v155_v2 = vld [vmem:[%s10301_s0 + $0x18] sm:$0xff]  ;;  %v33_v3 = vld [vmem:[#allocation2 + $0x8] sm:$0x1]  ;;  %vm90_vm4 = vsmask.f32 7938  ;;  %s8503_s28 = smov 64  }
   0x2   :  { %v43_v4 = vsel %vm8528_vm3, 0, %v42_v0  ;;  %v171_v5 = vmax.f32 %v155_v2, 0.0  ;;  %v34_v6 = vsel %vm8528_vm3, 0, %v33_v3  ;;  %v152_v7 = vld [vmem:[%s10301_s0] sm:$0xff]  ;;  %v48_v8 = vld [vmem:[#allocation2 + $0x30] sm:$0x1]  ;;  %vm8566_vm5 = vmand %vm16_vm2, %vm90_vm4 }
   0x3   :  { %44 = vst [vmem:[#allocation2 + $0x20] sm:$0x1] %v43_v4  ;;  %35 = vst [vmem:[#allocation2 + $0x8] sm:$0x1] %v34_v6  ;;  %v168_v9 = vmax.f32 %v152_v7, 0.0  ;;  %v49_v10 = vsel %vm8528_vm3, 0, %v48_v8 }
   0x4   :  { %v157_v11 = vld [vmem:[%s10301_s0 + $0x28] sm:$0xff]  ;;  %v36_v12 = vld [vmem:[#allocation2 + $0x10] sm:$0x1]  ;;  %v7577_v14 = vpack.c.bf16 %v171_v5, %v171_v5  ;;  %50 = vst [vmem:[#allocation2 + $0x30] sm:$0x1] %v49_v10  ;;  %v159_v19 = vld [vmem:[%s10301_s0 + $0x38] sm:$0xff] }
   0x5   :  { %v153_v13 = vld [vmem:[%s10301_s0 + $0x8] sm:$0xff]  ;;  %v173_v15 = vmax.f32 %v157_v11, 0.0  ;;  %v37_v16 = vsel %vm8528_vm3, 0, %v36_v12  ;;  %v54_v18 = vld [vmem:[#allocation2 + $0x40] sm:$0x1]  ;;  %v7574_v20 = vpack.c.bf16 %v168_v9, %v168_v9  ;;  %v175_v22 = vmax.f32 %v159_v19, 0.0  ;;  %vm8597_vm6 = vmand %vm18_vm0, %vm90_vm4 }
   0x6   :  { %v169_v17 = vmax.f32 %v153_v13, 0.0  ;;  %38 = vst [vmem:[#allocation2 + $0x10] sm:$0x1] %v37_v16  ;;  %v55_v21 = vsel %vm8528_vm3, 0, %v54_v18  ;;  %v39_v23 = vld [vmem:[#allocation2 + $0x18] sm:$0x1] }
   0x7   :  { %v257_v24 = vshrl.u32 %v7577_v14, 16  ;;  %v260_v25 = vshll.u32 %v7577_v14, 16  ;;  %v7579_v26 = vpack.c.bf16 %v173_v15, %v173_v15  ;;  %56 = vst [vmem:[#allocation2 + $0x40] sm:$0x1] %v55_v21  ;;  %v233_v28 = vshrl.u32 %v7574_v20, 16  ;;  %v154_v36 = vld [vmem:[%s10301_s0 + $0x10] sm:$0xff] }
   0x8   :  { %v7575_v27 = vpack.c.bf16 %v169_v17, %v169_v17  ;;  %v236_v29 = vshll.u32 %v7574_v20, 16  ;;  %v7581_v30 = vpack.c.bf16 %v175_v22, %v175_v22  ;;  %v40_v31 = vsel %vm8528_vm3, 0, %v39_v23  ;;  %v45_v42 = vld [vmem:[#allocation2 + $0x28] sm:$0x1]  ;;  %v156_v47 = vld [vmem:[%s10301_s0 + $0x20] sm:$0xff]  ;;  %v158_v58 = vld [vmem:[%s10301_s0 + $0x30] sm:$0xff] }
   0x9   :  { %v8559_v32 = vrot.slane %v257_v24, 7  ;;  %v273_v33 = vshrl.u32 %v7579_v26, 16  ;;  %v276_v34 = vshll.u32 %v7579_v26, 16  ;;  %41 = vst [vmem:[#allocation2 + $0x18] sm:$0x1] %v40_v31  ;;  %v8570_v38 = vrot.slane %v233_v28, 7 }
   0xa   :  { %v241_v35 = vshrl.u32 %v7575_v27, 16  ;;  %v244_v39 = vshll.u32 %v7575_v27, 16  ;;  %v289_v40 = vshrl.u32 %v7581_v30, 16  ;;  %v292_v41 = vshll.u32 %v7581_v30, 16  ;;  %v413_v44 = vld [vmem:[#allocation2 + $0x20] sm:$0xf] }
   0xb   :  { %v262_v43 = vor.u32 %v260_v25, %v8559_v32  ;;  %v395_v45 = vld [vmem:[#allocation2 + $0x8] sm:$0xf]  ;;  %v8573_v46 = vrot.slane %v273_v33, 7  ;;  %v238_v48 = vor.u32 %v236_v29, %v8570_v38  ;;  %v425_v49 = vld [vmem:[#allocation2 + $0x30] sm:$0xf]  ;;  %v170_v56 = vmax.f32 %v154_v36, 0.0 }
   0xc   :  { %v8579_v50 = vrot.slane %v241_v35, 7  ;;  %v8581_v51 = vrot.slane %v289_v40, 7  ;;  %v51_v52 = vld [vmem:[#allocation2 + $0x38] sm:$0x1]  ;;  %v46_v57 = vsel %vm8528_vm3, 0, %v45_v42  ;;  %v172_v4 = vmax.f32 %v156_v47, 0.0 }
   0xd   :  { %v414_v53 = vsel %vm8566_vm5, %v262_v43, %v413_v44  ;;  %v278_v54 = vor.u32 %v276_v34, %v8573_v46  ;;  %v401_v55 = vld [vmem:[#allocation2 + $0x10] sm:$0xf]  ;;  %v396_v59 = vsel %vm8566_vm5, %v238_v48, %v395_v45  ;;  %47 = vst [vmem:[#allocation2 + $0x28] sm:$0x1] %v46_v57  ;;  %v95_v0 = vld [vmem:[#allocation2 + $0xc] sm:$0x1]  ;;  %v7576_v3 = vpack.c.bf16 %v170_v56, %v170_v56 }
   0xe   :  { %415 = vst [vmem:[#allocation2 + $0x20] sm:$0xf] %v414_v53  ;;  %v246_v60 = vor.u32 %v244_v39, %v8579_v50  ;;  %v294_v61 = vor.u32 %v292_v41, %v8581_v51  ;;  %v437_v62 = vld [vmem:[#allocation2 + $0x40] sm:$0xf]  ;;  %397 = vst [vmem:[#allocation2 + $0x8] sm:$0xf] %v396_v59  ;;  %v7578_v16 = vpack.c.bf16 %v172_v4, %v172_v4 }
   0xf   :  { %v426_v2 = vsel %vm8566_vm5, %v278_v54, %v425_v49  ;;  %v98_v5 = vld [vmem:[#allocation2 + $0x14] sm:$0x1]  ;;  %v101_v6 = vld [vmem:[#allocation2 + $0x1c] sm:$0x1]  ;;  %v8502_v9 = vmov 0   ;;  %v52_v10 = vsel %vm8528_vm3, 0, %v51_v52 }
  0x10   :  { %427 = vst [vmem:[#allocation2 + $0x30] sm:$0xf] %v426_v2  ;;  %v402_v7 = vsel %vm8566_vm5, %v246_v60, %v401_v55  ;;  %v438_v8 = vsel %vm8566_vm5, %v294_v61, %v437_v62  ;;  %17 = vst.msk [vmem:[#allocation2] sm:$0xf] %vm16_vm2, %v8502_v9  ;;  %v174_v11 = vmax.f32 %v158_v58, 0.0  ;;  %v249_v14 = vshrl.u32 %v7576_v3, 16 }
  0x11   :  { %19 = vst.msk [vmem:[#allocation2 + $0x4] sm:$0x1] %vm18_vm0, %v8502_v9  ;;  %21 = vst.msk [vmem:[#allocation2 + $0x54] sm:$0x1] %vm18_vm0, %v8502_v9  ;;  %v104_v12 = vld [vmem:[#allocation2 + $0x24] sm:$0x1] }
  0x12   :  { %20 = vst.msk [vmem:[#allocation2 + $0x50] sm:$0xf] %vm16_vm2, %v8502_v9  ;;  %23 = vst.msk [vmem:[#allocation2 + $0x48] sm:$0xf] %vm16_vm2, %v8502_v9  ;;  %v107_v13 = vld [vmem:[#allocation2 + $0x2c] sm:$0x1]  ;;  %v7580_v20 = vpack.c.bf16 %v174_v11, %v174_v11 }
  0x13   :  { %24 = vst.msk [vmem:[#allocation2 + $0x4c] sm:$0x1] %vm18_vm0, %v8502_v9  ;;  %26 = vst.msk [vmem:[#allocation2 + $0x9c] sm:$0x1] %vm18_vm0, %v8502_v9  ;;  %v252_v15 = vshll.u32 %v7576_v3, 16  ;;  %v96_v17 = vsel %vm8597_vm6, 0, %v95_v0 }
  0x14   :  { %25 = vst.msk [vmem:[#allocation2 + $0x98] sm:$0xf] %vm16_vm2, %v8502_v9  ;;  %403 = vst [vmem:[#allocation2 + $0x10] sm:$0xf] %v402_v7  ;;  %v110_v18 = vld [vmem:[#allocation2 + $0x34] sm:$0x1] }
  0x15   :  { %439 = vst [vmem:[#allocation2 + $0x40] sm:$0xf] %v438_v8  ;;  %53 = vst [vmem:[#allocation2 + $0x38] sm:$0x1] %v52_v10  ;;  %v263_v19 = vrot.slane %v8559_v32, 4  ;;  %v99_v21 = vsel %vm8597_vm6, 0, %v98_v5 }
  0x16   :  { %97 = vst [vmem:[#allocation2 + $0xc] sm:$0x1] %v96_v17  ;;  %v102_v22 = vsel %vm8597_vm6, 0, %v101_v6  ;;  %v8624_v23 = vrot.slane %v249_v14, 7  ;;  %v265_v24 = vshrl.u32 %v7578_v16, 16  ;;  %v268_v25 = vshll.u32 %v7578_v16, 16 }
  0x17   :  { %100 = vst [vmem:[#allocation2 + $0x14] sm:$0x1] %v99_v21  ;;  %103 = vst [vmem:[#allocation2 + $0x1c] sm:$0x1] %v102_v22  ;;  %v105_v26 = vsel %vm8597_vm6, 0, %v104_v12  ;;  %v239_v27 = vrot.slane %v8570_v38, 4 }
  0x18   :  { %v407_v28 = vld [vmem:[#allocation2 + $0x18] sm:$0xf]  ;;  %v281_v29 = vshrl.u32 %v7580_v20, 16  ;;  %106 = vst [vmem:[#allocation2 + $0x24] sm:$0x1] %v105_v26  ;;  %v108_v30 = vsel %vm8597_vm6, 0, %v107_v13  ;;  %v254_v34 = vor.u32 %v252_v15, %v8624_v23 }
  0x19   :  { %v111_v31 = vsel %vm8597_vm6, 0, %v110_v18  ;;  %v7999_v33 = vld [vmem:[#allocation2 + $0x20] ss:$0 sps:$4 sm:$0xff]   ;;  %v8634_v35 = vrot.slane %v265_v24, 7  ;;  %v284_v36 = vshll.u32 %v7580_v20, 16  ;;  %v247_v49 = vrot.slane %v8579_v50, 4 }
  0x1a   :  { %109 = vst [vmem:[#allocation2 + $0x2c] sm:$0x1] %v108_v30  ;;  %112 = vst [vmem:[#allocation2 + $0x34] sm:$0x1] %v111_v31  ;;  %v113_v39 = vld [vmem:[#allocation2 + $0x3c] sm:$0x1]  ;;  %v408_v43 = vsel %vm8566_vm5, %v254_v34, %v407_v28 }
  0x1b   :  { %v8000_v40 = vld [vmem:[#allocation2 + $0x8] ss:$0 sps:$4 sm:$0xff]   ;;  %v1007_v41 = vrot.slane %v7999_v33, 7  ;;  %v8001_v42 = vld [vmem:[#allocation2 + $0x30] ss:$0 sps:$4 sm:$0xff]   ;;  %v270_v44 = vor.u32 %v268_v25, %v8634_v35  ;;  %v8639_v45 = vrot.slane %v281_v29, 7 }
  0x1c   :  { %v419_v38 = vld [vmem:[#allocation2 + $0x28] sm:$0xf]  ;;  %v1004_v47 = vrot.slane %v8000_v40, 7  ;;  %v8002_v48 = vld [vmem:[#allocation2 + $0x10] ss:$0 sps:$4 sm:$0xff]   ;;  %v1009_v52 = vrot.slane %v8001_v42, 7 }
  0x1d   :  { %409 = vst [vmem:[#allocation2 + $0x18] sm:$0xf] %v408_v43  ;;  %1026 = vrot.lane.b32.xlu1 %v1007_v41, %s8503_s28  ;;  %v8003_v53 = vld [vmem:[#allocation2 + $0x40] ss:$0 sps:$4 sm:$0xff]   ;;  %v420_v54 = vsel %vm8566_vm5, %v270_v44, %v419_v38  ;;  %v286_v55 = vor.u32 %v284_v36, %v8639_v45  ;;  %v255_v56 = vrot.slane %v8624_v23, 4  ;;  %v1005_v57 = vrot.slane %v8002_v48, 7 }
  0x1e   :  { %1020 = vrot.lane.b32.xlu0 %v1004_v47, %s8503_s28  ;;  %421 = vst [vmem:[#allocation2 + $0x28] sm:$0xf] %v420_v54  ;;  %v30_v58 = vld [vmem:[#allocation2] sm:$0x1]  ;;  %v92_v59 = vld [vmem:[#allocation2 + $0x4] sm:$0x1] }
  0x1f   :  { %v114_v50 = vsel %vm8597_vm6, 0, %v113_v39  ;;  %v31_v60 = vsel %vm8528_vm3, 0, %v30_v58  ;;  %v93_v61 = vsel %vm8597_vm6, 0, %v92_v59  ;;  %v431_v62 = vld [vmem:[#allocation2 + $0x38] sm:$0xf]  ;;  %v271_v0 = vrot.slane %v8634_v35, 4 }
  0x20   :  { %v279_v2 = vrot.slane %v8573_v46, 4  ;;  %115 = vst [vmem:[#allocation2 + $0x3c] sm:$0x1] %v114_v50  ;;  %v63_v3 = vld [vmem:[#allocation2 + $0x58] sm:$0x1]  ;;  %v160_v4 = vld [vmem:[%s10301_s0 + $0x40] sm:$0xff]  ;;  %v432_v5 = vsel %vm8566_vm5, %v286_v55, %v431_v62 }
  0x21   :  { %32 = vst [vmem:[#allocation2] sm:$0x1] %v31_v60  ;;  %94 = vst [vmem:[#allocation2 + $0x4] sm:$0x1] %v93_v61  ;;  %v398_v6 = vld [vmem:[#allocation2 + $0xc] sm:$0x1]  ;;  %1030 = vrot.lane.b32.xlu1 %v1009_v52, %s8503_s28 }
  0x22   :  { %v404_v7 = vld [vmem:[#allocation2 + $0x14] sm:$0x1]  ;;  %v66_v8 = vld [vmem:[#allocation2 + $0x60] sm:$0x1]  ;;  %v1011_v9 = vrot.slane %v8003_v53, 7  ;;  %v399_v46 = vsel %vm8528_vm3, %v239_v27, %v398_v6  ;;  %v161_v13 = vld [vmem:[%s10301_s0 + $0x48] sm:$0xff]  ;;  %1022 = vrot.lane.b32.xlu0 %v1005_v57, %s8503_s28 }
  0x23   :  { %433 = vst [vmem:[#allocation2 + $0x38] sm:$0xf] %v432_v5  ;;  %v405_v10 = vsel %vm8528_vm3, %v247_v49, %v404_v7  ;;  %v410_v11 = vld [vmem:[#allocation2 + $0x1c] sm:$0x1]  ;;  %v416_v12 = vld [vmem:[#allocation2 + $0x24] sm:$0x1] }
  0x24   :  { %400 = vst [vmem:[#allocation2 + $0xc] sm:$0x1] %v399_v46  ;;  %406 = vst [vmem:[#allocation2 + $0x14] sm:$0x1] %v405_v10  ;;  %v411_v14 = vsel %vm8528_vm3, %v255_v56, %v410_v11  ;;  %v417_v15 = vsel %vm8528_vm3, %v263_v19, %v416_v12  ;;  %v422_v16 = vld [vmem:[#allocation2 + $0x2c] sm:$0x1] }
  0x25   :  { %v428_v17 = vld [vmem:[#allocation2 + $0x34] sm:$0x1]  ;;  %v125_v18 = vld [vmem:[#allocation2 + $0x5c] sm:$0x1]  ;;  %v8004_v20 = vld [vmem:[#allocation2 + $0x18] ss:$0 sps:$4 sm:$0xff]   ;;  %v423_v21 = vsel %vm8528_vm3, %v271_v0, %v422_v16  ;;  %1034 = vrot.lane.b32.xlu1 %v1011_v9, %s8503_s28 }
  0x26   :  { %412 = vst [vmem:[#allocation2 + $0x1c] sm:$0x1] %v411_v14  ;;  %418 = vst [vmem:[#allocation2 + $0x24] sm:$0x1] %v417_v15  ;;  %v429_v22 = vsel %vm8528_vm3, %v279_v2, %v428_v17  ;;  %v287_v23 = vrot.slane %v8639_v45, 4  ;;  %v64_v32 = vsel %vm8528_vm3, 0, %v63_v3 }
  0x27   :  { %424 = vst [vmem:[#allocation2 + $0x2c] sm:$0x1] %v423_v21  ;;  %430 = vst [vmem:[#allocation2 + $0x34] sm:$0x1] %v429_v22  ;;  %v176_v19 = vmax.f32 %v160_v4, 0.0  ;;  %v67_v24 = vsel %vm8528_vm3, 0, %v66_v8 }
  0x28   :  { %v177_v25 = vmax.f32 %v161_v13, 0.0  ;;  %v1006_v26 = vrot.slane %v8004_v20, 7  ;;  %v8005_v27 = vld [vmem:[#allocation2 + $0x28] ss:$0 sps:$4 sm:$0xff]   ;;  %65 = vst [vmem:[#allocation2 + $0x58] sm:$0x1] %v64_v32 }
  0x29   :  { %v492_v28 = vld [vmem:[#allocation2 + $0x8] sm:$0xf]  ;;  %68 = vst [vmem:[#allocation2 + $0x60] sm:$0x1] %v67_v24  ;;  %v126_v29 = vsel %vm8597_vm6, 0, %v125_v18  ;;  %v8688_v33 = vpack.c.bf16 %v176_v19, %v176_v19  ;;  %v1008_v35 = vrot.slane %v8005_v27, 7 }
  0x2a   :  { %v493_v30 = vld [vmem:[#allocation2 + $0x10] sm:$0xf]  ;;  %v434_v31 = vld [vmem:[#allocation2 + $0x3c] sm:$0x1]  ;;  %127 = vst [vmem:[#allocation2 + $0x5c] sm:$0x1] %v126_v29  ;;  %1024 = vrot.lane.b32.xlu0 %v1006_v26, %s8503_s28  ;;  %v8695_v48 = vpack.c.bf16 %v177_v25, %v177_v25 }
  0x2b   :  { %v60_v34 = vld [vmem:[#allocation2 + $0x50] sm:$0x1]  ;;  %v491_v36 = vld [vmem:[#allocation2] sm:$0xf]  ;;  %v507_v39 = vld [vmem:[#allocation2 + $0x4] sm:$0x1]  ;;  %v435_v40 = vsel %vm8528_vm3, %v287_v23, %v434_v31 }
  0x2c   :  { %v61_v38 = vsel %vm8528_vm3, 0, %v60_v34  ;;  %v6910_v41 = vcombine.low %v491_v36, %v507_v39  ;;  %v8007_v42 = vld [vmem:[#allocation2 + $0x38] ss:$0 sps:$4 sm:$0xff]   ;;  %436 = vst [vmem:[#allocation2 + $0x3c] sm:$0x1] %v435_v40  ;;  %v297_v57 = vshrl.u32 %v8688_v33, 16 }
  0x2d   :  { %v494_v43 = vld [vmem:[#allocation2 + $0x18] sm:$0xf]  ;;  %62 = vst [vmem:[#allocation2 + $0x50] sm:$0x1] %v61_v38  ;;  %v508_v44 = vld [vmem:[#allocation2 + $0xc] sm:$0x1] }
  0x2e   :  { %v509_v45 = vld [vmem:[#allocation2 + $0x14] sm:$0x1]  ;;  %v495_v47 = vld [vmem:[#allocation2 + $0x20] sm:$0xf]  ;;  %v604_v49 = vshrl.u32 %v6910_v41, 16  ;;  %v606_v52 = vshll.u32 %v6910_v41, 16  ;;  %v6911_v53 = vcombine.low %v492_v28, %v508_v44  ;;  %1028 = vrot.lane.b32.xlu0 %v1008_v35, %s8503_s28 }
  0x2f   :  { %v510_v54 = vld [vmem:[#allocation2 + $0x1c] sm:$0x1]  ;;  %v496_v55 = vld [vmem:[#allocation2 + $0x28] sm:$0xf]  ;;  %v497_v56 = vld [vmem:[#allocation2 + $0x30] sm:$0xf]  ;;  %v6912_v59 = vcombine.low %v493_v30, %v509_v45 }
  0x30   :  { %v1010_v58 = vrot.slane %v8007_v42, 7  ;;  %v6913_v50 = vcombine.low %v494_v43, %v510_v54  ;;  %v511_v60 = vld [vmem:[#allocation2 + $0x24] sm:$0x1]  ;;  %v512_v61 = vld [vmem:[#allocation2 + $0x2c] sm:$0x1]  ;;  %v300_v62 = vshll.u32 %v8688_v33, 16 }
  0x31   :  { %v608_v0 = vrot.slane %v606_v52, 1  ;;  %v611_v2 = vshrl.u32 %v6911_v53, 16  ;;  %v613_v3 = vshll.u32 %v6911_v53, 16  ;;  %v6914_v4 = vcombine.low %v495_v47, %v511_v60  ;;  %v513_v5 = vld [vmem:[#allocation2 + $0x34] sm:$0x1]  ;;  %v163_v34 = vld [vmem:[%s10301_s0 + $0x58] sm:$0xff] }
  0x32   :  { %v618_v6 = vshrl.u32 %v6912_v59, 16  ;;  %v620_v7 = vshll.u32 %v6912_v59, 16  ;;  %v625_v8 = vshrl.u32 %v6913_v50, 16  ;;  %v627_v9 = vshll.u32 %v6913_v50, 16  ;;  %v498_v46 = vld [vmem:[#allocation2 + $0x38] sm:$0xf]  ;;  %1032 = vrot.lane.b32.xlu0 %v1010_v58, %s8503_s28 }
  0x33   :  { %v609_v10 = vor.u32 %v608_v0, %v604_v49  ;;  %v615_v11 = vrot.slane %v613_v3, 1  ;;  %v632_v12 = vshrl.u32 %v6914_v4, 16  ;;  %v634_v13 = vshll.u32 %v6914_v4, 16  ;;  %v514_v18 = vld [vmem:[#allocation2 + $0x3c] sm:$0x1]  ;;  %v162_v27 = vld [vmem:[%s10301_s0 + $0x50] sm:$0xff] }
  0x34   :  { %v622_v14 = vrot.slane %v620_v7, 1  ;;  %v629_v15 = vrot.slane %v627_v9, 1  ;;  %v6915_v16 = vcombine.low %v496_v55, %v512_v61  ;;  %v6916_v17 = vcombine.low %v497_v56, %v513_v5  ;;  %v122_v25 = vld [vmem:[#allocation2 + $0x54] sm:$0x1]  ;;  %v69_v26 = vld [vmem:[#allocation2 + $0x68] sm:$0x1] }
  0x35   :  { %715 = vrot.lane.b32.xlu1 %v609_v10, %s8503_s28  ;;  %v616_v20 = vor.u32 %v615_v11, %v611_v2  ;;  %v636_v21 = vrot.slane %v634_v13, 1  ;;  %v8702_v22 = vcombine.low %v498_v46, %v514_v18  ;;  %v299_v23 = vrot.slane %v297_v57, 7  ;;  %v443_v33 = vld [vmem:[#allocation2 + $0x58] sm:$0xf]  ;;  %v446_v38 = vld [vmem:[#allocation2 + $0x5c] sm:$0x1] }
  0x36   :  { %v623_v32 = vor.u32 %v622_v14, %v618_v6  ;;  %v630_v19 = vor.u32 %v629_v15, %v625_v8  ;;  %v641_v24 = vshll.u32 %v6915_v16, 16  ;;  %v639_v29 = vshrl.u32 %v6915_v16, 16  ;;  %v8055_v41 = vld [vmem:[%s10302_s1 + $0x78] sm:$0xff]   ;;  %v72_v47 = vld [vmem:[#allocation2 + $0x70] sm:$0x1]  ;;  %v164_v2 = vld [vmem:[%s10301_s0 + $0x60] sm:$0xff] }
  0x37   :  { %v637_v28 = vor.u32 %v636_v21, %v632_v12  ;;  %v646_v30 = vshrl.u32 %v6916_v17, 16  ;;  %v648_v31 = vshll.u32 %v6916_v17, 16  ;;  %v655_v36 = vshll.u32 %v8702_v22, 16  ;;  %v128_v54 = vld [vmem:[#allocation2 + $0x64] sm:$0x1]  ;;  %7606 = vmatprep.subr.bf16.mxu0 %v8055_v41  ;;  %v8056_v8 = vld [vmem:[%s10302_s1 + $0x38] sm:$0xff]  }
  0x38   :  { %719 = vrot.lane.b32.xlu0 %v623_v32, %s8503_s28  ;;  %v643_v35 = vrot.slane %v641_v24, 1  ;;  %v302_v39 = vor.u32 %v300_v62, %v299_v23  ;;  %v305_v40 = vshrl.u32 %v8695_v48, 16  ;;  %v308_v43 = vshll.u32 %v8695_v48, 16  ;;  %v131_v55 = vld [vmem:[#allocation2 + $0x6c] sm:$0x1]  ;;  %7607 = vmatpush3.bf16.msra.mxu0 %v8056_v8 }
  0x39   :  { %717 = vrot.lane.b32.xlu1 %v616_v20, %s8503_s28  ;;  %v650_v42 = vrot.slane %v648_v31, 1  ;;  %v123_v44 = vsel %vm8597_vm6, 0, %v122_v25  ;;  %v303_v45 = vrot.slane %v299_v23, 4  ;;  %v653_v49 = vshrl.u32 %v8702_v22, 16  ;;  %v449_v57 = vld [vmem:[#allocation2 + $0x60] sm:$0xf] }
  0x3a   :  { %v444_v52 = vsel %vm8566_vm5, %v302_v39, %v443_v33  ;;  %v8723_v53 = vrot.slane %v305_v40, 7  ;;  %124 = vst [vmem:[#allocation2 + $0x54] sm:$0x1] %v123_v44  ;;  %v644_v56 = vor.u32 %v643_v35, %v639_v29  ;;  %v70_v58 = vsel %vm8528_vm3, 0, %v69_v26  ;;  %v75_v0 = vld [vmem:[#allocation2 + $0x78] sm:$0x1] }
  0x3b   :  { %445 = vst [vmem:[#allocation2 + $0x58] sm:$0xf] %v444_v52  ;;  %v447_v48 = vsel %vm8528_vm3, %v303_v45, %v446_v38  ;;  %v178_v59 = vmax.f32 %v162_v27, 0.0  ;;  %v651_v50 = vor.u32 %v650_v42, %v646_v30  ;;  %71 = vst [vmem:[#allocation2 + $0x68] sm:$0x1] %v70_v58  ;;  %v73_v61 = vsel %vm8528_vm3, 0, %v72_v47 }
  0x3c   :  { %723 = vrot.lane.b32.xlu0 %v637_v28, %s8503_s28  ;;  %v310_v60 = vor.u32 %v308_v43, %v8723_v53  ;;  %448 = vst [vmem:[#allocation2 + $0x5c] sm:$0x1] %v447_v48  ;;  %v179_v62 = vmax.f32 %v163_v34, 0.0  ;;  %v657_v3 = vrot.slane %v655_v36, 1  ;;  %v499_v4 = vld [vmem:[#allocation2 + $0x50] sm:$0xf] }
  0x3d   :  { %721 = vrot.lane.b32.xlu1 %v630_v19, %s8503_s28  ;;  %v7584_v5 = vpack.c.bf16 %v178_v59, %v178_v59  ;;  %74 = vst [vmem:[#allocation2 + $0x70] sm:$0x1] %v73_v61  ;;  %v129_v6 = vsel %vm8597_vm6, 0, %v128_v54  ;;  %v132_v7 = vsel %vm8597_vm6, 0, %v131_v55  ;;  %v1280_v10 = vld [vmem:[#allocation2 + $0xc] sm:$0x1] }
  0x3e   :  { %v450_v9 = vsel %vm8566_vm5, %v310_v60, %v449_v57  ;;  %v7585_v46 = vpack.c.bf16 %v179_v62, %v179_v62  ;;  %130 = vst [vmem:[#allocation2 + $0x64] sm:$0x1] %v129_v6  ;;  %133 = vst [vmem:[#allocation2 + $0x6c] sm:$0x1] %v132_v7  ;;  %v1311_v11 = vld [vmem:[#allocation2 + $0x8] sm:$0xe]  ;;  %v658_v20 = vor.u32 %v657_v3, %v653_v49 }
  0x3f   :  { %v1282_v12 = vld [vmem:[#allocation2 + $0x14] sm:$0x1]  ;;  %451 = vst [vmem:[#allocation2 + $0x60] sm:$0xf] %v450_v9  ;;  %v313_v13 = vshrl.u32 %v7584_v5, 16  ;;  %v316_v14 = vshll.u32 %v7584_v5, 16  ;;  %v8754_v27 = vcombine.low %v1311_v11, %v1280_v10 }
  0x40   :  { %v1312_v15 = vld [vmem:[#allocation2 + $0x10] sm:$0xe]  ;;  %v76_v16 = vsel %vm8528_vm3, 0, %v75_v0  ;;  %v180_v17 = vmax.f32 %v164_v2, 0.0  ;;  %727 = vrot.lane.b32.xlu0 %v651_v50, %s8503_s28  ;;  %v321_v18 = vshrl.u32 %v7585_v46, 16  ;;  %v324_v23 = vshll.u32 %v7585_v46, 16 }
  0x41   :  { %77 = vst [vmem:[#allocation2 + $0x78] sm:$0x1] %v76_v16  ;;  %725 = vrot.lane.b32.xlu1 %v644_v56, %s8503_s28  ;;  %v515_v21 = vld [vmem:[#allocation2 + $0x54] sm:$0x1]  ;;  %v315_v22 = vrot.slane %v313_v13, 7  ;;  %v311_v32 = vrot.slane %v8723_v53, 4  ;;  %v8756_v28 = vcombine.low %v1312_v15, %v1282_v12 }
  0x42   :  { %v8061_v19 = vld [vmem:[%s10302_s1 + $0x70] sm:$0xff]   ;;  %v8015_v24 = vld [vmem:[#allocation2 + $0x58] ss:$0 sps:$4 sm:$0xff]   ;;  %v6918_v25 = vcombine.low %v499_v4, %v515_v21  ;;  %v455_v31 = vld [vmem:[#allocation2 + $0x68] sm:$0xf]  ;;  %v8758_v33 = vrot.slane %v321_v18, 7  ;;  %v8760_v35 = vpack.c.bf16 %v180_v17, %v180_v17 }
  0x43   :  { %v500_v26 = vld [vmem:[#allocation2 + $0x58] sm:$0xf]  ;;  %v516_v29 = vld [vmem:[#allocation2 + $0x5c] sm:$0x1]  ;;  %v318_v30 = vor.u32 %v316_v14, %v315_v22  ;;  %v319_v34 = vrot.slane %v315_v22, 4  ;;  %7608 = vmatprep.subr.bf16.mxu0 %v8061_v19  ;;  %v1012_v36 = vrot.slane %v8015_v24, 7 }
  0x44   :  { %v660_v39 = vshrl.u32 %v6918_v25, 16  ;;  %v662_v40 = vshll.u32 %v6918_v25, 16  ;;  %v6919_v38 = vcombine.low %v500_v26, %v516_v29  ;;  %v461_v41 = vld [vmem:[#allocation2 + $0x70] sm:$0xf]  ;;  %v78_v42 = vld [vmem:[#allocation2 + $0x80] sm:$0x1]  ;;  %v326_v47 = vor.u32 %v324_v23, %v8758_v33 }
  0x45   :  { %v165_v43 = vld [vmem:[%s10301_s0 + $0x68] sm:$0xff]  ;;  %v8062_v44 = vld [vmem:[%s10302_s1 + $0x30] sm:$0xff]   ;;  %729 = vrot.lane.b32.xlu1 %v658_v20, %s8503_s28  ;;  %v456_v45 = vsel %vm8566_vm5, %v318_v30, %v455_v31  ;;  %v452_v49 = vld [vmem:[#allocation2 + $0x64] sm:$0x1]  ;;  %1036 = vrot.lane.b32.xlu0 %v1012_v36, %s8503_s28  ;;  %v1458_v48 = vshll.u32 %v8754_v27, 16  ;;  %v1465_v60 = vshll.u32 %v8756_v28, 16 }
  0x46   :  { %v458_v52 = vld [vmem:[#allocation2 + $0x6c] sm:$0x1]  ;;  %v134_v53 = vld [vmem:[#allocation2 + $0x74] sm:$0x1]  ;;  %v8016_v54 = vld [vmem:[#allocation2 + $0x60] ss:$0 sps:$4 sm:$0xff]   ;;  %v453_v56 = vsel %vm8528_vm3, %v311_v32, %v452_v49  ;;  %7609 = vmatpush3.bf16.msra.mxu0 %v8062_v44  ;;  %v462_v50 = vsel %vm8566_vm5, %v326_v47, %v461_v41 }
  0x47   :  { %v664_v55 = vrot.slane %v662_v40, 1  ;;  %457 = vst [vmem:[#allocation2 + $0x68] sm:$0xf] %v456_v45  ;;  %v459_v57 = vsel %vm8528_vm3, %v319_v34, %v458_v52  ;;  %v667_v58 = vshrl.u32 %v6919_v38, 16  ;;  %v669_v59 = vshll.u32 %v6919_v38, 16  ;;  %v8067_v62 = vld [vmem:[%s10302_s1 + $0x68] sm:$0xff]  }
  0x48   :  { %454 = vst [vmem:[#allocation2 + $0x64] sm:$0x1] %v453_v56  ;;  %460 = vst [vmem:[#allocation2 + $0x6c] sm:$0x1] %v459_v57  ;;  %v137_v61 = vld [vmem:[#allocation2 + $0x7c] sm:$0x1]  ;;  %7610 = vmatprep.subr.bf16.mxu0 %v8067_v62 }
  0x49   :  { %v1013_v0 = vrot.slane %v8016_v54, 7  ;;  %v665_v2 = vor.u32 %v664_v55, %v660_v39  ;;  %463 = vst [vmem:[#allocation2 + $0x70] sm:$0xf] %v462_v50  ;;  %v329_v3 = vshrl.u32 %v8760_v35, 16  ;;  %v332_v4 = vshll.u32 %v8760_v35, 16  ;;  %v8068_v7 = vld [vmem:[%s10302_s1 + $0x28] sm:$0xff]  }
  0x4a   :  { %v1284_v5 = vld [vmem:[#allocation2 + $0x1c] sm:$0x1]  ;;  %v1313_v6 = vld [vmem:[#allocation2 + $0x18] sm:$0xe]  ;;  %v671_v8 = vrot.slane %v669_v59, 1  ;;  %v79_v9 = vsel %vm8528_vm3, 0, %v78_v42  ;;  %7611 = vmatpush3.bf16.msra.mxu0 %v8068_v7 }
  0x4b   :  { %v181_v46 = vmax.f32 %v165_v43, 0.0  ;;  %v135_v10 = vsel %vm8597_vm6, 0, %v134_v53  ;;  %v1286_v11 = vld [vmem:[#allocation2 + $0x24] sm:$0x1]  ;;  %v81_v12 = vld [vmem:[#allocation2 + $0x88] sm:$0x1]  ;;  %1038 = vrot.lane.b32.xlu1 %v1013_v0, %s8503_s28  ;;  %731 = vrot.lane.b32.xlu0 %v665_v2, %s8503_s28  ;;  %v8816_v36 = vcombine.low %v1313_v6, %v1284_v5 }
  0x4c   :  { %v295_v13 = vrot.slane %v8581_v51, 4  ;;  %v1456_v14 = vshrl.u32 %v8754_v27, 16  ;;  %v8797_v15 = vrot.slane %v329_v3, 7  ;;  %80 = vst [vmem:[#allocation2 + $0x80] sm:$0x1] %v79_v9  ;;  %v138_v16 = vsel %vm8597_vm6, 0, %v137_v61 }
  0x4d   :  { %136 = vst [vmem:[#allocation2 + $0x74] sm:$0x1] %v135_v10  ;;  %v1314_v17 = vld [vmem:[#allocation2 + $0x20] sm:$0xe]  ;;  %v672_v18 = vor.u32 %v671_v8, %v667_v58  ;;  %v8801_v20 = vrot.slane %v1458_v48, 1  ;;  %v1463_v21 = vshrl.u32 %v8756_v28, 16  ;;  %v7587_v23 = vpack.c.bf16 %v181_v46, %v181_v46 }
  0x4e   :  { %v467_v22 = vld [vmem:[#allocation2 + $0x78] sm:$0xf]  ;;  %139 = vst [vmem:[#allocation2 + $0x7c] sm:$0x1] %v138_v16  ;;  %v166_v32 = vld [vmem:[%s10301_s0 + $0x70] sm:$0xff]  ;;  %v8807_v25 = vrot.slane %v1465_v60, 1  ;;  %v334_v26 = vor.u32 %v332_v4, %v8797_v15  ;;  %v8821_v44 = vcombine.low %v1314_v17, %v1286_v11 }
  0x4f   :  { %v84_v19 = vld [vmem:[#allocation2 + $0x90] sm:$0x1]  ;;  %v501_v24 = vld [vmem:[#allocation2 + $0x60] sm:$0xf]  ;;  %v327_v29 = vrot.slane %v8758_v33, 4  ;;  %v82_v30 = vsel %vm8528_vm3, 0, %v81_v12  ;;  %733 = vrot.lane.b32.xlu1 %v672_v18, %s8503_s28 }
  0x50   :  { %v8073_v31 = vld [vmem:[%s10302_s1 + $0x60] sm:$0xff]   ;;  %v8019_v34 = vld [vmem:[#allocation2 + $0x68] ss:$0 sps:$4 sm:$0xff]   ;;  %83 = vst [vmem:[#allocation2 + $0x88] sm:$0x1] %v82_v30  ;;  %v468_v33 = vsel %vm8566_vm5, %v334_v26, %v467_v22  ;;  %v337_v42 = vshrl.u32 %v7587_v23, 16 }
  0x51   :  { %v502_v35 = vld [vmem:[#allocation2 + $0x68] sm:$0xf]  ;;  %v1987_v39 = vld [vmem:[#allocation2 + $0x10] sm:$0xf]  ;;  %v2003_v40 = vld [vmem:[#allocation2 + $0x14] sm:$0x1]  ;;  %7612 = vmatprep.subr.bf16.mxu0 %v8073_v31 }
  0x52   :  { %v517_v38 = vld [vmem:[#allocation2 + $0x64] sm:$0x1]  ;;  %v518_v41 = vld [vmem:[#allocation2 + $0x6c] sm:$0x1]  ;;  %v340_v43 = vshll.u32 %v7587_v23, 16  ;;  %v1014_v45 = vrot.slane %v8019_v34, 7  ;;  %v8834_v4 = vcombine.low %v1987_v39, %v2003_v40  ;;  %v1461_v40 = vor.u32 %v8801_v20, %v1456_v14 }
  0x53   :  { %v8020_v47 = vld [vmem:[#allocation2 + $0x70] ss:$0 sps:$4 sm:$0xff]   ;;  %v6920_v49 = vcombine.low %v501_v24, %v517_v38  ;;  %v6921_v52 = vcombine.low %v502_v35, %v518_v41  ;;  %469 = vst [vmem:[#allocation2 + $0x78] sm:$0xf] %v468_v33  ;;  %v335_v53 = vrot.slane %v8797_v15, 4  ;;  %v8824_v54 = vrot.slane %v337_v42, 7 }
  0x54   :  { %v1470_v55 = vshrl.u32 %v8816_v36, 16  ;;  %v182_v56 = vmax.f32 %v166_v32, 0.0  ;;  %v85_v57 = vsel %vm8528_vm3, 0, %v84_v19  ;;  %v167_v48 = vld [vmem:[%s10301_s0 + $0x78] sm:$0xff]  ;;  %1040 = vrot.lane.b32.xlu0 %v1014_v45, %s8503_s28  ;;  %v1015_v58 = vrot.slane %v8020_v47, 7  ;;  %v8074_v5 = vld [vmem:[%s10302_s1 + $0x20] sm:$0xff]  }
  0x55   :  { %v674_v59 = vshrl.u32 %v6920_v49, 16  ;;  %v676_v50 = vshll.u32 %v6920_v49, 16  ;;  %v681_v60 = vshrl.u32 %v6921_v52, 16  ;;  %v473_v61 = vld [vmem:[#allocation2 + $0x80] sm:$0xf]  ;;  %v683_v62 = vshll.u32 %v6921_v52, 16  ;;  %7613 = vmatpush3.bf16.msra.mxu0 %v8074_v5 }
  0x56   :  { %86 = vst [vmem:[#allocation2 + $0x90] sm:$0x1] %v85_v57  ;;  %v342_v0 = vor.u32 %v340_v43, %v8824_v54  ;;  %v464_v2 = vld [vmem:[#allocation2 + $0x74] sm:$0x1]  ;;  %v470_v3 = vld [vmem:[#allocation2 + $0x7c] sm:$0x1]  ;;  %1042 = vrot.lane.b32.xlu1 %v1015_v58, %s8503_s28  ;;  %v7588_v9 = vpack.c.bf16 %v182_v56, %v182_v56  ;;  %v1468_v38 = vor.u32 %v8807_v25, %v1463_v21 }
  0x57   :  { %v678_v6 = vrot.slane %v676_v50, 1  ;;  %v465_v7 = vsel %vm8528_vm3, %v327_v29, %v464_v2  ;;  %v471_v8 = vsel %vm8528_vm3, %v335_v53, %v470_v3  ;;  %v8076_v46 = vld [vmem:[%s10302_s1 + $0x58] sm:$0xff]   ;;  %v685_v10 = vrot.slane %v683_v62, 1  ;;  %v140_v18 = vld [vmem:[#allocation2 + $0x84] sm:$0x1]  ;;  %v8081_v29 = vld [vmem:[%s10302_s1 + $0x50] sm:$0xff]  }
  0x58   :  { %v474_v11 = vsel %vm8566_vm5, %v342_v0, %v473_v61  ;;  %466 = vst [vmem:[#allocation2 + $0x74] sm:$0x1] %v465_v7  ;;  %472 = vst [vmem:[#allocation2 + $0x7c] sm:$0x1] %v471_v8  ;;  %v1472_v12 = vshll.u32 %v8816_v36, 16  ;;  %v183_v15 = vmax.f32 %v167_v48, 0.0  ;;  %7614 = vmatprep.subr.bf16.mxu0 %v8076_v46 }
  0x59   :  { %v1988_v16 = vld [vmem:[#allocation2 + $0x18] sm:$0xf]  ;;  %v2004_v17 = vld [vmem:[#allocation2 + $0x1c] sm:$0x1]  ;;  %v679_v23 = vor.u32 %v678_v6, %v674_v59  ;;  %475 = vst [vmem:[#allocation2 + $0x80] sm:$0xf] %v474_v11  ;;  %v686_v30 = vor.u32 %v685_v10, %v681_v60 }
  0x5a   :  { %v8077_v22 = vld [vmem:[%s10302_s1 + $0x18] sm:$0xff]   ;;  %v1479_v32 = vshll.u32 %v8821_v44, 16  ;;  %v345_v19 = vshrl.u32 %v7588_v9, 16  ;;  %v348_v24 = vshll.u32 %v7588_v9, 16  ;;  %v143_v26 = vld [vmem:[#allocation2 + $0x8c] sm:$0x1]  ;;  %v7589_v34 = vpack.c.bf16 %v183_v15, %v183_v15 }
  0x5b   :  { %v8025_v31 = vld [vmem:[#allocation2 + $0x78] ss:$0 sps:$4 sm:$0xff]   ;;  %v1288_v35 = vld [vmem:[#allocation2 + $0x2c] sm:$0x1]  ;;  %v1315_v39 = vld [vmem:[#allocation2 + $0x28] sm:$0xe]  ;;  %735 = vrot.lane.b32.xlu0 %v679_v23, %s8503_s28  ;;  %737 = vrot.lane.b32.xlu1 %v686_v30, %s8503_s28  ;;  %v8876_v25 = vcombine.low %v1988_v16, %v2004_v17 }
  0x5c   :  { %v503_v41 = vld [vmem:[#allocation2 + $0x70] sm:$0xf]  ;;  %v1477_v33 = vshrl.u32 %v8821_v44, 16  ;;  %v8865_v42 = vrot.slane %v345_v19, 7  ;;  %v1290_v43 = vld [vmem:[#allocation2 + $0x34] sm:$0x1]  ;;  %7615 = vmatpush3.bf16.msra.mxu0 %v8077_v22  ;;  %v8886_v62 = vcombine.low %v1315_v39, %v1288_v35 }
  0x5d   :  { %v8868_v45 = vrot.slane %v1472_v12, 1  ;;  %v479_v47 = vld [vmem:[#allocation2 + $0x88] sm:$0xf]  ;;  %v353_v49 = vshrl.u32 %v7589_v34, 16  ;;  %v356_v52 = vshll.u32 %v7589_v34, 16  ;;  %v141_v27 = vsel %vm8597_vm6, 0, %v140_v18  ;;  %7616 = vmatprep.subr.bf16.mxu0 %v8081_v29 }
  0x5e   :  { %v504_v28 = vld [vmem:[#allocation2 + $0x78] sm:$0xf]  ;;  %v8872_v14 = vrot.slane %v1479_v32, 1  ;;  %v350_v20 = vor.u32 %v348_v24, %v8865_v42  ;;  %v2102_v21 = vshll.u32 %v8834_v4, 16  ;;  %142 = vst [vmem:[#allocation2 + $0x84] sm:$0x1] %v141_v27 }
  0x5f   :  { %v1316_v53 = vld [vmem:[#allocation2 + $0x30] sm:$0xe]  ;;  %v1016_v56 = vrot.slane %v8025_v31, 7  ;;  %v8878_v57 = vrot.slane %v353_v49, 7  ;;  %v2100_v48 = vshrl.u32 %v8834_v4, 16  ;;  %v144_v58 = vsel %vm8597_vm6, 0, %v143_v26  ;;  %1567 = vrot.lane.b32.xlu0 %v1461_v40, %s8503_s28  ;;  %1569 = vrot.lane.b32.xlu1 %v1468_v38, %s8503_s28 }
  0x60   :  { %v519_v59 = vld [vmem:[#allocation2 + $0x74] sm:$0x1]  ;;  %v520_v50 = vld [vmem:[#allocation2 + $0x7c] sm:$0x1]  ;;  %v480_v60 = vsel %vm8566_vm5, %v350_v20, %v479_v47  ;;  %v485_v61 = vld [vmem:[#allocation2 + $0x90] sm:$0xf]  ;;  %v8890_v6 = vcombine.low %v1316_v53, %v1290_v43  ;;  %v1482_v53 = vor.u32 %v8872_v14, %v1477_v33 }
  0x61   :  { %145 = vst [vmem:[#allocation2 + $0x8c] sm:$0x1] %v144_v58  ;;  %v8026_v0 = vld [vmem:[#allocation2 + $0x80] ss:$0 sps:$4 sm:$0xff]   ;;  %v6922_v2 = vcombine.low %v503_v41, %v519_v59  ;;  %v6923_v3 = vcombine.low %v504_v28, %v520_v50  ;;  %481 = vst [vmem:[#allocation2 + $0x88] sm:$0xf] %v480_v60  ;;  %v358_v5 = vor.u32 %v356_v52, %v8878_v57 }
  0x62   :  { %v1989_v7 = vld [vmem:[#allocation2 + $0x20] sm:$0xf]  ;;  %v8082_v8 = vld [vmem:[%s10302_s1 + $0x10] sm:$0xff]   ;;  %v8895_v9 = vrot.slane %v2102_v21, 1  ;;  %v343_v46 = vrot.slane %v8824_v54, 4  ;;  %v1017_v12 = vrot.slane %v8026_v0, 7  ;;  %v1475_v21 = vor.u32 %v8868_v45, %v1470_v55 }
  0x63   :  { %v2005_v10 = vld [vmem:[#allocation2 + $0x24] sm:$0x1]  ;;  %v1990_v11 = vld [vmem:[#allocation2 + $0x28] sm:$0xf]  ;;  %v688_v15 = vshrl.u32 %v6922_v2, 16  ;;  %v690_v16 = vshll.u32 %v6922_v2, 16  ;;  %7617 = vmatpush3.bf16.msra.mxu0 %v8082_v8  ;;  %1044 = vrot.lane.b32.xlu0 %v1016_v56, %s8503_s28  ;;  %v486_v32 = vsel %vm8566_vm5, %v358_v5, %v485_v61 }
  0x64   :  { %v2109_v17 = vshll.u32 %v8876_v25, 16  ;;  %v2006_v18 = vld [vmem:[#allocation2 + $0x2c] sm:$0x1]  ;;  %v695_v22 = vshrl.u32 %v6923_v3, 16  ;;  %v697_v23 = vshll.u32 %v6923_v3, 16  ;;  %v351_v19 = vrot.slane %v8865_v42, 4  ;;  %1046 = vrot.lane.b32.xlu1 %v1017_v12, %s8503_s28 }
  0x65   :  { %v116_v24 = vld [vmem:[#allocation2 + $0x44] sm:$0x1]  ;;  %v692_v54 = vrot.slane %v690_v16, 1  ;;  %487 = vst [vmem:[#allocation2 + $0x90] sm:$0xf] %v486_v32  ;;  %v2107_v26 = vshrl.u32 %v8876_v25, 16  ;;  %v8909_v39 = vcombine.low %v1989_v7, %v2005_v10  ;;  %v8911_v40 = vcombine.low %v1990_v11, %v2006_v18 }
  0x66   :  { %v476_v29 = vld [vmem:[#allocation2 + $0x84] sm:$0x1]  ;;  %v1486_v30 = vshll.u32 %v8886_v62, 16  ;;  %v1493_v31 = vshll.u32 %v8890_v6, 16  ;;  %v699_v34 = vrot.slane %v697_v23, 1  ;;  %v2111_v41 = vrot.slane %v2109_v17, 1 }
  0x67   :  { %v477_v35 = vsel %vm8528_vm3, %v343_v46, %v476_v29  ;;  %v693_v38 = vor.u32 %v692_v54, %v688_v15  ;;  %v1484_v43 = vshrl.u32 %v8886_v62, 16  ;;  %v117_v47 = vsel %vm8597_vm6, 0, %v116_v24  ;;  %v1292_v20 = vld [vmem:[#allocation2 + $0x3c] sm:$0x1]  ;;  %v1317_v59 = vld [vmem:[#allocation2 + $0x38] sm:$0xe] }
  0x68   :  { %478 = vst [vmem:[#allocation2 + $0x84] sm:$0x1] %v477_v35  ;;  %v482_v42 = vld [vmem:[#allocation2 + $0x8c] sm:$0x1]  ;;  %v700_v49 = vor.u32 %v699_v34, %v695_v22  ;;  %v359_v52 = vrot.slane %v8878_v57, 4  ;;  %v1491_v28 = vshrl.u32 %v8890_v6, 16  ;;  %v8938_v5 = vcombine.low %v1317_v59, %v1292_v20 }
  0x69   :  { %v483_v27 = vsel %vm8528_vm3, %v351_v19, %v482_v42  ;;  %118 = vst [vmem:[#allocation2 + $0x44] sm:$0x1] %v117_v47  ;;  %739 = vrot.lane.b32.xlu0 %v693_v38, %s8503_s28  ;;  %v8031_v56 = vld [vmem:[#allocation2 + $0x88] ss:$0 sps:$4 sm:$0xff]   ;;  %v8927_v58 = vrot.slane %v1486_v30, 1  ;;  %v8933_v61 = vrot.slane %v1493_v31, 1  ;;  %v2105_v24 = vor.u32 %v8895_v9, %v2100_v48 }
  0x6a   :  { %484 = vst [vmem:[#allocation2 + $0x8c] sm:$0x1] %v483_v27  ;;  %v8083_v50 = vld [vmem:[%s10302_s1 + $0x48] sm:$0xff]   ;;  %741 = vrot.lane.b32.xlu1 %v700_v49, %s8503_s28  ;;  %v505_v60 = vld [vmem:[#allocation2 + $0x80] sm:$0xf]  ;;  %v2114_v36 = vshrl.u32 %v8909_v39, 16  ;;  %v2112_v4 = vor.u32 %v2111_v41, %v2107_v26 }
  0x6b   :  { %v2116_v44 = vshll.u32 %v8909_v39, 16  ;;  %v2123_v55 = vshll.u32 %v8911_v40, 16  ;;  %v1991_v33 = vld [vmem:[#allocation2 + $0x30] sm:$0xf]  ;;  %v2007_v45 = vld [vmem:[#allocation2 + $0x34] sm:$0x1]  ;;  %7618 = vmatprep.subr.bf16.mxu0 %v8083_v50 }
  0x6c   :  { %v1992_v14 = vld [vmem:[#allocation2 + $0x38] sm:$0xf]  ;;  %v2008_v0 = vld [vmem:[#allocation2 + $0x3c] sm:$0x1]  ;;  %v8032_v2 = vld [vmem:[#allocation2 + $0x90] ss:$0 sps:$4 sm:$0xff]   ;;  %v8945_v15 = vcombine.low %v1991_v33, %v2007_v45 }
  0x6d   :  { %v506_v3 = vld [vmem:[#allocation2 + $0x88] sm:$0xf]  ;;  %1571 = vrot.lane.b32.xlu0 %v1475_v21, %s8503_s28  ;;  %v1018_v7 = vrot.slane %v8031_v56, 7  ;;  %v1296_v8 = vld [vmem:[#allocation2 + $0x5c] sm:$0x1]  ;;  %v1019_v11 = vrot.slane %v8032_v2, 7  ;;  %v8947_v16 = vcombine.low %v1992_v14, %v2008_v0 }
  0x6e   :  { %v1319_v46 = vld [vmem:[#allocation2 + $0x58] sm:$0xe]  ;;  %v8084_v10 = vld [vmem:[%s10302_s1 + $0x8] sm:$0xff]   ;;  %1573 = vrot.lane.b32.xlu1 %v1482_v53, %s8503_s28  ;;  %v1298_v17 = vld [vmem:[#allocation2 + $0x64] sm:$0x1]  ;;  %v1500_v29 = vshll.u32 %v8938_v5, 16 }
  0x6f   :  { %v521_v12 = vld [vmem:[#allocation2 + $0x84] sm:$0x1]  ;;  %v1320_v32 = vld [vmem:[#allocation2 + $0x60] sm:$0xe]  ;;  %v57_v19 = vld [vmem:[#allocation2 + $0x48] sm:$0x1]  ;;  %7619 = vmatpush3.bf16.msra.mxu0 %v8084_v10  ;;  %v8968_v47 = vcombine.low %v1319_v46, %v1296_v8 }
  0x70   :  { %v8085_v18 = vld [vmem:[%s10302_s1 + $0x40] sm:$0xff]   ;;  %v6924_v22 = vcombine.low %v505_v60, %v521_v12  ;;  %v58_v31 = vsel %vm8528_vm3, 0, %v57_v19  ;;  %v119_v34 = vld [vmem:[#allocation2 + $0x4c] sm:$0x1]  ;;  %v1321_v51 = vld [vmem:[#allocation2 + $0x68] sm:$0xe]  ;;  %v8972_v20 = vcombine.low %v1320_v32, %v1298_v17  ;;  %v1489_v19 = vor.u32 %v8927_v58, %v1484_v43 }
  0x71   :  { %v440_v23 = vld [vmem:[#allocation2 + $0x44] sm:$0x1]  ;;  %v522_v54 = vld [vmem:[#allocation2 + $0x8c] sm:$0x1]  ;;  %7620 = vmatprep.subr.bf16.mxu0 %v8085_v18  ;;  %1048 = vrot.lane.b32.xlu0 %v1018_v7, %s8503_s28  ;;  %59 = vst [vmem:[#allocation2 + $0x48] sm:$0x1] %v58_v31 }
  0x72   :  { %v441_v30 = vsel %vm8528_vm3, %v295_v13, %v440_v23  ;;  %v702_v35 = vshrl.u32 %v6924_v22, 16  ;;  %v704_v48 = vshll.u32 %v6924_v22, 16  ;;  %v6925_v9 = vcombine.low %v506_v3, %v522_v54  ;;  %v1300_v38 = vld [vmem:[#allocation2 + $0x6c] sm:$0x1]  ;;  %1050 = vrot.lane.b32.xlu1 %v1019_v11, %s8503_s28  ;;  %v1302_v25 = vld [vmem:[#allocation2 + $0x74] sm:$0x1] }
  0x73   :  { %442 = vst [vmem:[#allocation2 + $0x44] sm:$0x1] %v441_v30  ;;  %v2130_v13 = vshll.u32 %v8945_v15, 16  ;;  %v2137_v42 = vshll.u32 %v8947_v16, 16  ;;  %v120_v49 = vsel %vm8597_vm6, 0, %v119_v34  ;;  %v8086_v53 = vld [vmem:[%s10302_s1] sm:$0xff]   ;;  %v8978_v60 = vcombine.low %v1321_v51, %v1300_v38 }
  0x74   :  { %v706_v26 = vrot.slane %v704_v48, 1  ;;  %v709_v41 = vshrl.u32 %v6925_v9, 16  ;;  %v711_v27 = vshll.u32 %v6925_v9, 16  ;;  %121 = vst [vmem:[#allocation2 + $0x4c] sm:$0x1] %v120_v49  ;;  %v2118_v56 = vrot.slane %v2116_v44, 1  ;;  %7621 = vmatpush3.bf16.msra.mxu0 %v8086_v53 }
  0x75   :  { %v1322_v21 = vld [vmem:[#allocation2 + $0x70] sm:$0xe]  ;;  %v2121_v59 = vshrl.u32 %v8911_v40, 16  ;;  %v2125_v50 = vrot.slane %v2123_v55, 1  ;;  %2211 = vrot.lane.b32.xlu0 %v2105_v24, %s8503_s28  ;;  %v1498_v14 = vshrl.u32 %v8938_v5, 16  ;;  %v2128_v0 = vshrl.u32 %v8945_v15, 16 }
  0x76   :  { %v707_v33 = vor.u32 %v706_v26, %v702_v35  ;;  %v713_v45 = vrot.slane %v711_v27, 1  ;;  %v8986_v2 = vld [vmem:[%s10302_s1 + $0x118] sm:$0xff]   ;;  %2213 = vrot.lane.b32.xlu1 %v2112_v4, %s8503_s28  ;;  %v1502_v40 = vrot.slane %v1500_v29, 1  ;;  %v1318_v44 = vld [vmem:[#allocation2 + $0x40] sm:$0xe]  ;;  %v2135_v55 = vshrl.u32 %v8947_v16, 16 }
  0x77   :  { %v1514_v3 = vshll.u32 %v8968_v47, 16  ;;  %v8991_v7 = vcombine.low %v1322_v21, %v1302_v25  ;;  %v8993_v46 = vrot.slane %v2130_v13, 1  ;;  %v8995_v10 = vrot.slane %v2137_v42, 1  ;;  %v1995_v12 = vld [vmem:[#allocation2 + $0x60] sm:$0xf]  ;;  %7906 = vmatprep.subr.bf16.mxu0 %v8986_v2  ;;  %v8106_v17 = vld [vmem:[%s10302_s1 + $0xf8] sm:$0xff]  }
  0x78   :  { %v714_v8 = vor.u32 %v713_v45, %v709_v41  ;;  %v1521_v11 = vshll.u32 %v8972_v20, 16  ;;  %v1512_v22 = vshrl.u32 %v8968_v47, 16  ;;  %v1528_v23 = vshll.u32 %v8978_v60, 16  ;;  %v2011_v32 = vld [vmem:[#allocation2 + $0x64] sm:$0x1]  ;;  %7670 = vmatprep.subr.bf16.mxu1 %v8106_v17  ;;  %v8107_v29 = vld [vmem:[%s10302_s1 + $0xb8] sm:$0xff]  }
  0x79   :  { %743 = vrot.lane.b32.xlu0 %v707_v33, %s8503_s28  ;;  %v1519_v54 = vshrl.u32 %v8972_v20, 16  ;;  %v1496_v30 = vor.u32 %v8933_v61, %v1491_v28  ;;  %v9016_v31 = vrot.slane %v1514_v3, 1  ;;  %v1535_v62 = vshll.u32 %v8991_v7, 16  ;;  %v1996_v34 = vld [vmem:[#allocation2 + $0x68] sm:$0xf]  ;;  %7671 = vmatpush3.bf16.msra.mxu1 %v8107_v29  ;;  %v8111_v61 = vld [vmem:[%s10302_s1 + $0xf0] sm:$0xff]  }
  0x7a   :  { %v1294_v18 = vld [vmem:[#allocation2 + $0x44] sm:$0x1]  ;;  %745 = vrot.lane.b32.xlu1 %v714_v8, %s8503_s28  ;;  %v2012_v43 = vld [vmem:[#allocation2 + $0x6c] sm:$0x1]  ;;  %v9019_v4 = vrot.slane %v1521_v11, 1  ;;  %v1526_v48 = vshrl.u32 %v8978_v60, 16  ;;  %v9025_v6 = vcombine.low %v1995_v12, %v2011_v32  ;;  %v2119_v51 = vor.u32 %v2118_v56, %v2114_v36  ;;  %7672 = vmatprep.subr.bf16.mxu1 %v8111_v61 }
  0x7b   :  { %v7029_v24 = vcombine.low %v1318_v44, %v1294_v18  ;;  %v1993_v35 = vld [vmem:[#allocation2 + $0x40] sm:$0xf]  ;;  %v1533_v9 = vshrl.u32 %v8991_v7, 16  ;;  %v9023_v38 = vrot.slane %v1528_v23, 1  ;;  %v1304_v28 = vld [vmem:[#allocation2 + $0x7c] sm:$0x1]  ;;  %v2126_v13 = vor.u32 %v2125_v50, %v2121_v59 }
  0x7c   :  { %v2009_v42 = vld [vmem:[#allocation2 + $0x44] sm:$0x1]  ;;  %v1994_v49 = vld [vmem:[#allocation2 + $0x48] sm:$0xf]  ;;  %v9033_v25 = vcombine.low %v1996_v34, %v2012_v43  ;;  %v1323_v26 = vld [vmem:[#allocation2 + $0x78] sm:$0xe]  ;;  %v1503_v8 = vor.u32 %v1502_v40, %v1498_v14  ;;  %v2133_v43 = vor.u32 %v8993_v46, %v2128_v0  ;;  %v2140_v61 = vor.u32 %v8995_v10, %v2135_v55 }
  0x7d   :  { %v1507_v58 = vshll.u32 %v7029_v24, 16  ;;  %1575 = vrot.lane.b32.xlu0 %v1489_v19, %s8503_s28  ;;  %v1505_v41 = vshrl.u32 %v7029_v24, 16  ;;  %v2010_v21 = vld [vmem:[#allocation2 + $0x4c] sm:$0x1]  ;;  %v9036_v53 = vrot.slane %v1535_v62, 1  ;;  %v2156_v33 = vshrl.u32 %v9025_v6, 16 }
  0x7e   :  { %1577 = vrot.lane.b32.xlu1 %v1496_v30, %s8503_s28  ;;  %v1306_v45 = vld [vmem:[#allocation2 + $0x84] sm:$0x1]  ;;  %v1324_v44 = vld [vmem:[#allocation2 + $0x80] sm:$0xe]  ;;  %v1997_v39 = vld [vmem:[#allocation2 + $0x70] sm:$0xf]  ;;  %v7076_v56 = vcombine.low %v1993_v35, %v2009_v42  ;;  %v9046_v11 = vcombine.low %v1323_v26, %v1304_v28  ;;  %v7077_v18 = vcombine.low %v1994_v49, %v2010_v21  ;;  %v1517_v26 = vor.u32 %v9016_v31, %v1512_v22 }
  0x7f   :  { %v1509_v27 = vrot.slane %v1507_v58, 1  ;;  %v2013_v36 = vld [vmem:[#allocation2 + $0x74] sm:$0x1]  ;;  %v2158_v59 = vshll.u32 %v9025_v6, 16  ;;  %v1998_v50 = vld [vmem:[#allocation2 + $0x78] sm:$0xf]  ;;  %v9055_v5 = vcombine.low %v1324_v44, %v1306_v45  ;;  %v1538_v57 = vor.u32 %v9036_v53, %v1533_v9 }
  0x80   :  { %v8114_v3 = vld [vmem:[%s10302_s1 + $0xb0] sm:$0xff]   ;;  %v2014_v12 = vld [vmem:[#allocation2 + $0x7c] sm:$0x1]  ;;  %v2163_v23 = vshrl.u32 %v9033_v25, 16  ;;  %v2165_v32 = vshll.u32 %v9033_v25, 16  ;;  %v8115_v19 = vld [vmem:[%s10302_s1 + $0xe8] sm:$0xff]   ;;  %v9060_v30 = vcombine.low %v1997_v39, %v2013_v36 }
  0x81   :  { %2215 = vrot.lane.b32.xlu0 %v2119_v51, %s8503_s28  ;;  %v1510_v17 = vor.u32 %v1509_v27, %v1505_v41  ;;  %7673 = vmatpush3.bf16.msra.mxu1 %v8114_v3  ;;  %v1540_v24 = vshrl.u32 %v9046_v11, 16  ;;  %v8116_v14 = vld [vmem:[%s10302_s1 + $0xa8] sm:$0xff]   ;;  %v2142_v40 = vshrl.u32 %v7076_v56, 16  ;;  %v2144_v29 = vshll.u32 %v7076_v56, 16  ;;  %v8120_v34 = vld [vmem:[%s10302_s1 + $0xe0] sm:$0xff]   ;;  %v8127_v44 = vld [vmem:[%s10302_s1 + $0xd8] sm:$0xff]  }
  0x82   :  { %2217 = vrot.lane.b32.xlu1 %v2126_v13, %s8503_s28  ;;  %v9062_v62 = vcombine.low %v1998_v50, %v2014_v12  ;;  %7674 = vmatprep.subr.bf16.mxu1 %v8115_v19  ;;  %v1308_v58 = vld [vmem:[#allocation2 + $0x8c] sm:$0x1]  ;;  %v1325_v35 = vld [vmem:[#allocation2 + $0x88] sm:$0xe]  ;;  %v146_v28 = vld [vmem:[#allocation2 + $0x94] sm:$0x1]  ;;  %v1524_v41 = vor.u32 %v9019_v4, %v1519_v54 }
  0x83   :  { %v2151_v51 = vshll.u32 %v7077_v18, 16  ;;  %v2160_v13 = vrot.slane %v2158_v59, 1  ;;  %v147_v42 = vsel %vm8597_vm6, 0, %v146_v28  ;;  %v8123_v15 = vld [vmem:[%s10302_s1 + $0xa0] sm:$0xff]   ;;  %v1542_v0 = vshll.u32 %v9046_v11, 16 }
  0x84   :  { %v1549_v46 = vshll.u32 %v9055_v5, 16  ;;  %148 = vst [vmem:[#allocation2 + $0x94] sm:$0x1] %v147_v42  ;;  %v2146_v49 = vrot.slane %v2144_v29, 1  ;;  %v2172_v16 = vshll.u32 %v9060_v30, 16  ;;  %v2179_v55 = vshll.u32 %v9062_v62, 16 }
  0x85   :  { %1579 = vrot.lane.b32.xlu0 %v1503_v8, %s8503_s28  ;;  %7675 = vmatpush3.bf16.msra.mxu1 %v8116_v14  ;;  %v9084_v10 = vcombine.low %v1325_v35, %v1308_v58  ;;  %v2149_v27 = vshrl.u32 %v7077_v18, 16  ;;  %v2153_v21 = vrot.slane %v2151_v51, 1  ;;  %v2167_v45 = vrot.slane %v2165_v32, 1  ;;  %v1999_v3 = vld [vmem:[#allocation2 + $0x80] sm:$0xf] }
  0x86   :  { %1581 = vrot.lane.b32.xlu1 %v1510_v17, %s8503_s28  ;;  %7676 = vmatprep.subr.bf16.mxu1 %v8120_v34  ;;  %v1544_v39 = vrot.slane %v1542_v0, 1  ;;  %v1547_v36 = vshrl.u32 %v9055_v5, 16  ;;  %v1551_v47 = vrot.slane %v1549_v46, 1  ;;  %v2170_v22 = vshrl.u32 %v9060_v30, 16  ;;  %v2015_v8 = vld [vmem:[#allocation2 + $0x84] sm:$0x1] }
  0x87   :  { %v2177_v31 = vshrl.u32 %v9062_v62, 16  ;;  %v1556_v20 = vshll.u32 %v9084_v10, 16  ;;  %v2147_v54 = vor.u32 %v2146_v49, %v2142_v40  ;;  %v2174_v4 = vrot.slane %v2172_v16, 1  ;;  %v2000_v5 = vld [vmem:[#allocation2 + $0x88] sm:$0xf]  ;;  %v8128_v46 = vld [vmem:[%s10302_s1 + $0x98] sm:$0xff]  }
  0x88   :  { %v2181_v56 = vrot.slane %v2179_v55, 1  ;;  %v2154_v59 = vor.u32 %v2153_v21, %v2149_v27  ;;  %vm747_vm7 = vcmask 523264   ;;  %vm1180_vm8 = vcmask 1042432   ;;  %v2016_v14 = vld [vmem:[#allocation2 + $0x8c] sm:$0x1] }
  0x89   :  { %2219 = vrot.lane.b32.xlu0 %v2133_v43, %s8503_s28  ;;  %7677 = vmatpush3.bf16.msra.mxu1 %v8123_v15  ;;  %vm1181_vm9 = vcmask 1046532   ;;  %v1554_v17 = vshrl.u32 %v9084_v10, 16  ;;  %v1558_v18 = vrot.slane %v1556_v20, 1  ;;  %v1531_v32 = vor.u32 %v9023_v38, %v1526_v48  ;;  %v87_v40 = vld [vmem:[#allocation2 + $0x98] sm:$0x1] }
  0x8a   :  { %2221 = vrot.lane.b32.xlu1 %v2140_v61, %s8503_s28  ;;  %7678 = vmatprep.subr.bf16.mxu1 %v8127_v44  ;;  %v9112_v19 = vcombine.low %v1999_v3, %v2015_v8  ;;  %v149_v29 = vld [vmem:[#allocation2 + $0x9c] sm:$0x1]  ;;  %v88_v62 = vsel %vm8528_vm3, 0, %v87_v40  ;;  %v2161_v48 = vor.u32 %v2160_v13, %v2156_v33  ;;  %v8060_v38 = vld [vmem:[#allocation2] sm:$0x1e]   ;;  %v2168_v53 = vor.u32 %v2167_v45, %v2163_v23  ;;  %vm9138_vm10 = vmor %vm1180_vm8, %vm1181_vm9 }
  0x8b   :  { %v488_v50 = vld [vmem:[#allocation2 + $0x94] sm:$0x1]  ;;  %v8059_v30 = vld [vmem:[#allocation2 + $0x18] sm:$0x1e]   ;;  %v150_v60 = vsel %vm8597_vm6, 0, %v149_v29  ;;  %v9130_v34 = vcombine.low %v2000_v5, %v2016_v14  ;;  %v1545_v33 = vor.u32 %v1544_v39, %v1540_v24  ;;  %v1552_v28 = vor.u32 %v1551_v47, %v1547_v36 }
  0x8c   :  { %v489_v12 = vsel %vm8528_vm3, %v359_v52, %v488_v50  ;;  %v1326_v52 = vld [vmem:[#allocation2 + $0x90] sm:$0xe]  ;;  %v2184_v7 = vshrl.u32 %v9112_v19, 16  ;;  %v2186_v9 = vshll.u32 %v9112_v19, 16  ;;  %89 = vst [vmem:[#allocation2 + $0x98] sm:$0x1] %v88_v62  ;;  %v2175_v61 = vor.u32 %v2174_v4, %v2170_v22 }
  0x8d   :  { %1583 = vrot.lane.b32.xlu0 %v1517_v26, %s8503_s28  ;;  %490 = vst [vmem:[#allocation2 + $0x94] sm:$0x1] %v489_v12  ;;  %151 = vst [vmem:[#allocation2 + $0x9c] sm:$0x1] %v150_v60  ;;  %v2001_v43 = vld [vmem:[#allocation2 + $0x90] sm:$0xf]  ;;  %v2182_v51 = vor.u32 %v2181_v56, %v2177_v31  ;;  %7679 = vmatpush3.bf16.msra.mxu1 %v8128_v46  ;;  %v1559_v31 = vor.u32 %v1558_v18, %v1554_v17 }
  0x8e   :  { %1585 = vrot.lane.b32.xlu1 %v1524_v41, %s8503_s28  ;;  %v8065_v6 = vld [vmem:[#allocation2 + $0x28] sm:$0x1e]   ;;  %v2191_v11 = vshrl.u32 %v9130_v34, 16  ;;  %v2193_v24 = vshll.u32 %v9130_v34, 16  ;;  %v2188_v10 = vrot.slane %v2186_v9, 1  ;;  %v8130_v26 = vld [vmem:[%s10302_s1 + $0xd0] sm:$0xff]  }
  0x8f   :  { %v1027_v13 = vpop.permute.xlu1 %1026  ;;  %v8066_v42 = vld [vmem:[#allocation2 + $0x8] sm:$0x1e]   ;;  %v8133_v36 = vld [vmem:[%s10302_s1 + $0x90] sm:$0xff]   ;;  %7680 = vmatprep.subr.bf16.mxu1 %v8130_v26  ;;  %v8071_v8 = vld [vmem:[#allocation2 + $0x38] sm:$0x1e]  }
  0x90   :  { %v1063_v23 = vsel %vm747_vm7, %v8059_v30, %v1027_v13  ;;  %v1021_v15 = vpop.permute.xlu0 %1020  ;;  %v8134_v4 = vld [vmem:[%s10302_s1 + $0xc8] sm:$0xff]   ;;  %vm1727_vm11 = vsmask.f32 3328  ;;  %vm1728_vm12 = vsmask.f32 7440 }
  0x91   :  { %2223 = vrot.lane.b32.xlu0 %v2147_v54, %s8503_s28  ;;  %v6964_v49 = vcombine.low %v1063_v23, %v1063_v23  ;;  %v6965_v16 = vcombine.high %v1063_v23, %v1063_v23  ;;  %v1054_v55 = vsel %vm747_vm7, %v8060_v38, %v1021_v15  ;;  %7681 = vmatpush3.bf16.msra.mxu1 %v8133_v36  ;;  %vm9309_vm13 = vmor %vm1727_vm11, %vm1728_vm12 }
  0x92   :  { %2225 = vrot.lane.b32.xlu1 %v2154_v59, %s8503_s28  ;;  %v6958_v41 = vcombine.low %v1054_v55, %v1054_v55  ;;  %v6959_v27 = vcombine.high %v1054_v55, %v1054_v55  ;;  %7682 = vmatprep.subr.bf16.mxu1 %v8134_v4  ;;  %v8370_v4 = vld [vmem:[#allocation2] sm:$0xf] }
  0x93   :  { %v2002_v44 = vld [vmem:[#allocation2 + $0x98] sm:$0xf]  ;;  %v6993_v47 = vrot.slane %v6964_v49, 9  ;;  %v1197_v22 = vrot.slane %v6965_v16, 5  ;;  %v1031_v54 = vpop.permute.xlu1 %1030 }
  0x94   :  { %v1310_v63 = vld [vmem:[#allocation2 + $0x94] sm:$0x1]  ;;  %v2018_v39 = vld [vmem:[#allocation2 + $0x9c] sm:$0x1]  ;;  %v6990_v56 = vrot.slane %v6958_v41, 9  ;;  %v1185_v59 = vrot.slane %v6959_v27, 5  ;;  %v1069_v50 = vsel %vm747_vm7, %v8065_v6, %v1031_v54  ;;  %v1023_v3 = vpop.permute.xlu0 %1022 }
  0x95   :  { %1587 = vrot.lane.b32.xlu0 %v1531_v32, %s8503_s28  ;;  %v2017_v58 = vld [vmem:[#allocation2 + $0x94] sm:$0x1]  ;;  %v7037_v35 = vcombine.low %v1326_v52, %v1310_v63  ;;  %v9163_v12 = vcombine.low %v2002_v44, %v2018_v39  ;;  %v1198_v17 = vsel %vm9138_vm10, %v6993_v47, %v1197_v22  ;;  %v6968_v18 = vcombine.low %v1069_v50, %v1069_v50 }
  0x96   :  { %1589 = vrot.lane.b32.xlu1 %v1538_v57, %s8503_s28  ;;  %v9152_v45 = vcombine.low %v2001_v43, %v2017_v58  ;;  %v6969_v32 = vcombine.high %v1069_v50, %v1069_v50  ;;  %v1057_v5 = vsel %vm747_vm7, %v8066_v42, %v1023_v3  ;;  %v8072_v57 = vld [vmem:[#allocation2 + $0x10] sm:$0x1e]   ;;  %1266 = vst [vmem:[#allocation3 + $0x40] sm:$0xf] %v1198_v17  ;;  %v8075_v42 = vld [vmem:[#allocation2 + $0x20] sm:$0x1e]  }
  0x97   :  { %v1563_v0 = vshll.u32 %v7037_v35, 16  ;;  %v1561_v21 = vshrl.u32 %v7037_v35, 16  ;;  %v1186_v52 = vsel %vm9138_vm10, %v6990_v56, %v1185_v59  ;;  %v6960_v14 = vcombine.low %v1057_v5, %v1057_v5  ;;  %v1035_v38 = vpop.permute.xlu1 %1034 }
  0x98   :  { %v6961_v40 = vcombine.high %v1057_v5, %v1057_v5  ;;  %v2200_v29 = vshll.u32 %v9152_v45, 16  ;;  %1263 = vst [vmem:[#allocation3 + $0x4] sm:$0xf] %v1186_v52  ;;  %v6995_v62 = vrot.slane %v6968_v18, 9  ;;  %v1205_v60 = vrot.slane %v6969_v32, 5 }
  0x99   :  { %2227 = vrot.lane.b32.xlu0 %v2161_v48, %s8503_s28  ;;  %v1565_v20 = vrot.slane %v1563_v0, 1  ;;  %v2195_v48 = vrot.slane %v2193_v24, 1  ;;  %v6991_v9 = vrot.slane %v6960_v14, 9  ;;  %v1075_v63 = vsel %vm747_vm7, %v8071_v8, %v1035_v38  ;;  %v8371_v18 = vld [vmem:[#allocation2 + $0x10] sm:$0xf] }
  0x9a   :  { %2229 = vrot.lane.b32.xlu1 %v2168_v53, %s8503_s28  ;;  %v1189_v53 = vrot.slane %v6961_v40, 5  ;;  %v2207_v43 = vshll.u32 %v9163_v12, 16  ;;  %v1206_v58 = vsel %vm9138_vm10, %v6995_v62, %v1205_v60  ;;  %v2189_v35 = vor.u32 %v2188_v10, %v2184_v7  ;;  %v8374_v62 = vld [vmem:[#allocation2 + $0x18] sm:$0xf] }
  0x9b   :  { %v1566_v30 = vor.u32 %v1565_v20, %v1561_v21  ;;  %v6972_v6 = vcombine.low %v1075_v63, %v1075_v63  ;;  %1268 = vst [vmem:[#allocation3 + $0x68] sm:$0xf] %v1206_v58  ;;  %v2198_v23 = vshrl.u32 %v9152_v45, 16  ;;  %v2202_v15 = vrot.slane %v2200_v29, 1  ;;  %v8080_v21 = vld [vmem:[#allocation2 + $0x30] sm:$0x1e]  }
  0x9c   :  { %v2196_v46 = vor.u32 %v2195_v48, %v2191_v11  ;;  %v2205_v49 = vshrl.u32 %v9163_v12, 16  ;;  %v2209_v16 = vrot.slane %v2207_v43, 1  ;;  %v8373_v29 = vld [vmem:[#allocation2 + $0x20] sm:$0xf]  ;;  %v8376_v58 = vld [vmem:[#allocation2 + $0x28] sm:$0xf] }
  0x9d   :  { %1591 = vrot.lane.b32.xlu0 %v1545_v33, %s8503_s28  ;;  %v6973_v33 = vcombine.high %v1075_v63, %v1075_v63  ;;  %v6997_v19 = vrot.slane %v6972_v6, 9  ;;  %v2203_v44 = vor.u32 %v2202_v15, %v2198_v23  ;;  %v8139_v48 = vld [vmem:[%s10302_s1 + $0xc0] sm:$0xff]   ;;  %v8375_v63 = vld [vmem:[#allocation2 + $0x30] sm:$0xf]  ;;  %v2325_v23 = vld [vmem:[#allocation2 + $0x18] sm:$0xe] }
  0x9e   :  { %1593 = vrot.lane.b32.xlu1 %v1552_v28, %s8503_s28  ;;  %v1025_v28 = vpop.permute.xlu0 %1024  ;;  %v2210_v39 = vor.u32 %v2209_v16, %v2205_v49  ;;  %v2326_v15 = vld [vmem:[#allocation2 + $0x1c] sm:$0x1]  ;;  %v8124_v49 = vld [vmem:[%s10302_s1 + $0x108] sm:$0xff]  }
  0x9f   :  { %v1060_v13 = vsel %vm747_vm7, %v8072_v57, %v1025_v28  ;;  %v1213_v7 = vrot.slane %v6973_v33, 5  ;;  %v8372_v57 = vld [vmem:[#allocation2 + $0x8] sm:$0xf]  ;;  %v8091_v28 = vld [vmem:[#allocation2 + $0x50] sm:$0x1e]  }
  0xa0   :  { %v6962_v0 = vcombine.low %v1060_v13, %v1060_v13  ;;  %v6963_v24 = vcombine.high %v1060_v13, %v1060_v13  ;;  %v2324_v13 = vld [vmem:[#allocation2 + $0x14] sm:$0x1] }
  0xa1   :  { %2231 = vrot.lane.b32.xlu0 %v2175_v61, %s8503_s28  ;;  %v8135_v61 = vld [vmem:[%s10302_s1 + $0x88] sm:$0xff]   ;;  %v1214_v55 = vsel %vm9138_vm10, %v6997_v19, %v1213_v7  ;;  %v8377_v7 = vld [vmem:[#allocation2 + $0x38] sm:$0xf]  ;;  %v2389_v16 = vrot.slane %v2324_v13, 5 }
  0xa2   :  { %2233 = vrot.lane.b32.xlu1 %v2182_v51, %s8503_s28  ;;  %v1190_v51 = vsel %vm9138_vm10, %v6991_v9, %v1189_v53  ;;  %7683 = vmatpush3.bf16.msra.mxu1 %v8135_v61  ;;  %v6992_v10 = vrot.slane %v6962_v0, 9  ;;  %v1193_v26 = vrot.slane %v6963_v24, 5  ;;  %v1029_v41 = vpop.permute.xlu0 %1028  ;;  %1270 = vst [vmem:[#allocation3 + $0x90] sm:$0xf] %v1214_v55  ;;  %v8140_v9 = vld [vmem:[%s10302_s1 + $0x80] sm:$0xff]   ;;  %v8103_v61 = vld [vmem:[%s10302_s1 + $0x110] sm:$0xff]  }
  0xa3   :  { %1264 = vst [vmem:[#allocation3 + $0x18] sm:$0xf] %v1190_v51  ;;  %v1066_v27 = vsel %vm747_vm7, %v8075_v42, %v1029_v41  ;;  %7684 = vmatprep.subr.bf16.mxu1 %v8139_v48  ;;  %v2323_v51 = vld [vmem:[#allocation2 + $0x10] sm:$0xe]  ;;  %v2393_v41 = vrot.slane %v2326_v15, 5 }
  0xa4   :  { %v1194_v45 = vsel %vm9138_vm10, %v6992_v10, %v1193_v26  ;;  %v6966_v34 = vcombine.low %v1066_v27, %v1066_v27  ;;  %v6967_v11 = vcombine.high %v1066_v27, %v1066_v27  ;;  %v7086_v19 = vrot.slane %v2323_v51, 9  ;;  %v8094_v10 = vld [vmem:[#allocation2 + $0x58] sm:$0x1e]   ;;  %v2327_v27 = vld [vmem:[#allocation2 + $0x20] sm:$0xe] }
  0xa5   :  { %1595 = vrot.lane.b32.xlu0 %v1559_v31, %s8503_s28  ;;  %1265 = vst [vmem:[#allocation3 + $0x2c] sm:$0xf] %v1194_v45  ;;  %v7087_v26 = vrot.slane %v2325_v23, 9  ;;  %v2337_v51 = vld [vmem:[#allocation2 + $0x48] sm:$0xe] }
  0xa6   :  { %1597 = vrot.lane.b32.xlu1 %v1566_v30, %s8503_s28  ;;  %v6994_v36 = vrot.slane %v6966_v34, 9  ;;  %v1201_v47 = vrot.slane %v6967_v11, 5  ;;  %v1033_v22 = vpop.permute.xlu0 %1032  ;;  %7685 = vmatpush3.bf16.msra.mxu1 %v8140_v9  ;;  %v2390_v34 = vsel %vm9138_vm10, %v7086_v19, %v2389_v16  ;;  %v2329_v11 = vld [vmem:[#allocation2 + $0x28] sm:$0xe]  ;;  %v2338_v23 = vld [vmem:[#allocation2 + $0x4c] sm:$0x1] }
  0xa7   :  { %v716_v31 = vpop.permute.xlu1 %715  ;;  %v1072_v20 = vsel %vm747_vm7, %v8080_v21, %v1033_v22  ;;  %2467 = vst.msk [vmem:[#allocation3 + $0x10] sm:$0xf] %vm16_vm2, %v2390_v34  ;;  %v7089_v22 = vrot.slane %v2329_v11, 9 }
  0xa8   :  { %v1202_v54 = vsel %vm9138_vm10, %v6994_v36, %v1201_v47  ;;  %v750_v56 = vsel %vm747_vm7, %v8370_v4, %v716_v31  ;;  %v6970_v59 = vcombine.low %v1072_v20, %v1072_v20  ;;  %v6971_v50 = vcombine.high %v1072_v20, %v1072_v20 }
  0xa9   :  { %2235 = vrot.lane.b32.xlu0 %v2189_v35, %s8503_s28  ;;  %1267 = vst [vmem:[#allocation3 + $0x54] sm:$0xf] %v1202_v54  ;;  %812 = vst [vmem:[#allocation3] sm:$0xf] %v750_v56  ;;  %v7088_v36 = vrot.slane %v2327_v27, 9  ;;  %v8141_v56 = vld [vmem:[%s10302_s1 + $0x100] sm:$0xff]  }
  0xaa   :  { %2237 = vrot.lane.b32.xlu1 %v2196_v46, %s8503_s28  ;;  %v6996_v3 = vrot.slane %v6970_v59, 9  ;;  %v1209_v8 = vrot.slane %v6971_v50, 5  ;;  %v720_v12 = vpop.permute.xlu0 %719  ;;  %v8087_v6 = vld [vmem:[#allocation3 + $0x4] ss:$20 sps:$4 sm:$0xff]  }
  0xab   :  { %v718_v17 = vpop.permute.xlu1 %717  ;;  %v758_v32 = vsel %vm747_vm7, %v8371_v18, %v720_v12  ;;  %3075 = vmatprep.mubr.bf16.mxu0 %v8087_v6 }
  0xac   :  { %v1210_v5 = vsel %vm9138_vm10, %v6996_v3, %v1209_v8  ;;  %v754_v52 = vsel %vm747_vm7, %v8372_v57, %v718_v17  ;;  %814 = vst [vmem:[#allocation3 + $0x28] sm:$0xf] %v758_v32  ;;  %v8092_v46 = vld [vmem:[#allocation3 + $0x2c] ss:$20 sps:$4 sm:$0xff]   ;;  %v8378_v3 = vld [vmem:[#allocation2 + $0x50] sm:$0xf] }
  0xad   :  { %2239 = vrot.lane.b32.xlu0 %v2203_v44, %s8503_s28  ;;  %1269 = vst [vmem:[#allocation3 + $0x7c] sm:$0xf] %v1210_v5  ;;  %813 = vst [vmem:[#allocation3 + $0x14] sm:$0xf] %v754_v52  ;;  %v2330_v44 = vld [vmem:[#allocation2 + $0x2c] sm:$0x1] }
  0xae   :  { %2241 = vrot.lane.b32.xlu1 %v2210_v39, %s8503_s28  ;;  %v724_v14 = vpop.permute.xlu0 %723  ;;  %v2394_v39 = vsel %vm9138_vm10, %v7087_v26, %v2393_v41  ;;  %v2401_v59 = vrot.slane %v2330_v44, 5  ;;  %v2331_v32 = vld [vmem:[#allocation2 + $0x30] sm:$0xe] }
  0xaf   :  { %v722_v40 = vpop.permute.xlu1 %721  ;;  %v766_v30 = vsel %vm747_vm7, %v8373_v29, %v724_v14  ;;  %2468 = vst.msk [vmem:[#allocation3 + $0x24] sm:$0xf] %vm16_vm2, %v2394_v39  ;;  %v2333_v29 = vld [vmem:[#allocation2 + $0x38] sm:$0xe] }
  0xb0   :  { %v762_v60 = vsel %vm747_vm7, %v8374_v62, %v722_v40  ;;  %816 = vst [vmem:[#allocation3 + $0x50] sm:$0xf] %v766_v30  ;;  %v8096_v17 = vld [vmem:[#allocation3 + $0x54] ss:$20 sps:$4 sm:$0xff]   ;;  %v2402_v14 = vsel %vm9138_vm10, %v7089_v22, %v2401_v59  ;;  %v2334_v30 = vld [vmem:[#allocation2 + $0x3c] sm:$0x1] }
  0xb1   :  { %815 = vst [vmem:[#allocation3 + $0x3c] sm:$0xf] %v762_v60  ;;  %v2332_v40 = vld [vmem:[#allocation2 + $0x34] sm:$0x1]  ;;  %2470 = vst.msk [vmem:[#allocation3 + $0x4c] sm:$0xf] %vm16_vm2, %v2402_v14 }
  0xb2   :  { %v728_v38 = vpop.permute.xlu0 %727  ;;  %v7090_v62 = vrot.slane %v2331_v32, 9  ;;  %v2405_v60 = vrot.slane %v2332_v40, 5  ;;  %v7091_v48 = vrot.slane %v2333_v29, 9  ;;  %v9269_v14 = vld [vmem:[#allocation2 + $0x18] sm:$0xf] }
  0xb3   :  { %v726_v53 = vpop.permute.xlu1 %725  ;;  %v774_v43 = vsel %vm747_vm7, %v8375_v63, %v728_v38  ;;  %v2335_v38 = vld [vmem:[#allocation2 + $0x40] sm:$0xe] }
  0xb4   :  { %v770_v35 = vsel %vm747_vm7, %v8376_v58, %v726_v53  ;;  %818 = vst [vmem:[#allocation3 + $0x78] sm:$0xf] %v774_v43  ;;  %v8089_v33 = vld [vmem:[#allocation3] ss:$20 sps:$4 sm:$0xff]   ;;  %v2409_v58 = vrot.slane %v2334_v30, 5  ;;  %v7092_v15 = vrot.slane %v2335_v38, 9 }
  0xb5   :  { %817 = vst [vmem:[#allocation3 + $0x64] sm:$0xf] %v770_v35  ;;  %3076 = vmatmul.mubr.bf16.vlgmr.msra.gmra.mxu0 %v8089_v33  ;;  %v8098_v43 = vld [vmem:[#allocation2 + $0x60] sm:$0x1e]   ;;  %v8379_v35 = vld [vmem:[#allocation2 + $0x58] sm:$0xf] }
  0xb6   :  { %7907 = vmatpush3.bf16.msra.mxu0 %v8986_v2  ;;  %3083 = vmatprep.mubr.bf16.mxu0 %v8092_v46  ;;  %v2328_v2 = vld [vmem:[#allocation2 + $0x24] sm:$0x1]  ;;  %v8099_v33 = vld [vmem:[#allocation2 + $0x68] sm:$0x1e]   ;;  %v9271_v40 = vld [vmem:[#allocation2 + $0x20] sm:$0xf] }
  0xb7   :  { %v730_v42 = vpop.permute.xlu1 %729  ;;  %v1037_v24 = vpop.permute.xlu0 %1036  ;;  %7908 = vmatprep.subr.bf16.mxu0 %v8103_v61  ;;  %v2397_v47 = vrot.slane %v2328_v2, 5 }
  0xb8   :  { %v778_v0 = vsel %vm747_vm7, %v8377_v7, %v730_v42  ;;  %v1078_v55 = vsel %vm747_vm7, %v8091_v28, %v1037_v24  ;;  %v8095_v12 = vld [vmem:[#allocation3 + $0x28] ss:$20 sps:$4 sm:$0xff]   ;;  %v2406_v28 = vsel %vm9138_vm10, %v7090_v62, %v2405_v60  ;;  %v2410_v42 = vsel %vm9138_vm10, %v7091_v48, %v2409_v58 }
  0xb9   :  { %819 = vst [vmem:[#allocation3 + $0x8c] sm:$0xf] %v778_v0  ;;  %v6974_v21 = vcombine.low %v1078_v55, %v1078_v55  ;;  %v6975_v45 = vcombine.high %v1078_v55, %v1078_v55  ;;  %v2398_v18 = vsel %vm9138_vm10, %v7088_v36, %v2397_v47  ;;  %2471 = vst.msk [vmem:[#allocation3 + $0x60] sm:$0xf] %vm16_vm2, %v2406_v28  ;;  %v7093_v0 = vrot.slane %v2337_v51, 9 }
  0xba   :  { %7909 = vmatpush3.bf16.msra.mxu0 %v8103_v61  ;;  %2469 = vst.msk [vmem:[#allocation3 + $0x38] sm:$0xf] %vm16_vm2, %v2398_v18  ;;  %v2336_v61 = vld [vmem:[#allocation2 + $0x44] sm:$0x1]  ;;  %2472 = vst.msk [vmem:[#allocation3 + $0x74] sm:$0xf] %vm16_vm2, %v2410_v42 }
  0xbb   :  { %v6998_v31 = vrot.slane %v6974_v21, 9  ;;  %v1217_v20 = vrot.slane %v6975_v45, 5  ;;  %7910 = vmatprep.subr.bf16.mxu0 %v8124_v49  ;;  %v2413_v19 = vrot.slane %v2336_v61, 5  ;;  %v2417_v24 = vrot.slane %v2338_v23, 5  ;;  %v5670_v55 = vld [vmem:[#allocation2 + $0x48] sm:$0xe] }
  0xbc   :  { %v8100_v21 = vld [vmem:[#allocation3 + $0x50] ss:$20 sps:$4 sm:$0xff]   ;;  %v7395_v11 = vrot.slane %v5670_v55, 9  ;;  %v8381_v18 = vld [vmem:[#allocation2 + $0x60] sm:$0xf] }
  0xbd   :  { %v1039_v54 = vpop.permute.xlu1 %1038  ;;  %v732_v4 = vpop.permute.xlu0 %731  ;;  %v1218_v5 = vsel %vm9138_vm10, %v6998_v31, %v1217_v20  ;;  %3084 = vmatmul.mubr.bf16.gmra.mxu0 %v8095_v12  ;;  %v2414_v16 = vsel %vm9138_vm10, %v7092_v15, %v2413_v19  ;;  %v8101_v45 = vld [vmem:[#allocation3 + $0x7c] ss:$20 sps:$4 sm:$0xff]   ;;  %v2418_v34 = vsel %vm9138_vm10, %v7093_v0, %v2417_v24  ;;  %v2339_v20 = vld [vmem:[#allocation2 + $0x60] sm:$0xe]  ;;  %v8383_v60 = vld [vmem:[#allocation2 + $0x68] sm:$0xf] }
  0xbe   :  { %v1081_v50 = vsel %vm747_vm7, %v8094_v10, %v1039_v54  ;;  %v782_v8 = vsel %vm747_vm7, %v8378_v3, %v732_v4  ;;  %1271 = vst [vmem:[#allocation3 + $0xa4] sm:$0xf] %v1218_v5  ;;  %3091 = vmatprep.mubr.bf16.mxu0 %v8096_v17  ;;  %7911 = vmatpush3.bf16.msra.mxu0 %v8124_v49  ;;  %v9256_v49 = vld [vmem:[#allocation2 + $0x8] sm:$0xf]  ;;  %v5671_v10 = vld [vmem:[#allocation2 + $0x4c] sm:$0x1] }
  0xbf   :  { %v6976_v57 = vcombine.low %v1081_v50, %v1081_v50  ;;  %v6977_v52 = vcombine.high %v1081_v50, %v1081_v50  ;;  %820 = vst [vmem:[#allocation3 + $0xa0] sm:$0xf] %v782_v8  ;;  %7912 = vmatprep.subr.bf16.mxu0 %v8141_v56  ;;  %2473 = vst.msk [vmem:[#allocation3 + $0x88] sm:$0xf] %vm16_vm2, %v2414_v16  ;;  %v5750_v44 = vrot.slane %v5671_v10, 5  ;;  %v7094_v30 = vrot.slane %v2339_v20, 9 }
  0xc0   :  { %2474 = vst.msk [vmem:[#allocation3 + $0x9c] sm:$0xf] %vm16_vm2, %v2418_v34  ;;  %v1281_v31 = vld [vmem:[#allocation2 + $0x10] sm:$0xf]  ;;  %v2340_v54 = vld [vmem:[#allocation2 + $0x64] sm:$0x1] }
  0xc1   :  { %v6999_v9 = vrot.slane %v6976_v57, 9  ;;  %v1221_v53 = vrot.slane %v6977_v52, 5  ;;  %v734_v63 = vpop.permute.xlu1 %733  ;;  %v2341_v4 = vld [vmem:[#allocation2 + $0x68] sm:$0xe]  ;;  %v8380_v8 = vld [vmem:[#allocation2 + $0xc] sm:$0x1]  ;;  %v5751_v29 = vsel %vm9138_vm10, %v7395_v11, %v5750_v44 }
  0xc2   :  { %v786_v6 = vsel %vm747_vm7, %v8379_v35, %v734_v63  ;;  %7913 = vmatpush3.bf16.msra.mxu0 %v8141_v56  ;;  %v7006_v12 = vcombine.low %v9256_v49, %v8380_v8  ;;  %v2342_v17 = vld [vmem:[#allocation2 + $0x6c] sm:$0x1]  ;;  %v8382_v57 = vld [vmem:[#allocation2 + $0x14] sm:$0x1]  ;;  %v2343_v35 = vld [vmem:[#allocation2 + $0x70] sm:$0xe] }
  0xc3   :  { %v1222_v13 = vsel %vm9138_vm10, %v6999_v9, %v1221_v53  ;;  %821 = vst [vmem:[#allocation3 + $0xb4] sm:$0xf] %v786_v6  ;;  %v7007_v52 = vcombine.low %v1281_v31, %v8382_v57  ;;  %v8110_v38 = vld [vmem:[#allocation3 + $0x78] ss:$20 sps:$4 sm:$0xff]   ;;  %v2421_v9 = vrot.slane %v2340_v54, 5  ;;  %v7095_v53 = vrot.slane %v2341_v4, 9 }
  0xc4   :  { %1272 = vst [vmem:[#allocation3 + $0xb8] sm:$0xf] %v1222_v13  ;;  %v8108_v63 = vld [vmem:[#allocation2 + $0x70] sm:$0x1e]   ;;  %v2425_v58 = vrot.slane %v2342_v17, 5 }
  0xc5   :  { %3092 = vmatmul.mubr.bf16.gmra.mxu0 %v8100_v21  ;;  %v9282_v61 = vld [vmem:[#allocation2 + $0x24] sm:$0x1]  ;;  %v2422_v42 = vsel %vm9138_vm10, %v7094_v30, %v2421_v9  ;;  %v2344_v23 = vld [vmem:[#allocation2 + $0x74] sm:$0x1]  ;;  %v2345_v0 = vld [vmem:[#allocation2 + $0x78] sm:$0xe] }
  0xc6   :  { %v1041_v7 = vpop.permute.xlu0 %1040  ;;  %3099 = vmatprep.mubr.bf16.mxu0 %v8101_v45  ;;  %v7009_v51 = vcombine.low %v9271_v40, %v9282_v61  ;;  %2475 = vst.msk [vmem:[#allocation3 + $0xb0] sm:$0xf] %vm16_vm2, %v2422_v42  ;;  %v2346_v24 = vld [vmem:[#allocation2 + $0x7c] sm:$0x1]  ;;  %v2429_v49 = vrot.slane %v2344_v23, 5 }
  0xc7   :  { %v1084_v46 = vsel %vm747_vm7, %v8098_v43, %v1041_v7  ;;  %v9286_v13 = vld [vmem:[#allocation3 + $0x88] ss:$20 sps:$4 sm:$0xff]   ;;  %v2426_v7 = vsel %vm9138_vm10, %v7095_v53, %v2425_v58  ;;  %v2433_v34 = vrot.slane %v2346_v24, 5  ;;  %v2352_v9 = vld [vmem:[#allocation2 + $0x94] sm:$0x1] }
  0xc8   :  { %v6978_v26 = vcombine.low %v1084_v46, %v1084_v46  ;;  %v6979_v41 = vcombine.high %v1084_v46, %v1084_v46  ;;  %v1043_v27 = vpop.permute.xlu1 %1042  ;;  %5807 = vst.msk [vmem:[#allocation3 + $0x9c] sm:$0xf] %vm16_vm2, %v5751_v29  ;;  %v7096_v46 = vrot.slane %v2343_v35, 9  ;;  %2476 = vst.msk [vmem:[#allocation3 + $0xc4] sm:$0xf] %vm16_vm2, %v2426_v7 }
  0xc9   :  { %v1087_v2 = vsel %vm747_vm7, %v8099_v33, %v1043_v27  ;;  %v9278_v33 = vld [vmem:[#allocation2 + $0x1c] sm:$0x1]  ;;  %v2349_v17 = vld [vmem:[#allocation2 + $0x88] sm:$0xe]  ;;  %v2353_v42 = vld [vmem:[#allocation2 + $0x98] sm:$0xe] }
  0xca   :  { %v7000_v39 = vrot.slane %v6978_v26, 9  ;;  %v1225_v36 = vrot.slane %v6979_v41, 5  ;;  %v6980_v47 = vcombine.low %v1087_v2, %v1087_v2  ;;  %v6981_v22 = vcombine.high %v1087_v2, %v1087_v2  ;;  %v9297_v41 = vld [vmem:[#allocation2 + $0x80] sm:$0xe] }
  0xcb   :  { %v8112_v43 = vld [vmem:[#allocation3 + $0xa4] ss:$20 sps:$4 sm:$0xff]   ;;  %v7008_v28 = vcombine.low %v9269_v14, %v9278_v33  ;;  %v7097_v26 = vrot.slane %v2345_v0, 9  ;;  %v2430_v45 = vsel %vm9138_vm10, %v7096_v46, %v2429_v49  ;;  %v7099_v24 = vrot.slane %v2349_v17, 9  ;;  %v2354_v46 = vld [vmem:[#allocation2 + $0x9c] sm:$0x1] }
  0xcc   :  { %v1226_v56 = vsel %vm9138_vm10, %v7000_v39, %v1225_v36  ;;  %v7001_v59 = vrot.slane %v6980_v47, 9  ;;  %v1229_v50 = vrot.slane %v6981_v22, 5  ;;  %v8109_v36 = vld [vmem:[#allocation2 + $0x78] sm:$0x1e]   ;;  %2477 = vst.msk [vmem:[#allocation3 + $0xd8] sm:$0xf] %vm16_vm2, %v2430_v45 }
  0xcd   :  { %v736_v3 = vpop.permute.xlu0 %735  ;;  %1273 = vst [vmem:[#allocation3 + $0xcc] sm:$0xf] %v1226_v56  ;;  %v738_v5 = vpop.permute.xlu1 %737  ;;  %3100 = vmatmul.mubr.bf16.gmra.mxu0 %v8110_v38  ;;  %v7098_v47 = vrot.slane %v9297_v41, 9  ;;  %v2348_v56 = vld [vmem:[#allocation2 + $0x84] sm:$0x1] }
  0xce   :  { %v790_v32 = vsel %vm747_vm7, %v8381_v18, %v736_v3  ;;  %v1230_v62 = vsel %vm9138_vm10, %v7001_v59, %v1229_v50  ;;  %v794_v48 = vsel %vm747_vm7, %v8383_v60, %v738_v5  ;;  %3107 = vmatprep.mubr.bf16.mxu0 %v8112_v43  ;;  %v2351_v38 = vld [vmem:[#allocation2 + $0x90] sm:$0xe]  ;;  %v2437_v0 = vrot.slane %v2348_v56, 5  ;;  %v8387_v41 = vld [vmem:[#allocation2 + $0x78] sm:$0xf] }
  0xcf   :  { %822 = vst [vmem:[#allocation3 + $0xc8] sm:$0xf] %v790_v32  ;;  %1274 = vst [vmem:[#allocation3 + $0xe0] sm:$0xf] %v1230_v62  ;;  %v5687_v17 = vld [vmem:[#allocation2 + $0x9c] sm:$0x1] }
  0xd0   :  { %823 = vst [vmem:[#allocation3 + $0xdc] sm:$0xf] %v794_v48  ;;  %v2434_v48 = vsel %vm9138_vm10, %v7097_v26, %v2433_v34  ;;  %v2438_v45 = vsel %vm9138_vm10, %v7098_v47, %v2437_v0 }
  0xd1   :  { %v1568_v6 = vpop.permute.xlu0 %1567  ;;  %v1570_v19 = vpop.permute.xlu1 %1569  ;;  %2478 = vst.msk [vmem:[#allocation3 + $0xec] sm:$0xf] %vm16_vm2, %v2434_v48  ;;  %2479 = vst.msk [vmem:[#allocation3 + $0x100] sm:$0xf] %vm16_vm2, %v2438_v45 }
  0xd2   :  { %v1601_v15 = vsel %vm747_vm7, %v7006_v12, %v1568_v6  ;;  %v1604_v10 = vsel %vm747_vm7, %v7007_v52, %v1570_v19  ;;  %v8119_v12 = vld [vmem:[#allocation3 + $0xa0] ss:$20 sps:$4 sm:$0xff]   ;;  %v2350_v52 = vld [vmem:[#allocation2 + $0x8c] sm:$0x1] }
  0xd3   :  { %v7038_v16 = vcombine.low %v1601_v15, %v1601_v15  ;;  %v7039_v55 = vcombine.high %v1601_v15, %v1601_v15  ;;  %v7040_v27 = vcombine.low %v1604_v10, %v1604_v10  ;;  %v7041_v21 = vcombine.high %v1604_v10, %v1604_v10  ;;  %v8386_v15 = vld [vmem:[#allocation2 + $0x70] sm:$0xf] }
  0xd4   :  { %v2441_v34 = vrot.slane %v2350_v52, 5 }
  0xd5   :  { %v1731_v2 = vshrl.u32 %v7038_v16, 16  ;;  %v1734_v11 = vshll.u32 %v7038_v16, 16  ;;  %v1740_v44 = vshll.u32 %v7039_v55, 16  ;;  %v1045_v39 = vpop.permute.xlu0 %1044  ;;  %v1745_v22 = vshrl.u32 %v7040_v27, 16  ;;  %3108 = vmatmul.mubr.bf16.gmra.mxu0 %v8119_v12 }
  0xd6   :  { %v1748_v31 = vshll.u32 %v7040_v27, 16  ;;  %v1754_v20 = vshll.u32 %v7041_v21, 16  ;;  %v1090_v54 = vsel %vm747_vm7, %v8108_v63, %v1045_v39  ;;  %v1047_v4 = vpop.permute.xlu1 %1046  ;;  %v8121_v60 = vld [vmem:[#allocation3 + $0xcc] ss:$20 sps:$4 sm:$0xff]  }
  0xd7   :  { %v1733_v59 = vrot.slane %v1731_v2, 4  ;;  %v1736_v50 = vrot.slane %v1734_v11, 5  ;;  %v1742_v3 = vrot.slane %v1740_v44, 5  ;;  %v6982_v8 = vcombine.low %v1090_v54, %v1090_v54  ;;  %3115 = vmatprep.mubr.bf16.mxu0 %v8121_v60  ;;  %v8125_v21 = vld [vmem:[#allocation2 + $0x80] sm:$0x1e]  }
  0xd8   :  { %v1747_v18 = vrot.slane %v1745_v22, 4  ;;  %v1750_v32 = vrot.slane %v1748_v31, 5  ;;  %v1756_v5 = vrot.slane %v1754_v20, 5  ;;  %v6983_v57 = vcombine.high %v1090_v54, %v1090_v54  ;;  %v9322_v2 = vld [vmem:[#allocation2 + $0x98] sm:$0xe] }
  0xd9   :  { %v1737_v29 = vor.u32 %v1736_v50, %v1733_v59  ;;  %v7002_v30 = vrot.slane %v6982_v8, 9  ;;  %v1093_v62 = vsel %vm747_vm7, %v8109_v36, %v1047_v4  ;;  %v7100_v36 = vrot.slane %v2351_v38, 9  ;;  %v8129_v8 = vld [vmem:[#allocation3 + $0xc8] ss:$20 sps:$4 sm:$0xff]  }
  0xda   :  { %v1751_v63 = vor.u32 %v1750_v32, %v1747_v18  ;;  %v1233_v43 = vrot.slane %v6983_v57, 5  ;;  %v6984_v58 = vcombine.low %v1093_v62, %v1093_v62  ;;  %v6985_v35 = vcombine.high %v1093_v62, %v1093_v62 }
  0xdb   :  { %v740_v6 = vpop.permute.xlu0 %739  ;;  %v1738_v23 = vrot.slane %v1737_v29, 4  ;;  %v2445_v22 = vrot.slane %v2352_v9, 5  ;;  %v2442_v20 = vsel %vm9138_vm10, %v7099_v24, %v2441_v34  ;;  %v7101_v54 = vrot.slane %v2353_v42, 9 }
  0xdc   :  { %v798_v19 = vsel %vm747_vm7, %v8386_v15, %v740_v6  ;;  %v742_v7 = vpop.permute.xlu1 %741  ;;  %v1752_v49 = vrot.slane %v1751_v63, 4  ;;  %v1234_v16 = vsel %vm9138_vm10, %v7002_v30, %v1233_v43  ;;  %v7003_v55 = vrot.slane %v6984_v58, 9  ;;  %2480 = vst.msk [vmem:[#allocation3 + $0x114] sm:$0xf] %vm16_vm2, %v2442_v20 }
  0xdd   :  { %v1237_v10 = vrot.slane %v6985_v35, 5  ;;  %824 = vst [vmem:[#allocation3 + $0xf0] sm:$0xf] %v798_v19  ;;  %v1743_v26 = vsel %vm9309_vm13, %v1738_v23, %v1742_v3  ;;  %1275 = vst [vmem:[#allocation3 + $0xf4] sm:$0xf] %v1234_v16  ;;  %v802_v27 = vsel %vm747_vm7, %v8387_v41, %v742_v7  ;;  %v2449_v4 = vrot.slane %v2354_v46, 5  ;;  %3116 = vmatmul.mubr.bf16.gmra.mxu0 %v8129_v8 }
  0xde   :  { %1970 = vst [vmem:[#allocation3 + $0x8] sm:$0xf] %v1743_v26  ;;  %v1757_v11 = vsel %vm9309_vm13, %v1752_v49, %v1756_v5  ;;  %825 = vst [vmem:[#allocation3 + $0x104] sm:$0xf] %v802_v27  ;;  %v8126_v3 = vld [vmem:[#allocation2 + $0x88] sm:$0x1e]   ;;  %v2446_v14 = vsel %vm9138_vm10, %v7100_v36, %v2445_v22 }
  0xdf   :  { %v1238_v44 = vsel %vm9138_vm10, %v7003_v55, %v1237_v10  ;;  %v1572_v39 = vpop.permute.xlu0 %1571  ;;  %1971 = vst [vmem:[#allocation3 + $0x1c] sm:$0xf] %v1757_v11  ;;  %v2450_v12 = vsel %vm9138_vm10, %v7101_v54, %v2449_v4  ;;  %2481 = vst.msk [vmem:[#allocation3 + $0x128] sm:$0xf] %vm16_vm2, %v2446_v14  ;;  %v5782_v38 = vrot.slane %v5687_v17, 5 }
  0xe0   :  { %1276 = vst [vmem:[#allocation3 + $0x108] sm:$0xf] %v1238_v44  ;;  %v1607_v47 = vsel %vm747_vm7, %v7008_v28, %v1572_v39  ;;  %v1574_v31 = vpop.permute.xlu1 %1573  ;;  %2482 = vst.msk [vmem:[#allocation3 + $0x13c] sm:$0xf] %vm16_vm2, %v2450_v12  ;;  %v1287_v7 = vld [vmem:[#allocation2 + $0x28] sm:$0xf] }
  0xe1   :  { %v7042_v56 = vcombine.low %v1607_v47, %v1607_v47  ;;  %v7043_v59 = vcombine.high %v1607_v47, %v1607_v47  ;;  %v1610_v50 = vsel %vm747_vm7, %v7009_v51, %v1574_v31  ;;  %v7403_v51 = vrot.slane %v9322_v2, 9  ;;  %v1289_v55 = vld [vmem:[#allocation2 + $0x30] sm:$0xf]  ;;  %v8390_v54 = vld [vmem:[#allocation2 + $0x80] sm:$0xf] }
  0xe2   :  { %v7044_v33 = vcombine.low %v1610_v50, %v1610_v50  ;;  %v7045_v28 = vcombine.high %v1610_v50, %v1610_v50  ;;  %v8388_v41 = vld [vmem:[#allocation2 + $0x10] sm:$0xf]  ;;  %v1291_v12 = vld [vmem:[#allocation2 + $0x38] sm:$0xf] }
  0xe3   :  { %v1759_v18 = vshrl.u32 %v7042_v56, 16  ;;  %v1762_v32 = vshll.u32 %v7042_v56, 16  ;;  %v1768_v40 = vshll.u32 %v7043_v59, 16  ;;  %v1049_v61 = vpop.permute.xlu0 %1048  ;;  %v5783_v34 = vsel %vm9138_vm10, %v7403_v51, %v5782_v38  ;;  %v8391_v59 = vld [vmem:[#allocation2 + $0x2c] sm:$0x1] }
  0xe4   :  { %v1773_v5 = vshrl.u32 %v7044_v33, 16  ;;  %v1776_v57 = vshll.u32 %v7044_v33, 16  ;;  %v1782_v52 = vshll.u32 %v7045_v28, 16  ;;  %v1096_v29 = vsel %vm747_vm7, %v8125_v21, %v1049_v61  ;;  %v1051_v30 = vpop.permute.xlu1 %1050  ;;  %v8389_v21 = vld [vmem:[#allocation2 + $0x18] sm:$0xf] }
  0xe5   :  { %v1761_v62 = vrot.slane %v1759_v18, 4  ;;  %v1764_v60 = vrot.slane %v1762_v32, 5  ;;  %v6986_v48 = vcombine.low %v1096_v29, %v1096_v29  ;;  %v1770_v9 = vrot.slane %v1768_v40, 5  ;;  %v8138_v10 = vld [vmem:[#allocation3 + $0xf0] ss:$20 sps:$4 sm:$0xff]  }
  0xe6   :  { %v1775_v63 = vrot.slane %v1773_v5, 4  ;;  %v1778_v43 = vrot.slane %v1776_v57, 5  ;;  %v6987_v58 = vcombine.high %v1096_v29, %v1096_v29  ;;  %v1784_v6 = vrot.slane %v1782_v52, 5  ;;  %v8393_v33 = vld [vmem:[#allocation2 + $0x34] sm:$0x1] }
  0xe7   :  { %v1765_v35 = vor.u32 %v1764_v60, %v1761_v62  ;;  %v7004_v42 = vrot.slane %v6986_v48, 9  ;;  %v1099_v23 = vsel %vm747_vm7, %v8126_v3, %v1051_v30  ;;  %v2212_v15 = vpop.permute.xlu0 %2211  ;;  %v8131_v19 = vld [vmem:[#allocation3 + $0xf4] ss:$20 sps:$4 sm:$0xff]   ;;  %v7010_v50 = vcombine.low %v1287_v7, %v8391_v59  ;;  %v1293_v32 = vld [vmem:[#allocation2 + $0x40] sm:$0xf] }
  0xe8   :  { %v1779_v0 = vor.u32 %v1778_v43, %v1775_v63  ;;  %v1241_v24 = vrot.slane %v6987_v58, 5  ;;  %v6988_v46 = vcombine.low %v1099_v23, %v1099_v23  ;;  %v6989_v49 = vcombine.high %v1099_v23, %v1099_v23  ;;  %v2214_v16 = vpop.permute.xlu1 %2213  ;;  %3123 = vmatprep.mubr.bf16.mxu0 %v8131_v19  ;;  %v9357_v47 = vld [vmem:[#allocation3 + $0x128] ss:$20 sps:$4 sm:$0xff]   ;;  %v9368_v38 = vld [vmem:[#allocation2 + $0x58] sm:$0xf] }
  0xe9   :  { %v1766_v26 = vrot.slane %v1765_v35, 4  ;;  %v2245_v27 = vsel %vm747_vm7, %v8388_v41, %v2212_v15  ;;  %v2249_v45 = vsel %vm747_vm7, %v8389_v21, %v2214_v16  ;;  %3124 = vmatmul.mubr.bf16.gmra.mxu0 %v8138_v10  ;;  %5815 = vst.msk [vmem:[#allocation3 + $0x13c] sm:$0xf] %vm16_vm2, %v5783_v34  ;;  %v8392_v3 = vld [vmem:[#allocation2 + $0x88] sm:$0xf]  ;;  %v7011_v28 = vcombine.low %v1289_v55, %v8393_v33 }
  0xea   :  { %v1780_v2 = vrot.slane %v1779_v0, 4  ;;  %v1242_v11 = vsel %vm9138_vm10, %v7004_v42, %v1241_v24  ;;  %v7005_v44 = vrot.slane %v6988_v46, 9  ;;  %v1245_v39 = vrot.slane %v6989_v49, 5  ;;  %2307 = vst [vmem:[#allocation3 + $0xc] sm:$0xf] %v2245_v27 }
  0xeb   :  { %2308 = vst [vmem:[#allocation3 + $0x20] sm:$0xf] %v2249_v45  ;;  %v1771_v36 = vsel %vm9309_vm13, %v1766_v26, %v1770_v9  ;;  %1277 = vst [vmem:[#allocation3 + $0x11c] sm:$0xf] %v1242_v11  ;;  %v744_v22 = vpop.permute.xlu0 %743  ;;  %v8144_v29 = vld [vmem:[#allocation3 + $0x8] ss:$20 sps:$4 sm:$0xff]  }
  0xec   :  { %1972 = vst [vmem:[#allocation3 + $0x30] sm:$0xf] %v1771_v36  ;;  %v1785_v31 = vsel %vm9309_vm13, %v1780_v2, %v1784_v6  ;;  %v1246_v20 = vsel %vm9138_vm10, %v7005_v44, %v1245_v39  ;;  %v806_v4 = vsel %vm747_vm7, %v8390_v54, %v744_v22  ;;  %v746_v56 = vpop.permute.xlu1 %745  ;;  %v8153_v9 = vld [vmem:[#allocation3 + $0x10] ss:$20 sps:$4 sm:$0xff]   ;;  %v9370_v63 = vld [vmem:[#allocation2 + $0x60] sm:$0xf] }
  0xed   :  { %1973 = vst [vmem:[#allocation3 + $0x44] sm:$0xf] %v1785_v31  ;;  %1278 = vst [vmem:[#allocation3 + $0x130] sm:$0xf] %v1246_v20  ;;  %v810_v14 = vsel %vm747_vm7, %v8392_v3, %v746_v56  ;;  %v8394_v35 = vld [vmem:[#allocation2 + $0x20] sm:$0xf] }
  0xee   :  { %826 = vst [vmem:[#allocation3 + $0x118] sm:$0xf] %v806_v4  ;;  %827 = vst [vmem:[#allocation3 + $0x12c] sm:$0xf] %v810_v14  ;;  %v8395_v23 = vld [vmem:[#allocation2 + $0x3c] sm:$0x1] }
  0xef   :  { %v1576_v8 = vpop.permute.xlu0 %1575  ;;  %v7012_v15 = vcombine.low %v1291_v12, %v8395_v23  ;;  %v8396_v0 = vld [vmem:[#allocation2 + $0x28] sm:$0xf]  ;;  %v8397_v49 = vld [vmem:[#allocation2 + $0x44] sm:$0x1]  ;;  %v8398_v44 = vld [vmem:[#allocation2 + $0x5c] sm:$0x1] }
  0xf0   :  { %v1613_v17 = vsel %vm747_vm7, %v7010_v50, %v1576_v8  ;;  %v1578_v18 = vpop.permute.xlu1 %1577  ;;  %v7013_v16 = vcombine.low %v1293_v32, %v8397_v49  ;;  %v7014_v39 = vcombine.low %v9368_v38, %v8398_v44  ;;  %v8399_v36 = vld [vmem:[#allocation2 + $0x64] sm:$0x1]  ;;  %v8154_v14 = vld [vmem:[#allocation3 + $0x38] ss:$20 sps:$4 sm:$0xff]   ;;  %v8158_v32 = vld [vmem:[#allocation3 + $0x60] ss:$20 sps:$4 sm:$0xff]  }
  0xf1   :  { %v7046_v40 = vcombine.low %v1613_v17, %v1613_v17  ;;  %v7047_v61 = vcombine.high %v1613_v17, %v1613_v17  ;;  %v1616_v51 = vsel %vm747_vm7, %v7011_v28, %v1578_v18  ;;  %v7015_v22 = vcombine.low %v9370_v63, %v8399_v36  ;;  %v9381_v18 = vld [vmem:[#allocation2 + $0x68] sm:$0xf]  ;;  %v9386_v63 = vld [vmem:[#allocation2 + $0x70] sm:$0xf] }
  0xf2   :  { %v8142_v5 = vld [vmem:[#allocation3 + $0xc] ss:$20 sps:$4 sm:$0xff]   ;;  %v7048_v57 = vcombine.low %v1616_v51, %v1616_v51  ;;  %v7049_v52 = vcombine.high %v1616_v51, %v1616_v51 }
  0xf3   :  { %v1787_v30 = vshrl.u32 %v7046_v40, 16  ;;  %v1790_v62 = vshll.u32 %v7046_v40, 16  ;;  %v1796_v60 = vshll.u32 %v7047_v61, 16  ;;  %v2216_v48 = vpop.permute.xlu0 %2215  ;;  %3172 = vmatprep.mubr.bf16.mxu1 %v8142_v5 }
  0xf4   :  { %v1801_v43 = vshrl.u32 %v7048_v57, 16  ;;  %v1804_v58 = vshll.u32 %v7048_v57, 16  ;;  %v2253_v6 = vsel %vm747_vm7, %v8394_v35, %v2216_v48  ;;  %v2218_v42 = vpop.permute.xlu1 %2217  ;;  %3173 = vmatmul.mubr.bf16.vlgmr.msra.gmra.mxu1 %v8144_v29  ;;  %v8146_v46 = vld [vmem:[#allocation3 + $0x11c] ss:$20 sps:$4 sm:$0xff]   ;;  %v1810_v41 = vshll.u32 %v7049_v52, 16 }
  0xf5   :  { %v1789_v19 = vrot.slane %v1787_v30, 4  ;;  %v1792_v7 = vrot.slane %v1790_v62, 5  ;;  %2309 = vst [vmem:[#allocation3 + $0x34] sm:$0xf] %v2253_v6  ;;  %v2257_v24 = vsel %vm747_vm7, %v8396_v0, %v2218_v42  ;;  %v1798_v55 = vrot.slane %v1796_v60, 5  ;;  %3131 = vmatprep.mubr.bf16.mxu0 %v8146_v46 }
  0xf6   :  { %v1803_v10 = vrot.slane %v1801_v43, 4  ;;  %v1806_v26 = vrot.slane %v1804_v58, 5  ;;  %2310 = vst [vmem:[#allocation3 + $0x48] sm:$0xf] %v2257_v24  ;;  %v8149_v27 = vld [vmem:[#allocation3 + $0x118] ss:$20 sps:$4 sm:$0xff]  }
  0xf7   :  { %v1793_v21 = vor.u32 %v1792_v7, %v1789_v19  ;;  %v1580_v45 = vpop.permute.xlu0 %1579  ;;  %3132 = vmatmul.mubr.bf16.gmra.mxu0 %v8149_v27  ;;  %v1812_v59 = vrot.slane %v1810_v41, 5  ;;  %v8400_v60 = vld [vmem:[#allocation2 + $0x30] sm:$0xf]  ;;  %v8401_v6 = vld [vmem:[#allocation2 + $0x38] sm:$0xf] }
  0xf8   :  { %v1807_v34 = vor.u32 %v1806_v26, %v1803_v10  ;;  %v1619_v2 = vsel %vm747_vm7, %v7012_v15, %v1580_v45  ;;  %v1582_v11 = vpop.permute.xlu1 %1581  ;;  %7914 = vmatprep.mubr.msk.bf16.mxu0 %vm747_vm7, %v8153_v9  ;;  %v8402_v46 = vld [vmem:[#allocation2 + $0x6c] sm:$0x1]  ;;  %v8403_v45 = vld [vmem:[#allocation2 + $0x74] sm:$0x1] }
  0xf9   :  { %v1794_v31 = vrot.slane %v1793_v21, 4  ;;  %v7050_v20 = vcombine.low %v1619_v2, %v1619_v2  ;;  %v7051_v54 = vcombine.high %v1619_v2, %v1619_v2  ;;  %v1622_v4 = vsel %vm747_vm7, %v7013_v16, %v1582_v11 }
  0xfa   :  { %v1808_v56 = vrot.slane %v1807_v34, 4  ;;  %v7052_v50 = vcombine.low %v1622_v4, %v1622_v4  ;;  %v7053_v3 = vcombine.high %v1622_v4, %v1622_v4  ;;  %v7016_v49 = vcombine.low %v9381_v18, %v8402_v46  ;;  %v8174_v46 = vld [vmem:[#allocation3 + $0x100] ss:$20 sps:$4 sm:$0xff]  }
  0xfb   :  { %v1799_v33 = vsel %vm9309_vm13, %v1794_v31, %v1798_v55  ;;  %v1815_v28 = vshrl.u32 %v7050_v20, 16  ;;  %v1818_v8 = vshll.u32 %v7050_v20, 16  ;;  %v1824_v12 = vshll.u32 %v7051_v54, 16  ;;  %v2220_v17 = vpop.permute.xlu0 %2219  ;;  %v9397_v31 = vld [vmem:[#allocation2 + $0x78] sm:$0xf] }
  0xfc   :  { %1974 = vst [vmem:[#allocation3 + $0x58] sm:$0xf] %v1799_v33  ;;  %v1813_v40 = vsel %vm9309_vm13, %v1808_v56, %v1812_v59  ;;  %v1829_v61 = vshrl.u32 %v7052_v50, 16  ;;  %v1832_v51 = vshll.u32 %v7052_v50, 16  ;;  %v1838_v5 = vshll.u32 %v7053_v3, 16  ;;  %v2222_v57 = vpop.permute.xlu1 %2221  ;;  %v2490_v52 = vld [vmem:[#allocation3 + $0x30] sm:$0xff] }
  0xfd   :  { %1975 = vst [vmem:[#allocation3 + $0x6c] sm:$0xf] %v1813_v40  ;;  %v1817_v29 = vrot.slane %v1815_v28, 4  ;;  %v1820_v30 = vrot.slane %v1818_v8, 5  ;;  %v1826_v62 = vrot.slane %v1824_v12, 5  ;;  %v2261_v48 = vsel %vm747_vm7, %v8400_v60, %v2220_v17  ;;  %v2493_v38 = vld [vmem:[#allocation3 + $0x44] sm:$0xff] }
  0xfe   :  { %v8151_v9 = vld [vmem:[#allocation3 + $0x34] ss:$20 sps:$4 sm:$0xff]   ;;  %v1831_v43 = vrot.slane %v1829_v61, 4  ;;  %v1834_v58 = vrot.slane %v1832_v51, 5  ;;  %v1840_v35 = vrot.slane %v1838_v5, 5  ;;  %v2265_v42 = vsel %vm747_vm7, %v8401_v6, %v2222_v57 }
  0xff   :  { %2311 = vst [vmem:[#allocation3 + $0x5c] sm:$0xf] %v2261_v48  ;;  %v1821_v23 = vor.u32 %v1820_v30, %v1817_v29  ;;  %2312 = vst [vmem:[#allocation3 + $0x70] sm:$0xf] %v2265_v42  ;;  %v1584_v15 = vpop.permute.xlu0 %1583  ;;  %3180 = vmatprep.mubr.bf16.mxu1 %v8151_v9  ;;  %v7109_v19 = vcombine.low %v2490_v52, %v2493_v38  ;;  %7915 = vmatmul.mubr.msk.bf16.vlgmr.msra.gmra.mxu0 %vm747_vm7, %v8154_v14  ;;  %v8166_v20 = vld [vmem:[#allocation3 + $0xb0] ss:$20 sps:$4 sm:$0xff]  }
 0x100   :  { %v1835_v7 = vor.u32 %v1834_v58, %v1831_v43  ;;  %v1625_v0 = vsel %vm747_vm7, %v7014_v39, %v1584_v15  ;;  %v1586_v24 = vpop.permute.xlu1 %1585  ;;  %7918 = vmatprep.mubr.msk.bf16.mxu0 %vm747_vm7, %v8158_v32  ;;  %v7017_v34 = vcombine.low %v9386_v63, %v8403_v45  ;;  %v8404_v33 = vld [vmem:[#allocation2 + $0x40] sm:$0xf]  ;;  %v8405_v32 = vld [vmem:[#allocation2 + $0x48] sm:$0xf]  ;;  %v8407_v6 = vld [vmem:[#allocation2 + $0x84] sm:$0x1] }
 0x101   :  { %v1822_v16 = vrot.slane %v1821_v23, 4  ;;  %v7054_v55 = vcombine.low %v1625_v0, %v1625_v0  ;;  %v7055_v10 = vcombine.high %v1625_v0, %v1625_v0  ;;  %v1628_v26 = vsel %vm747_vm7, %v7015_v22, %v1586_v24  ;;  %3181 = vmatmul.mubr.bf16.gmra.mxu1 %v7109_v19  ;;  %v9402_v8 = vld [vmem:[#allocation2 + $0x80] sm:$0xf]  ;;  %v8167_v23 = vld [vmem:[#allocation3 + $0xd8] ss:$20 sps:$4 sm:$0xff]  }
 0x102   :  { %v1836_v41 = vrot.slane %v1835_v7, 4  ;;  %v7056_v27 = vcombine.low %v1628_v26, %v1628_v26  ;;  %v7057_v21 = vcombine.high %v1628_v26, %v1628_v26  ;;  %v7019_v42 = vcombine.low %v9402_v8, %v8407_v6  ;;  %v9414_v24 = vld [vmem:[#allocation2 + $0x88] sm:$0xf] }
 0x103   :  { %v1827_v2 = vsel %vm9309_vm13, %v1822_v16, %v1826_v62  ;;  %v1843_v11 = vshrl.u32 %v7054_v55, 16  ;;  %v1846_v44 = vshll.u32 %v7054_v55, 16  ;;  %v1852_v39 = vshll.u32 %v7055_v10, 16  ;;  %v2224_v36 = vpop.permute.xlu0 %2223  ;;  %v8406_v62 = vld [vmem:[#allocation2 + $0x7c] sm:$0x1] }
 0x104   :  { %1976 = vst [vmem:[#allocation3 + $0x80] sm:$0xf] %v1827_v2  ;;  %v1841_v22 = vsel %vm9309_vm13, %v1836_v41, %v1840_v35  ;;  %v1857_v54 = vshrl.u32 %v7056_v27, 16  ;;  %v1860_v4 = vshll.u32 %v7056_v27, 16  ;;  %v1866_v56 = vshll.u32 %v7057_v21, 16  ;;  %v2226_v59 = vpop.permute.xlu1 %2225  ;;  %v8179_v41 = vld [vmem:[%s10303_s2 + $0x8] sm:$0xff]  }
 0x105   :  { %1977 = vst [vmem:[#allocation3 + $0x94] sm:$0xf] %v1841_v22  ;;  %v1845_v50 = vrot.slane %v1843_v11, 4  ;;  %v1848_v3 = vrot.slane %v1846_v44, 5  ;;  %v1854_v14 = vrot.slane %v1852_v39, 5  ;;  %v2269_v28 = vsel %vm747_vm7, %v8404_v33, %v2224_v36  ;;  %7930 = vmatprep.subr.bf16.mxu1 %v8179_v41 }
 0x106   :  { %v1859_v12 = vrot.slane %v1857_v54, 4  ;;  %v1862_v17 = vrot.slane %v1860_v4, 5  ;;  %v1868_v18 = vrot.slane %v1866_v56, 5  ;;  %2313 = vst [vmem:[#allocation3 + $0x84] sm:$0xf] %v2269_v28  ;;  %v2273_v40 = vsel %vm747_vm7, %v8405_v32, %v2226_v59  ;;  %7931 = vmatpush3.bf16.msra.mxu1 %v8179_v41 }
 0x107   :  { %v8155_v61 = vld [vmem:[#allocation3 + $0x5c] ss:$20 sps:$4 sm:$0xff]   ;;  %v1849_v51 = vor.u32 %v1848_v3, %v1845_v50  ;;  %2314 = vst [vmem:[#allocation3 + $0x98] sm:$0xf] %v2273_v40  ;;  %v1588_v5 = vpop.permute.xlu0 %1587  ;;  %v8157_v57 = vld [vmem:[#allocation3 + $0x58] ss:$20 sps:$4 sm:$0xff]   ;;  %7919 = vmatmul.mubr.msk.bf16.gmra.mxu0 %vm747_vm7, %v9286_v13  ;;  %v7018_v60 = vcombine.low %v9397_v31, %v8406_v62 }
 0x108   :  { %v1863_v52 = vor.u32 %v1862_v17, %v1859_v12  ;;  %v1631_v29 = vsel %vm747_vm7, %v7016_v49, %v1588_v5  ;;  %3188 = vmatprep.mubr.bf16.mxu1 %v8155_v61  ;;  %v1590_v30 = vpop.permute.xlu1 %1589  ;;  %7922 = vmatprep.mubr.msk.bf16.mxu0 %vm747_vm7, %v8166_v20  ;;  %v9422_v11 = vld [vmem:[#allocation2 + $0x90] sm:$0xf]  ;;  %v8409_v31 = vld [vmem:[#allocation2 + $0x68] sm:$0xf]  ;;  %v8411_v61 = vld [vmem:[#allocation2 + $0x94] sm:$0x1] }
 0x109   :  { %v1850_v48 = vrot.slane %v1849_v51, 4  ;;  %v7058_v38 = vcombine.low %v1631_v29, %v1631_v29  ;;  %v7059_v9 = vcombine.high %v1631_v29, %v1631_v29  ;;  %v1634_v63 = vsel %vm747_vm7, %v7017_v34, %v1590_v30  ;;  %3189 = vmatmul.mubr.bf16.gmra.mxu1 %v8157_v57  ;;  %v8408_v34 = vld [vmem:[#allocation2 + $0x60] sm:$0xf] }
 0x10a   :  { %v1864_v43 = vrot.slane %v1863_v52, 4  ;;  %v7060_v58 = vcombine.low %v1634_v63, %v1634_v63  ;;  %v7061_v35 = vcombine.high %v1634_v63, %v1634_v63  ;;  %v7021_v51 = vcombine.low %v9422_v11, %v8411_v61 }
 0x10b   :  { %v1855_v13 = vsel %vm9309_vm13, %v1850_v48, %v1854_v14  ;;  %v1871_v15 = vshrl.u32 %v7058_v38, 16  ;;  %v1874_v19 = vshll.u32 %v7058_v38, 16  ;;  %v1880_v7 = vshll.u32 %v7059_v9, 16  ;;  %v2228_v0 = vpop.permute.xlu0 %2227  ;;  %v8410_v14 = vld [vmem:[#allocation2 + $0x8c] sm:$0x1] }
 0x10c   :  { %1978 = vst [vmem:[#allocation3 + $0xa8] sm:$0xf] %v1855_v13  ;;  %v1869_v49 = vsel %vm9309_vm13, %v1864_v43, %v1868_v18  ;;  %v1885_v16 = vshrl.u32 %v7060_v58, 16  ;;  %v1888_v55 = vshll.u32 %v7060_v58, 16  ;;  %v1894_v10 = vshll.u32 %v7061_v35, 16  ;;  %v2230_v26 = vpop.permute.xlu1 %2229 }
 0x10d   :  { %1979 = vst [vmem:[#allocation3 + $0xbc] sm:$0xf] %v1869_v49  ;;  %v1873_v27 = vrot.slane %v1871_v15, 4  ;;  %v1876_v21 = vrot.slane %v1874_v19, 5  ;;  %v1882_v45 = vrot.slane %v1880_v7, 5  ;;  %v2277_v2 = vsel %vm747_vm7, %v8408_v34, %v2228_v0 }
 0x10e   :  { %v1887_v44 = vrot.slane %v1885_v16, 4  ;;  %v1890_v39 = vrot.slane %v1888_v55, 5  ;;  %v1896_v36 = vrot.slane %v1894_v10, 5  ;;  %2315 = vst [vmem:[#allocation3 + $0xac] sm:$0xf] %v2277_v2  ;;  %v2281_v20 = vsel %vm747_vm7, %v8409_v31, %v2230_v26 }
 0x10f   :  { %v8160_v22 = vld [vmem:[#allocation3 + $0x84] ss:$20 sps:$4 sm:$0xff]   ;;  %v1877_v54 = vor.u32 %v1876_v21, %v1873_v27  ;;  %2316 = vst [vmem:[#allocation3 + $0xc0] sm:$0xf] %v2281_v20  ;;  %v1592_v4 = vpop.permute.xlu0 %1591  ;;  %v8162_v56 = vld [vmem:[#allocation3 + $0x80] ss:$20 sps:$4 sm:$0xff]   ;;  %v7020_v33 = vcombine.low %v9414_v24, %v8410_v14  ;;  %7923 = vmatmul.mubr.msk.bf16.gmra.mxu0 %vm747_vm7, %v8167_v23 }
 0x110   :  { %v1891_v59 = vor.u32 %v1890_v39, %v1887_v44  ;;  %v1637_v50 = vsel %vm747_vm7, %v7018_v60, %v1592_v4  ;;  %3196 = vmatprep.mubr.bf16.mxu1 %v8160_v22  ;;  %v1594_v3 = vpop.permute.xlu1 %1593  ;;  %7926 = vmatprep.mubr.msk.bf16.mxu0 %vm747_vm7, %v8174_v46  ;;  %v8412_v35 = vld [vmem:[#allocation2 + $0x70] sm:$0xf]  ;;  %v8413_v15 = vld [vmem:[#allocation2 + $0x78] sm:$0xf] }
 0x111   :  { %v1878_v28 = vrot.slane %v1877_v54, 4  ;;  %v7062_v8 = vcombine.low %v1637_v50, %v1637_v50  ;;  %v7063_v12 = vcombine.high %v1637_v50, %v1637_v50  ;;  %v1640_v17 = vsel %vm747_vm7, %v7019_v42, %v1594_v3  ;;  %3197 = vmatmul.mubr.bf16.gmra.mxu1 %v8162_v56 }
 0x112   :  { %v1892_v18 = vrot.slane %v1891_v59, 4  ;;  %v7064_v32 = vcombine.low %v1640_v17, %v1640_v17  ;;  %v7065_v40 = vcombine.high %v1640_v17, %v1640_v17 }
 0x113   :  { %v1883_v5 = vsel %vm9309_vm13, %v1878_v28, %v1882_v45  ;;  %v1899_v57 = vshrl.u32 %v7062_v8, 16  ;;  %v1902_v52 = vshll.u32 %v7062_v8, 16  ;;  %v1908_v29 = vshll.u32 %v7063_v12, 16  ;;  %v2232_v30 = vpop.permute.xlu0 %2231 }
 0x114   :  { %1980 = vst [vmem:[#allocation3 + $0xd0] sm:$0xf] %v1883_v5  ;;  %v1897_v62 = vsel %vm9309_vm13, %v1892_v18, %v1896_v36  ;;  %v1913_v60 = vshrl.u32 %v7064_v32, 16  ;;  %v1916_v48 = vshll.u32 %v7064_v32, 16  ;;  %v1922_v38 = vshll.u32 %v7065_v40, 16  ;;  %v2234_v9 = vpop.permute.xlu1 %2233 }
 0x115   :  { %1981 = vst [vmem:[#allocation3 + $0xe4] sm:$0xf] %v1897_v62  ;;  %v1901_v63 = vrot.slane %v1899_v57, 4  ;;  %v1904_v43 = vrot.slane %v1902_v52, 5  ;;  %v1910_v58 = vrot.slane %v1908_v29, 5  ;;  %v2285_v6 = vsel %vm747_vm7, %v8412_v35, %v2232_v30 }
 0x116   :  { %v1915_v42 = vrot.slane %v1913_v60, 4  ;;  %v1918_v23 = vrot.slane %v1916_v48, 5  ;;  %v1924_v13 = vrot.slane %v1922_v38, 5  ;;  %2317 = vst [vmem:[#allocation3 + $0xd4] sm:$0xf] %v2285_v6  ;;  %v2289_v19 = vsel %vm747_vm7, %v8413_v15, %v2234_v9 }
 0x117   :  { %v8163_v7 = vld [vmem:[#allocation3 + $0xac] ss:$20 sps:$4 sm:$0xff]   ;;  %v1905_v0 = vor.u32 %v1904_v43, %v1901_v63  ;;  %2318 = vst [vmem:[#allocation3 + $0xe8] sm:$0xf] %v2289_v19  ;;  %v1596_v24 = vpop.permute.xlu0 %1595  ;;  %v8165_v46 = vld [vmem:[#allocation3 + $0xa8] ss:$20 sps:$4 sm:$0xff]   ;;  %7927 = vmatmul.mubr.msk.bf16.gmra.mxu0 %vm747_vm7, %v9357_v47 }
 0x118   :  { %v1919_v49 = vor.u32 %v1918_v23, %v1915_v42  ;;  %v1643_v16 = vsel %vm747_vm7, %v7020_v33, %v1596_v24  ;;  %3204 = vmatprep.mubr.bf16.mxu1 %v8163_v7  ;;  %v1598_v55 = vpop.permute.xlu1 %1597 }
 0x119   :  { %8 = vsyncpa [#allocation5], 0  ;;  %v1906_v10 = vrot.slane %v1905_v0, 4  ;;  %v7066_v26 = vcombine.low %v1643_v16, %v1643_v16  ;;  %v7067_v41 = vcombine.high %v1643_v16, %v1643_v16  ;;  %v1646_v27 = vsel %vm747_vm7, %v7021_v51, %v1598_v55  ;;  %3205 = vmatmul.mubr.bf16.gmra.mxu1 %v8165_v46  ;;  %v8414_v59 = vld [vmem:[#allocation2 + $0x80] sm:$0xf] }
 0x11a   :  { %v1920_v21 = vrot.slane %v1919_v49, 4  ;;  %v7068_v45 = vcombine.low %v1646_v27, %v1646_v27  ;;  %v7069_v34 = vcombine.high %v1646_v27, %v1646_v27  ;;  %v8415_v33 = vld [vmem:[#allocation2 + $0x88] sm:$0xf]  ;;  %v8416_v51 = vld [vmem:[#allocation2 + $0x90] sm:$0xf]  ;;  %vm3374_vm14 = vcmask 261120  }
 0x11b   :  { %v1911_v2 = vsel %vm9309_vm13, %v1906_v10, %v1910_v58  ;;  %v1927_v11 = vshrl.u32 %v7066_v26, 16  ;;  %v1930_v44 = vshll.u32 %v7066_v26, 16  ;;  %v1936_v39 = vshll.u32 %v7067_v41, 16  ;;  %v2236_v36 = vpop.permute.xlu0 %2235  ;;  %v8417_v29 = vld [vmem:[#allocation2 + $0x98] sm:$0xf]  ;;  %v8180_v58 = vld [vmem:[%s10303_s2] sm:$0xff]  }
 0x11c   :  { %1982 = vst [vmem:[#allocation3 + $0xf8] sm:$0xf] %v1911_v2  ;;  %v1925_v47 = vsel %vm9309_vm13, %v1920_v21, %v1924_v13  ;;  %v1941_v31 = vshrl.u32 %v7068_v45, 16  ;;  %v1944_v20 = vshll.u32 %v7068_v45, 16  ;;  %v1950_v22 = vshll.u32 %v7069_v34, 16  ;;  %v2238_v54 = vpop.permute.xlu1 %2237  ;;  %7932 = vmatprep.subr.bf16.mxu1 %v8180_v58  ;;  %v8282_v37 = vld [vmem:[%s10302_s1 + $0x1c0] sm:$0xff]  }
 0x11d   :  { %1983 = vst [vmem:[#allocation3 + $0x10c] sm:$0xf] %v1925_v47  ;;  %v1929_v4 = vrot.slane %v1927_v11, 4  ;;  %v1932_v56 = vrot.slane %v1930_v44, 5  ;;  %v2293_v50 = vsel %vm747_vm7, %v8414_v59, %v2236_v36  ;;  %v2297_v28 = vsel %vm747_vm7, %v8415_v33, %v2238_v54  ;;  %v8170_v18 = vld [vmem:[#allocation3 + $0xd0] ss:$20 sps:$4 sm:$0xff]   ;;  %7933 = vmatpush3.bf16.msra.mxu1 %v8180_v58 }
 0x11e   :  { %v1943_v3 = vrot.slane %v1941_v31, 4  ;;  %v1946_v14 = vrot.slane %v1944_v20, 5  ;;  %2319 = vst [vmem:[#allocation3 + $0xfc] sm:$0xf] %v2293_v50  ;;  %v8168_v8 = vld [vmem:[#allocation3 + $0xd4] ss:$20 sps:$4 sm:$0xff]  }
 0x11f   :  { %v1933_v12 = vor.u32 %v1932_v56, %v1929_v4  ;;  %v1938_v17 = vrot.slane %v1936_v39, 5  ;;  %2320 = vst [vmem:[#allocation3 + $0x110] sm:$0xf] %v2297_v28  ;;  %v2240_v32 = vpop.permute.xlu0 %2239  ;;  %v1952_v61 = vrot.slane %v1950_v22, 5  ;;  %3212 = vmatprep.mubr.bf16.mxu1 %v8168_v8 }
 0x120   :  { %v1947_v40 = vor.u32 %v1946_v14, %v1943_v3  ;;  %v2301_v5 = vsel %vm747_vm7, %v8416_v51, %v2240_v32  ;;  %v2242_v57 = vpop.permute.xlu1 %2241 }
 0x121   :  { %v1934_v52 = vrot.slane %v1933_v12, 4  ;;  %3213 = vmatmul.mubr.bf16.gmra.mxu1 %v8170_v18  ;;  %2321 = vst [vmem:[#allocation3 + $0x124] sm:$0xf] %v2301_v5  ;;  %v2305_v30 = vsel %vm747_vm7, %v8417_v29, %v2242_v57 }
 0x122   :  { %v1948_v62 = vrot.slane %v1947_v40, 4  ;;  %2322 = vst [vmem:[#allocation3 + $0x138] sm:$0xf] %v2305_v30 }
 0x123   :  { %v1939_v60 = vsel %vm9309_vm13, %v1934_v52, %v1938_v17 }
 0x124   :  { %1984 = vst [vmem:[#allocation3 + $0x120] sm:$0xf] %v1939_v60  ;;  %v1953_v48 = vsel %vm9309_vm13, %v1948_v62, %v1952_v61  ;;  %v8173_v9 = vld [vmem:[#allocation3 + $0xf8] ss:$20 sps:$4 sm:$0xff]  }
 0x125   :  { %1985 = vst [vmem:[#allocation3 + $0x134] sm:$0xf] %v1953_v48 }
 0x126   :  { %v8171_v38 = vld [vmem:[#allocation3 + $0xfc] ss:$20 sps:$4 sm:$0xff]  }
 0x127   :  { %3220 = vmatprep.mubr.bf16.mxu1 %v8171_v38 }
 0x129   :  { %3221 = vmatmul.mubr.bf16.gmra.mxu1 %v8173_v9  ;;  %v8176_v63 = vld [vmem:[#allocation3 + $0x124] ss:$20 sps:$4 sm:$0xff]  }
 0x12a   :  { %3228 = vmatprep.mubr.bf16.mxu1 %v8176_v63 }
 0x12c   :  { %v8178_v43 = vld [vmem:[#allocation3 + $0x120] ss:$20 sps:$4 sm:$0xff]  }
 0x131   :  { %3229 = vmatmul.mubr.bf16.gmra.mxu1 %v8178_v43 }
 0x175   :  { %v7622_v35 = vpop.f32.mrf.mxu0 }
 0x177   :  { %v7623_v6 = vpop.f32.mrf.mxu0 }
 0x178   :  { %v7624_v42 = vadd.f32 %v7623_v6, %v7622_v35 }
 0x179   :  { %v7625_v23 = vpop.f32.mrf.mxu0 }
 0x17b   :  { %v7626_v13 = vpop.f32.mrf.mxu0 }
 0x17c   :  { %v7627_v18 = vadd.f32 %v7626_v13, %v7625_v23 }
 0x17d   :  { %v7628_v15 = vpop.f32.mrf.mxu0 }
 0x17f   :  { %v7629_v19 = vpop.f32.mrf.mxu0 }
 0x180   :  { %v7630_v61 = vadd.f32 %v7629_v19, %v7628_v15 }
 0x181   :  { %v7631_v7 = vpop.f32.mrf.mxu0 }
 0x183   :  { %v7632_v0 = vpop.f32.mrf.mxu0 }
 0x184   :  { %v7633_v38 = vadd.f32 %v7632_v0, %v7631_v7 }
 0x185   :  { %v7634_v24 = vpop.f32.mrf.mxu0 }
 0x187   :  { %v7635_v46 = vpop.f32.mrf.mxu0 }
 0x188   :  { %v7636_v19 = vadd.f32 %v7635_v46, %v7634_v24 }
 0x189   :  { %v9456_v49 = vpop.f32.mrf.mxu0 }
 0x18b   :  { %v9458_v16 = vpop.f32.mrf.mxu0 }
 0x18d   :  { %v9460_v55 = vpop.f32.mrf.mxu0 }
 0x18f   :  { %v9462_v10 = vpop.f32.mrf.mxu0 }
 0x191   :  { %v9464_v26 = vpop.f32.mrf.mxu0 }
 0x193   :  { %v9466_v41 = vpop.f32.mrf.mxu0 }
 0x195   :  { %v9468_v27 = vpop.f32.mrf.mxu0 }
 0x197   :  { %v9470_v21 = vpop.f32.mrf.mxu0 }
 0x199   :  { %v9472_v45 = vpop.f32.mrf.mxu0 }
 0x19b   :  { %v9474_v34 = vpop.f32.mrf.mxu0 }
 0x19d   :  { %v9476_v2 = vpop.f32.mrf.mxu0 }
 0x19f   :  { %v9478_v11 = vpop.f32.mrf.mxu0 }
 0x1a1   :  { %v9480_v44 = vpop.f32.mrf.mxu0 }
 0x1a3   :  { %v9482_v39 = vpop.f32.mrf.mxu0 }
 0x1a9   :  { %v9484_v36 = vpop.f32.mrf.mxu0 }
 0x1ab   :  { %v9486_v47 = vpop.f32.mrf.mxu0 }
 0x1ad   :  { %v9488_v31 = vpop.f32.mrf.mxu0 }
 0x1af   :  { %v9490_v22 = vpop.f32.mrf.mxu0 }
 0x1b4   :  { %v7686_v20 = vpop.f32.mrf.mxu1 }
 0x1b6   :  { %v7687_v54 = vpop.f32.mrf.mxu1 }
 0x1b7   :  { %v9492_v4 = vpop.f32.mrf.mxu0  ;;  %v7688_v33 = vadd.f32 %v7687_v54, %v7686_v20 }
 0x1b8   :  { %v7689_v56 = vpop.f32.mrf.mxu1 }
 0x1b9   :  { %v9494_v59 = vpop.f32.mrf.mxu0  ;;  %v3175_v40 = vadd.f32 %v7688_v33, %v7624_v42 }
 0x1ba   :  { %v7690_v3 = vpop.f32.mrf.mxu1 }
 0x1bb   :  { %v9496_v50 = vpop.f32.mrf.mxu0  ;;  %v7691_v8 = vadd.f32 %v7690_v3, %v7689_v56 }
 0x1bd   :  { %v9498_v14 = vpop.f32.mrf.mxu0  ;;  %v3178_v29 = vadd.f32 %v7691_v8, %v7627_v18 }
 0x1bf   :  { %v7916_v28 = vpop.f32.mrf.mxu0 }
 0x1c1   :  { %v7692_v12 = vpop.f32.mrf.mxu1  ;;  %v3271_v17 = vpop.f32.mrf.mxu0 }
 0x1c2   :  { %v3272_v57 = vadd.f32 %v3271_v17, %v3175_v40 }
 0x1c3   :  { %v7693_v32 = vpop.f32.mrf.mxu1  ;;  %v7917_v5 = vpop.f32.mrf.mxu0 }
 0x1c4   :  { %v7694_v51 = vadd.f32 %v7693_v32, %v7692_v12  ;;  %v3334_v43 = vmax.f32 %v3272_v57, 0.0  ;;  %v7639_v12 = vadd.f32 %v9458_v16, %v9456_v49  ;;  %v7645_v16 = vadd.f32 %v9466_v41, %v9464_v26 }
 0x1c5   :  { %v7695_v52 = vpop.f32.mrf.mxu1  ;;  %v3274_v62 = vpop.f32.mrf.mxu0  ;;  %v7651_v41 = vadd.f32 %v9474_v34, %v9472_v45  ;;  %v7657_v34 = vadd.f32 %v9482_v39, %v9480_v44  ;;  %v7663_v39 = vadd.f32 %v9490_v22, %v9488_v31  ;;  %v7669_v31 = vadd.f32 %v9498_v14, %v9496_v50 }
 0x1c6   :  { %v3183_v30 = vadd.f32 %v7694_v51, %v7630_v61  ;;  %v3275_v48 = vadd.f32 %v3274_v62, %v3178_v29  ;;  %v7642_v61 = vadd.f32 %v9462_v10, %v9460_v55  ;;  %v7648_v10 = vadd.f32 %v9470_v21, %v9468_v27 }
 0x1c7   :  { %v7696_v60 = vpop.f32.mrf.mxu1  ;;  %v7920_v63 = vpop.f32.mrf.mxu0  ;;  %v7654_v21 = vadd.f32 %v9478_v11, %v9476_v2  ;;  %v7660_v11 = vadd.f32 %v9486_v47, %v9484_v36  ;;  %v7666_v47 = vadd.f32 %v9494_v59, %v9492_v4  ;;  %v3832_v59 = vld [vmem:[#allocation2] sm:$0xf] }
 0x1c8   :  { %v7697_v9 = vadd.f32 %v7696_v60, %v7695_v52  ;;  %v3335_v58 = vmax.f32 %v3275_v48, 0.0  ;;  %v3280_v6 = vadd.f32 %v7916_v28, %v3183_v30 }
 0x1c9   :  { %v7698_v35 = vpop.f32.mrf.mxu1  ;;  %v3287_v42 = vpop.f32.mrf.mxu0 }
 0x1ca   :  { %v3186_v23 = vadd.f32 %v7697_v9, %v7633_v38  ;;  %v3350_v13 = vpack.c.bf16 %v3335_v58, %v3334_v43  ;;  %v3336_v33 = vmax.f32 %v3280_v6, 0.0 }
 0x1cb   :  { %v7699_v15 = vpop.f32.mrf.mxu1  ;;  %v7921_v3 = vpop.f32.mrf.mxu0 }
 0x1cc   :  { %v3283_v20 = vadd.f32 %v7917_v5, %v3186_v23  ;;  %v7700_v54 = vadd.f32 %v7699_v15, %v7698_v35  ;;  %7934 = vmatprep.mubr.msk.bf16.mxu1 %vm3374_vm14, %v3350_v13 }
 0x1cd   :  { %v7701_v56 = vpop.f32.mrf.mxu1  ;;  %v3290_v32 = vpop.f32.mrf.mxu0 }
 0x1ce   :  { %v3337_v7 = vmax.f32 %v3283_v20, 0.0  ;;  %v3191_v0 = vadd.f32 %v7700_v54, %v7636_v19 }
 0x1cf   :  { %v7702_v8 = vpop.f32.mrf.mxu1  ;;  %v7924_v52 = vpop.f32.mrf.mxu0 }
 0x1d0   :  { %v3351_v28 = vpack.c.bf16 %v3337_v7, %v3336_v33  ;;  %v7703_v17 = vadd.f32 %v7702_v8, %v7701_v56  ;;  %v3288_v40 = vadd.f32 %v3287_v42, %v3191_v0 }
 0x1d1   :  { %v7704_v18 = vpop.f32.mrf.mxu1  ;;  %v3303_v9 = vpop.f32.mrf.mxu0 }
 0x1d2   :  { %7935 = vmatmul.mubr.msk.bf16.vlgmr.msra.gmra.mxu1 %vm3374_vm14, %v3351_v28  ;;  %v3194_v24 = vadd.f32 %v7703_v17, %v7639_v12  ;;  %v3338_v29 = vmax.f32 %v3288_v40, 0.0 }
 0x1d3   :  { %v7705_v46 = vpop.f32.mrf.mxu1  ;;  %v7925_v42 = vpop.f32.mrf.mxu0 }
 0x1d4   :  { %v7706_v51 = vadd.f32 %v7705_v46, %v7704_v18  ;;  %v3291_v5 = vadd.f32 %v3290_v32, %v3194_v24 }
 0x1d5   :  { %v7707_v57 = vpop.f32.mrf.mxu1  ;;  %v3306_v56 = vpop.f32.mrf.mxu0 }
 0x1d6   :  { %v3199_v30 = vadd.f32 %v7706_v51, %v7642_v61  ;;  %v3339_v62 = vmax.f32 %v3291_v5, 0.0 }
 0x1d7   :  { %v7708_v49 = vpop.f32.mrf.mxu1  ;;  %v7928_v12 = vpop.f32.mrf.mxu0 }
 0x1d8   :  { %v3352_v60 = vpack.c.bf16 %v3339_v62, %v3338_v29  ;;  %v7709_v48 = vadd.f32 %v7708_v49, %v7707_v57  ;;  %v3296_v43 = vadd.f32 %v7920_v63, %v3199_v30 }
 0x1d9   :  { %v7710_v38 = vpop.f32.mrf.mxu1  ;;  %v3319_v46 = vpop.f32.mrf.mxu0 }
 0x1da   :  { %v3202_v58 = vadd.f32 %v7709_v48, %v7645_v16  ;;  %7938 = vmatprep.mubr.msk.bf16.mxu1 %vm3374_vm14, %v3352_v60  ;;  %v3340_v13 = vmax.f32 %v3296_v43, 0.0 }
 0x1db   :  { %v7711_v55 = vpop.f32.mrf.mxu1  ;;  %v7929_v30 = vpop.f32.mrf.mxu0 }
 0x1dc   :  { %v3299_v35 = vadd.f32 %v7921_v3, %v3202_v58  ;;  %v7712_v6 = vadd.f32 %v7711_v55, %v7710_v38 }
 0x1dd   :  { %v7713_v23 = vpop.f32.mrf.mxu1  ;;  %v3322_v38 = vpop.f32.mrf.mxu0 }
 0x1de   :  { %v3341_v15 = vmax.f32 %v3299_v35, 0.0  ;;  %v3207_v19 = vadd.f32 %v7712_v6, %v7648_v10 }
 0x1df   :  { %v7714_v26 = vpop.f32.mrf.mxu1 }
 0x1e0   :  { %v3353_v20 = vpack.c.bf16 %v3341_v15, %v3340_v13  ;;  %v7715_v63 = vadd.f32 %v7714_v26, %v7713_v23  ;;  %v3304_v33 = vadd.f32 %v3303_v9, %v3207_v19 }
 0x1e1   :  { %v7716_v54 = vpop.f32.mrf.mxu1 }
 0x1e2   :  { %7939 = vmatmul.mubr.msk.bf16.gmra.mxu1 %vm3374_vm14, %v3353_v20  ;;  %v3210_v7 = vadd.f32 %v7715_v63, %v7651_v41  ;;  %v3342_v28 = vmax.f32 %v3304_v33, 0.0  ;;  %v3848_v63 = vld [vmem:[#allocation2 + $0x4] sm:$0x1]  ;;  %v9530_v33 = vld [vmem:[#allocation2 + $0x50] sm:$0xf] }
 0x1e3   :  { %v7717_v27 = vpop.f32.mrf.mxu1 }
 0x1e4   :  { %v7718_v3 = vadd.f32 %v7717_v27, %v7716_v54  ;;  %v3307_v0 = vadd.f32 %v3306_v56, %v3210_v7  ;;  %v7212_v54 = vcombine.low %v3832_v59, %v3848_v63  ;;  %v3856_v7 = vld [vmem:[#allocation2 + $0x54] sm:$0x1] }
 0x1e5   :  { %v7719_v8 = vpop.f32.mrf.mxu1  ;;  %v7220_v27 = vcombine.low %v9530_v33, %v3856_v7 }
 0x1e6   :  { %v3215_v17 = vadd.f32 %v7718_v3, %v7654_v21  ;;  %v3343_v18 = vmax.f32 %v3307_v0, 0.0  ;;  %v3947_v56 = vshll.u32 %v7212_v54, 16  ;;  %v3945_v50 = vshrl.u32 %v7212_v54, 16 }
 0x1e7   :  { %v7720_v45 = vpop.f32.mrf.mxu1  ;;  %v4003_v3 = vshll.u32 %v7220_v27, 16  ;;  %v4001_v0 = vshrl.u32 %v7220_v27, 16  ;;  %v3742_v27 = vld [vmem:[#allocation2 + $0x10] sm:$0xf] }
 0x1e8   :  { %v3354_v32 = vpack.c.bf16 %v3343_v18, %v3342_v28  ;;  %v7721_v40 = vadd.f32 %v7720_v45, %v7719_v8  ;;  %v3312_v61 = vadd.f32 %v7924_v52, %v3215_v17  ;;  %v3949_v14 = vrot.slane %v3947_v56, 1  ;;  %v8418_v17 = vld [vmem:[%s10301_s0 + $0x10] sm:$0xff] }
 0x1e9   :  { %v7722_v24 = vpop.f32.mrf.mxu1  ;;  %v4005_v8 = vrot.slane %v4003_v3, 1 }
 0x1ea   :  { %v3218_v51 = vadd.f32 %v7721_v40, %v7657_v34  ;;  %7942 = vmatprep.mubr.msk.bf16.mxu1 %vm3374_vm14, %v3354_v32  ;;  %v3344_v62 = vmax.f32 %v3312_v61, 0.0  ;;  %v3950_v21 = vor.u32 %v3949_v14, %v3945_v50  ;;  %v8419_v32 = vld [vmem:[%s10301_s0] sm:$0xff] }
 0x1eb   :  { %v7723_v2 = vpop.f32.mrf.mxu1 }
 0x1ec   :  { %v3315_v5 = vadd.f32 %v7925_v42, %v3218_v51  ;;  %v7724_v57 = vadd.f32 %v7723_v2, %v7722_v24  ;;  %4056 = vrot.lane.b32.xlu0 %v3950_v21, %s8503_s28  ;;  %v8420_v51 = vld [vmem:[%s10301_s0 + $0x18] sm:$0xff]  ;;  %v3745_v21 = vld [vmem:[#allocation2 + $0x14] sm:$0x1] }
 0x1ed   :  { %v7725_v29 = vpop.f32.mrf.mxu1 }
 0x1ee   :  { %v3345_v49 = vmax.f32 %v3315_v5, 0.0  ;;  %v3223_v16 = vadd.f32 %v7724_v57, %v7660_v11 }
 0x1ef   :  { %v7726_v44 = vpop.f32.mrf.mxu1 }
 0x1f0   :  { %v3355_v60 = vpack.c.bf16 %v3345_v49, %v3344_v62  ;;  %v7727_v52 = vadd.f32 %v7726_v44, %v7725_v29  ;;  %v3320_v9 = vadd.f32 %v3319_v46, %v3223_v16 }
 0x1f1   :  { %v7728_v48 = vpop.f32.mrf.mxu1 }
 0x1f2   :  { %7943 = vmatmul.mubr.msk.bf16.gmra.mxu1 %vm3374_vm14, %v3355_v60  ;;  %v3226_v43 = vadd.f32 %v7727_v52, %v7663_v39  ;;  %v3346_v35 = vmax.f32 %v3320_v9, 0.0  ;;  %v3748_v60 = vld [vmem:[#allocation2 + $0x18] sm:$0xf]  ;;  %v3751_v52 = vld [vmem:[#allocation2 + $0x1c] sm:$0x1] }
 0x1f3   :  { %v7729_v36 = vpop.f32.mrf.mxu1 }
 0x1f4   :  { %v7730_v58 = vadd.f32 %v7729_v36, %v7728_v48  ;;  %v3323_v55 = vadd.f32 %v3322_v38, %v3226_v43 }
 0x1f5   :  { %v7731_v10 = vpop.f32.mrf.mxu1 }
 0x1f6   :  { %v3231_v6 = vadd.f32 %v7730_v58, %v7666_v47  ;;  %v3347_v23 = vmax.f32 %v3323_v55, 0.0  ;;  %v3736_v58 = vld [vmem:[#allocation2 + $0x8] sm:$0xf]  ;;  %v3739_v55 = vld [vmem:[#allocation2 + $0xc] sm:$0x1] }
 0x1f7   :  { %v7732_v42 = vpop.f32.mrf.mxu1 }
 0x1f8   :  { %v3356_v22 = vpack.c.bf16 %v3347_v23, %v3346_v35  ;;  %v7733_v13 = vadd.f32 %v7732_v42, %v7731_v10  ;;  %v3328_v15 = vadd.f32 %v7928_v12, %v3231_v6  ;;  %v4006_v12 = vor.u32 %v4005_v8, %v4001_v0 }
 0x1fa   :  { %v3234_v19 = vadd.f32 %v7733_v13, %v7669_v31  ;;  %7946 = vmatprep.mubr.msk.bf16.mxu1 %vm3374_vm14, %v3356_v22  ;;  %v3348_v41 = vmax.f32 %v3328_v15, 0.0  ;;  %4072 = vrot.lane.b32.xlu0 %v4006_v12, %s8503_s28 }
 0x1fc   :  { %v3331_v26 = vadd.f32 %v7929_v30, %v3234_v19  ;;  %v8421_v30 = vld [vmem:[%s10301_s0 + $0x8] sm:$0xff] }
 0x1fe   :  { %v3349_v20 = vmax.f32 %v3331_v26, 0.0 }
 0x200   :  { %v3357_v4 = vpack.c.bf16 %v3349_v20, %v3348_v41  ;;  %v3754_v20 = vld [vmem:[#allocation2 + $0x20] sm:$0xf] }
 0x202   :  { %7947 = vmatmul.mubr.msk.bf16.gmra.mxu1 %vm3374_vm14, %v3357_v4  ;;  %v3757_v4 = vld [vmem:[#allocation2 + $0x24] sm:$0x1] }
 0x25e   :  { %v4057_v35 = vpop.permute.xlu0 %4056 }
 0x25f   :  { %v4090_v19 = vsel %vm747_vm7, %v3832_v59, %v4057_v35  ;;  %v8422_v59 = vld [vmem:[%s10301_s0 + $0x30] sm:$0xff]  ;;  %v8244_v35 = vld [vmem:[%s10302_s1 + $0x158] sm:$0xff]  }
 0x260   :  { %4152 = vst [vmem:[#allocation3] sm:$0xf] %v4090_v19 }
 0x26c   :  { %v4073_v14 = vpop.permute.xlu0 %4072 }
 0x26d   :  { %v4122_v0 = vsel %vm747_vm7, %v9530_v33, %v4073_v14 }
 0x26e   :  { %4160 = vst [vmem:[#allocation3 + $0xa0] sm:$0xf] %v4122_v0  ;;  %v8249_v0 = vld [vmem:[%s10302_s1 + $0x150] sm:$0xff]  }
 0x292   :  { %v7936_v28 = vpop.f32.mrf.mxu1 }
 0x293   :  { %v9538_v18 = vadd.f32 %v8418_v17, %v7936_v28 }
 0x294   :  { %v3433_v45 = vpop.f32.mrf.mxu1 }
 0x295   :  { %10331 = vst [vmem:[#allocation7_spill] sm:$0xff] %v9538_v18  ;;  %v3514_v34 = vmax.f32 %v9538_v18, 0.0  ;;  %v9544_v40 = vadd.f32 %v8419_v32, %v3433_v45  ;;  %v8423_v32 = vld [vmem:[%s10301_s0 + $0x20] sm:$0xff] }
 0x296   :  { %v7937_v24 = vpop.f32.mrf.mxu1 }
 0x297   :  { %10332 = vst [vmem:[#allocation8_spill] sm:$0xff] %v9544_v40  ;;  %v7592_v46 = vpack.c.bf16 %v3514_v34, %v3514_v34  ;;  %v3512_v61 = vmax.f32 %v9544_v40, 0.0  ;;  %v9550_v2 = vadd.f32 %v8420_v51, %v7937_v24  ;;  %v8241_v51 = vld [vmem:[%s10302_s1 + $0x198] sm:$0xff]  }
 0x298   :  { %v3436_v11 = vpop.f32.mrf.mxu1  ;;  %7756 = vmatprep.subr.bf16.mxu0 %v8241_v51 }
 0x299   :  { %10333 = vst [vmem:[#allocation9_spill] sm:$0xff] %v9550_v2  ;;  %v3593_v5 = vshrl.u32 %v7592_v46, 16  ;;  %v7590_v57 = vpack.c.bf16 %v3512_v61, %v3512_v61  ;;  %v3515_v29 = vmax.f32 %v9550_v2, 0.0  ;;  %v9556_v62 = vadd.f32 %v8421_v30, %v3436_v11  ;;  %7757 = vmatpush3.bf16.msra.mxu0 %v8244_v35 }
 0x29a   :  { %v3596_v16 = vshll.u32 %v7592_v46, 16 }
 0x29b   :  { %10334 = vst [vmem:[#allocation10_spill] sm:$0xff] %v9556_v62  ;;  %v3595_v49 = vrot.slane %v3593_v5, 7  ;;  %v3577_v44 = vshrl.u32 %v7590_v57, 16  ;;  %v7593_v39 = vpack.c.bf16 %v3515_v29, %v3515_v29  ;;  %v3580_v48 = vshll.u32 %v7590_v57, 16  ;;  %v8424_v57 = vld [vmem:[%s10301_s0 + $0x38] sm:$0xff] }
 0x29c   :  { %v3513_v38 = vmax.f32 %v9556_v62, 0.0 }
 0x29d   :  { %v3598_v9 = vor.u32 %v3596_v16, %v3595_v49  ;;  %v3599_v43 = vrot.slane %v3595_v49, 4  ;;  %v3579_v36 = vrot.slane %v3577_v44, 7  ;;  %v3601_v47 = vshrl.u32 %v7593_v39, 16 }
 0x29e   :  { %v7591_v10 = vpack.c.bf16 %v3513_v38, %v3513_v38  ;;  %v3604_v13 = vshll.u32 %v7593_v39, 16 }
 0x29f   :  { %v3749_v6 = vsel %vm8566_vm5, %v3598_v9, %v3748_v60  ;;  %v3752_v23 = vsel %vm8528_vm3, %v3599_v43, %v3751_v52  ;;  %v3582_v42 = vor.u32 %v3580_v48, %v3579_v36  ;;  %v3583_v31 = vrot.slane %v3579_v36, 4  ;;  %v3772_v9 = vld [vmem:[#allocation2 + $0x38] sm:$0xf]  ;;  %v8425_v43 = vld [vmem:[%s10301_s0 + $0x28] sm:$0xff] }
 0x2a0   :  { %3753 = vst [vmem:[#allocation2 + $0x1c] sm:$0x1] %v3752_v23  ;;  %3750 = vst [vmem:[#allocation2 + $0x18] sm:$0xf] %v3749_v6  ;;  %v3603_v22 = vrot.slane %v3601_v47, 7  ;;  %v3585_v15 = vshrl.u32 %v7591_v10, 16 }
 0x2a1   :  { %v3737_v26 = vsel %vm8566_vm5, %v3582_v42, %v3736_v58  ;;  %v3740_v41 = vsel %vm8528_vm3, %v3583_v31, %v3739_v55  ;;  %v3588_v7 = vshll.u32 %v7591_v10, 16  ;;  %v3775_v23 = vld [vmem:[#allocation2 + $0x3c] sm:$0x1] }
 0x2a2   :  { %3738 = vst [vmem:[#allocation2 + $0x8] sm:$0xf] %v3737_v26  ;;  %3741 = vst [vmem:[#allocation2 + $0xc] sm:$0x1] %v3740_v41  ;;  %v3606_v63 = vor.u32 %v3604_v13, %v3603_v22  ;;  %v3607_v54 = vrot.slane %v3603_v22, 4  ;;  %v3587_v56 = vrot.slane %v3585_v15, 7  ;;  %v7940_v50 = vpop.f32.mrf.mxu1 }
 0x2a3   :  { %v9571_v3 = vadd.f32 %v8422_v59, %v7940_v50  ;;  %v8247_v13 = vld [vmem:[%s10302_s1 + $0x190] sm:$0xff]   ;;  %v3760_v15 = vld [vmem:[#allocation2 + $0x28] sm:$0xf] }
 0x2a4   :  { %v3755_v8 = vsel %vm8566_vm5, %v3606_v63, %v3754_v20  ;;  %v3758_v12 = vsel %vm8528_vm3, %v3607_v54, %v3757_v4  ;;  %v3590_v28 = vor.u32 %v3588_v7, %v3587_v56  ;;  %v3591_v17 = vrot.slane %v3587_v56, 4  ;;  %v3449_v45 = vpop.f32.mrf.mxu1  ;;  %v3763_v56 = vld [vmem:[#allocation2 + $0x2c] sm:$0x1]  ;;  %7758 = vmatprep.subr.bf16.mxu0 %v8247_v13 }
 0x2a5   :  { %10335 = vst [vmem:[#allocation11_spill] sm:$0xff] %v9571_v3  ;;  %3759 = vst [vmem:[#allocation2 + $0x24] sm:$0x1] %v3758_v12  ;;  %v3518_v34 = vmax.f32 %v9571_v3, 0.0  ;;  %v9583_v24 = vadd.f32 %v8423_v32, %v3449_v45  ;;  %v3778_v45 = vld [vmem:[#allocation2 + $0x40] sm:$0xf]  ;;  %7759 = vmatpush3.bf16.msra.mxu0 %v8249_v0 }
 0x2a6   :  { %3756 = vst [vmem:[#allocation2 + $0x20] sm:$0xf] %v3755_v8  ;;  %v3743_v33 = vsel %vm8566_vm5, %v3590_v28, %v3742_v27  ;;  %v3746_v46 = vsel %vm8528_vm3, %v3591_v17, %v3745_v21  ;;  %v7941_v61 = vpop.f32.mrf.mxu1 }
 0x2a7   :  { %10336 = vst [vmem:[#allocation12_spill] sm:$0xff] %v9583_v24  ;;  %3747 = vst [vmem:[#allocation2 + $0x14] sm:$0x1] %v3746_v46  ;;  %v7596_v11 = vpack.c.bf16 %v3518_v34, %v3518_v34  ;;  %v3516_v5 = vmax.f32 %v9583_v24, 0.0  ;;  %v9596_v29 = vadd.f32 %v8424_v57, %v7941_v61  ;;  %v8183_v30 = vld [vmem:[#allocation2 + $0x18] ss:$0 sps:$4 sm:$0xff]  }
 0x2a8   :  { %3744 = vst [vmem:[#allocation2 + $0x10] sm:$0xf] %v3743_v33  ;;  %v3452_v49 = vpop.f32.mrf.mxu1  ;;  %v4621_v16 = vld [vmem:[#allocation2 + $0x1c] sm:$0x1]  ;;  %v4650_v44 = vld [vmem:[#allocation2 + $0x18] sm:$0xe] }
 0x2a9   :  { %10337 = vst [vmem:[#allocation13_spill] sm:$0xff] %v9596_v29  ;;  %v3835_v39 = vld [vmem:[#allocation2 + $0x18] sm:$0xf]  ;;  %v3625_v60 = vshrl.u32 %v7596_v11, 16  ;;  %v3628_v52 = vshll.u32 %v7596_v11, 16  ;;  %v7594_v48 = vpack.c.bf16 %v3516_v5, %v3516_v5  ;;  %v3519_v38 = vmax.f32 %v9596_v29, 0.0 }
 0x2aa   :  { %v9602_v36 = vadd.f32 %v8425_v43, %v3452_v49  ;;  %v4346_v47 = vrot.slane %v8183_v30, 7  ;;  %v8184_v58 = vld [vmem:[#allocation2 + $0x8] ss:$0 sps:$4 sm:$0xff]   ;;  %v9604_v55 = vcombine.low %v4650_v44, %v4621_v16  ;;  %v3851_v10 = vld [vmem:[#allocation2 + $0x1c] sm:$0x1]  ;;  %v8426_v43 = vld [vmem:[%s10301_s0 + $0x50] sm:$0xff] }
 0x2ab   :  { %v3627_v6 = vrot.slane %v3625_v60, 7  ;;  %v3609_v42 = vshrl.u32 %v7594_v48, 16  ;;  %v3612_v31 = vshll.u32 %v7594_v48, 16  ;;  %v7597_v22 = vpack.c.bf16 %v3519_v38, %v3519_v38  ;;  %v4617_v59 = vld [vmem:[#allocation2 + $0xc] sm:$0x1] }
 0x2ac   :  { %10338 = vst [vmem:[#allocation14_spill] sm:$0xff] %v9602_v36  ;;  %v3517_v19 = vmax.f32 %v9602_v36, 0.0  ;;  %4364 = vrot.lane.b32.xlu0 %v4346_v47, %s8503_s28  ;;  %v4344_v26 = vrot.slane %v8184_v58, 7  ;;  %v7215_v20 = vcombine.low %v3835_v39, %v3851_v10  ;;  %v4807_v21 = vshrl.u32 %v9604_v55, 16  ;;  %v4648_v34 = vld [vmem:[#allocation2 + $0x8] sm:$0xe] }
 0x2ad   :  { %v8185_v41 = vld [vmem:[#allocation2 + $0x20] ss:$0 sps:$4 sm:$0xff]   ;;  %v3630_v4 = vor.u32 %v3628_v52, %v3627_v6  ;;  %v3631_v63 = vrot.slane %v3627_v6, 4  ;;  %v3611_v54 = vrot.slane %v3609_v42, 7  ;;  %v3633_v7 = vshrl.u32 %v7597_v22, 16 }
 0x2ae   :  { %v3636_v50 = vshll.u32 %v7597_v22, 16  ;;  %v7595_v14 = vpack.c.bf16 %v3517_v19, %v3517_v19  ;;  %v4347_v27 = vrot.slane %v8185_v41, 7  ;;  %v5321_v32 = vld [vmem:[#allocation2 + $0x18] sm:$0xf]  ;;  %v4809_v51 = vshll.u32 %v9604_v55, 16 }
 0x2af   :  { %v3773_v8 = vsel %vm8566_vm5, %v3630_v4, %v3772_v9  ;;  %v3776_v12 = vsel %vm8528_vm3, %v3631_v63, %v3775_v23  ;;  %v3614_v28 = vor.u32 %v3612_v31, %v3611_v54  ;;  %v3615_v17 = vrot.slane %v3611_v54, 4  ;;  %v5337_v11 = vld [vmem:[#allocation2 + $0x1c] sm:$0x1]  ;;  %v3781_v30 = vld [vmem:[#allocation2 + $0x44] sm:$0x1] }
 0x2b0   :  { %3777 = vst [vmem:[#allocation2 + $0x3c] sm:$0x1] %v3776_v12  ;;  %3774 = vst [vmem:[#allocation2 + $0x38] sm:$0xf] %v3773_v8  ;;  %v3635_v33 = vrot.slane %v3633_v7, 7  ;;  %v3617_v46 = vshrl.u32 %v7595_v14, 16  ;;  %4360 = vrot.lane.b32.xlu0 %v4344_v26, %s8503_s28  ;;  %4366 = vrot.lane.b32.xlu1 %v4347_v27, %s8503_s28  ;;  %v7324_v55 = vcombine.low %v4648_v34, %v4617_v59 }
 0x2b1   :  { %v3620_v61 = vshll.u32 %v7595_v14, 16  ;;  %v3761_v5 = vsel %vm8566_vm5, %v3614_v28, %v3760_v15  ;;  %v3764_v57 = vsel %vm8528_vm3, %v3615_v17, %v3763_v56  ;;  %v3966_v49 = vshrl.u32 %v7215_v20, 16  ;;  %v3766_v38 = vld [vmem:[#allocation2 + $0x30] sm:$0xf]  ;;  %v3769_v9 = vld [vmem:[#allocation2 + $0x34] sm:$0x1] }
 0x2b2   :  { %v3968_v16 = vshll.u32 %v7215_v20, 16  ;;  %3765 = vst [vmem:[#allocation2 + $0x2c] sm:$0x1] %v3764_v57  ;;  %3762 = vst [vmem:[#allocation2 + $0x28] sm:$0xf] %v3761_v5  ;;  %v3638_v44 = vor.u32 %v3636_v50, %v3635_v33  ;;  %v3639_v39 = vrot.slane %v3635_v33, 4  ;;  %v7944_v52 = vpop.f32.mrf.mxu1  ;;  %v7373_v10 = vcombine.low %v5321_v32, %v5337_v11 }
 0x2b3   :  { %v3619_v60 = vrot.slane %v3617_v46, 7  ;;  %v4811_v48 = vrot.slane %v4809_v51, 1  ;;  %v9632_v47 = vadd.f32 %v8426_v43, %v7944_v52  ;;  %v9638_v22 = vld [vmem:[#allocation2 + $0x10] ss:$0 sps:$4 sm:$0xff]   ;;  %v8427_v26 = vld [vmem:[%s10301_s0 + $0x40] sm:$0xff]  ;;  %v4793_v7 = vshrl.u32 %v7324_v55, 16 }
 0x2b4   :  { %v3970_v58 = vrot.slane %v3968_v16, 1  ;;  %v3779_v35 = vsel %vm8566_vm5, %v3638_v44, %v3778_v45  ;;  %v3782_v6 = vsel %vm8528_vm3, %v3639_v39, %v3781_v30  ;;  %v3465_v31 = vpop.f32.mrf.mxu1  ;;  %v3836_v20 = vld [vmem:[#allocation2 + $0x20] sm:$0xf]  ;;  %v3852_v4 = vld [vmem:[#allocation2 + $0x24] sm:$0x1]  ;;  %v4795_v50 = vshll.u32 %v7324_v55, 16 }
 0x2b5   :  { %10339 = vst [vmem:[#allocation15_spill] sm:$0xff] %v9632_v47  ;;  %v3622_v23 = vor.u32 %v3620_v61, %v3619_v60  ;;  %v3623_v42 = vrot.slane %v3619_v60, 4  ;;  %3780 = vst [vmem:[#allocation2 + $0x40] sm:$0xf] %v3779_v35  ;;  %v3522_v13 = vmax.f32 %v9632_v47, 0.0  ;;  %v4812_v15 = vor.u32 %v4811_v48, %v4807_v21  ;;  %v8428_v21 = vld [vmem:[%s10301_s0 + $0x58] sm:$0xff] }
 0x2b6   :  { %3783 = vst [vmem:[#allocation2 + $0x44] sm:$0x1] %v3782_v6  ;;  %v3971_v19 = vor.u32 %v3970_v58, %v3966_v49  ;;  %v9644_v41 = vadd.f32 %v8427_v26, %v3465_v31  ;;  %v7945_v56 = vpop.f32.mrf.mxu1  ;;  %v5440_v0 = vshrl.u32 %v7373_v10, 16  ;;  %v3833_v8 = vld [vmem:[#allocation2 + $0x8] sm:$0xf]  ;;  %v4797_v12 = vrot.slane %v4795_v50, 1 }
 0x2b7   :  { %v3767_v63 = vsel %vm8566_vm5, %v3622_v23, %v3766_v38  ;;  %v3770_v54 = vsel %vm8528_vm3, %v3623_v42, %v3769_v9  ;;  %v7600_v14 = vpack.c.bf16 %v3522_v13, %v3522_v13  ;;  %4908 = vrot.lane.b32.xlu0 %v4812_v15, %s8503_s28  ;;  %v9656_v59 = vadd.f32 %v8428_v21, %v7945_v56  ;;  %v3849_v32 = vld [vmem:[#allocation2 + $0xc] sm:$0x1]  ;;  %v3796_v57 = vld [vmem:[#allocation2 + $0x68] sm:$0xf]  ;;  %v8255_v43 = vld [vmem:[%s10302_s1 + $0x180] sm:$0xff]  }
 0x2b8   :  { %10340 = vst [vmem:[#allocation16_spill] sm:$0xff] %v9644_v41  ;;  %3771 = vst [vmem:[#allocation2 + $0x34] sm:$0x1] %v3770_v54  ;;  %4062 = vrot.lane.b32.xlu1 %v3971_v19, %s8503_s28  ;;  %v3520_v27 = vmax.f32 %v9644_v41, 0.0  ;;  %v5442_v28 = vshll.u32 %v7373_v10, 16  ;;  %v3468_v17 = vpop.f32.mrf.mxu1  ;;  %v7216_v45 = vcombine.low %v3836_v20, %v3852_v4  ;;  %v4345_v34 = vrot.slane %v9638_v22, 7 }
 0x2b9   :  { %3768 = vst [vmem:[#allocation2 + $0x30] sm:$0xf] %v3767_v63  ;;  %10341 = vst [vmem:[#allocation17_spill] sm:$0xff] %v9656_v59  ;;  %v8251_v33 = vld [vmem:[%s10302_s1 + $0x188] sm:$0xff]   ;;  %v3657_v46 = vshrl.u32 %v7600_v14, 16  ;;  %v3660_v61 = vshll.u32 %v7600_v14, 16  ;;  %v4798_v30 = vor.u32 %v4797_v12, %v4793_v7  ;;  %v9676_v23 = vcombine.low %v3833_v8, %v3849_v32 }
 0x2ba   :  { %v7598_v51 = vpack.c.bf16 %v3520_v27, %v3520_v27  ;;  %v3523_v11 = vmax.f32 %v9656_v59, 0.0  ;;  %v8253_v5 = vld [vmem:[%s10302_s1 + $0x148] sm:$0xff]   ;;  %v5444_v49 = vrot.slane %v5442_v28, 1  ;;  %v3973_v39 = vshrl.u32 %v7216_v45, 16  ;;  %7760 = vmatprep.subr.bf16.mxu0 %v8251_v33  ;;  %v3784_v58 = vld [vmem:[#allocation2 + $0x58] sm:$0xf] }
 0x2bb   :  { %v8429_v16 = vld [vmem:[%s10301_s0 + $0x48] sm:$0xff]  ;;  %v3659_v60 = vrot.slane %v3657_v46, 7  ;;  %7761 = vmatpush3.bf16.msra.mxu0 %v8253_v5  ;;  %v3787_v55 = vld [vmem:[#allocation2 + $0x5c] sm:$0x1]  ;;  %4904 = vrot.lane.b32.xlu0 %v4798_v30, %s8503_s28  ;;  %v3975_v6 = vshll.u32 %v7216_v45, 16  ;;  %v8256_v4 = vld [vmem:[%s10302_s1 + $0x140] sm:$0xff]  }
 0x2bc   :  { %v9669_v44 = vadd.f32 %v8429_v16, %v3468_v17  ;;  %v3799_v52 = vld [vmem:[#allocation2 + $0x6c] sm:$0x1]  ;;  %v3641_v48 = vshrl.u32 %v7598_v51, 16  ;;  %v3644_v38 = vshll.u32 %v7598_v51, 16  ;;  %v7601_v9 = vpack.c.bf16 %v3523_v11, %v3523_v11  ;;  %v9678_v19 = vld [vmem:[#allocation2 + $0x38] ss:$0 sps:$4 sm:$0xff]   ;;  %7762 = vmatprep.subr.bf16.mxu0 %v8255_v43 }
 0x2bd   :  { %v5445_v10 = vor.u32 %v5444_v49, %v5440_v0  ;;  %v3662_v42 = vor.u32 %v3660_v61, %v3659_v60  ;;  %v3663_v31 = vrot.slane %v3659_v60, 4  ;;  %v4623_v26 = vld [vmem:[#allocation2 + $0x24] sm:$0x1]  ;;  %v4651_v20 = vld [vmem:[#allocation2 + $0x20] sm:$0xe]  ;;  %v3977_v56 = vrot.slane %v3975_v6, 1 }
 0x2be   :  { %10342 = vst [vmem:[#allocation18_spill] sm:$0xff] %v9669_v44  ;;  %v3521_v35 = vmax.f32 %v9669_v44, 0.0  ;;  %v3643_v13 = vrot.slane %v3641_v48, 7  ;;  %v3665_v15 = vshrl.u32 %v7601_v9, 16  ;;  %v3668_v63 = vshll.u32 %v7601_v9, 16  ;;  %v8259_v14 = vld [vmem:[%s10302_s1 + $0x178] sm:$0xff]  }
 0x2bf   :  { %5546 = vrot.lane.b32.xlu1 %v5445_v10, %s8503_s28  ;;  %v3952_v7 = vshrl.u32 %v9676_v23, 16  ;;  %v5322_v50 = vld [vmem:[#allocation2 + $0x20] sm:$0xf]  ;;  %v3797_v27 = vsel %vm8566_vm5, %v3662_v42, %v3796_v57  ;;  %v3800_v21 = vsel %vm8528_vm3, %v3663_v31, %v3799_v52  ;;  %v5338_v12 = vld [vmem:[#allocation2 + $0x24] sm:$0x1]  ;;  %7763 = vmatpush3.bf16.msra.mxu0 %v8256_v4  ;;  %v8260_v17 = vld [vmem:[%s10302_s1 + $0x138] sm:$0xff]   ;;  %v3978_v46 = vor.u32 %v3977_v56, %v3973_v39 }
 0x2c0   :  { %v7599_v54 = vpack.c.bf16 %v3521_v35, %v3521_v35  ;;  %v3646_v0 = vor.u32 %v3644_v38, %v3643_v13  ;;  %v3647_v8 = vrot.slane %v3643_v13, 4  ;;  %v4619_v28 = vld [vmem:[#allocation2 + $0x14] sm:$0x1]  ;;  %3801 = vst [vmem:[#allocation2 + $0x6c] sm:$0x1] %v3800_v21  ;;  %v3667_v45 = vrot.slane %v3665_v15, 7  ;;  %7764 = vmatprep.subr.bf16.mxu0 %v8259_v14 }
 0x2c1   :  { %3798 = vst [vmem:[#allocation2 + $0x68] sm:$0xf] %v3797_v27  ;;  %v4649_v61 = vld [vmem:[#allocation2 + $0x10] sm:$0xe]  ;;  %v8261_v51 = vld [vmem:[%s10302_s1 + $0x218] sm:$0xff]   ;;  %v3954_v49 = vshll.u32 %v9676_v23, 16  ;;  %4064 = vrot.lane.b32.xlu0 %v3978_v46, %s8503_s28  ;;  %v7327_v38 = vcombine.low %v4651_v20, %v4623_v26  ;;  %v7374_v35 = vcombine.low %v5322_v50, %v5338_v12 }
 0x2c2   :  { %v3649_v32 = vshrl.u32 %v7599_v54, 16  ;;  %v3652_v33 = vshll.u32 %v7599_v54, 16  ;;  %v3785_v11 = vsel %vm8566_vm5, %v3646_v0, %v3784_v58  ;;  %v3788_v5 = vsel %vm8528_vm3, %v3647_v8, %v3787_v55  ;;  %v3802_v57 = vld [vmem:[#allocation2 + $0x70] sm:$0xf]  ;;  %v3805_v30 = vld [vmem:[#allocation2 + $0x74] sm:$0x1]  ;;  %v7948_v48 = vpop.f32.mrf.mxu1  ;;  %7820 = vmatprep.subr.bf16.mxu1 %v8261_v51 }
 0x2c3   :  { %v4350_v16 = vrot.slane %v9678_v19, 7  ;;  %3786 = vst [vmem:[#allocation2 + $0x58] sm:$0xf] %v3785_v11  ;;  %3789 = vst [vmem:[#allocation2 + $0x5c] sm:$0x1] %v3788_v5  ;;  %v3670_v39 = vor.u32 %v3668_v63, %v3667_v45  ;;  %v3671_v60 = vrot.slane %v3667_v45, 4  ;;  %4362 = vrot.lane.b32.xlu1 %v4345_v34, %s8503_s28  ;;  %v9713_v6 = vcombine.low %v4649_v61, %v4619_v28 }
 0x2c4   :  { %v3651_v52 = vrot.slane %v3649_v32, 7  ;;  %v3790_v9 = vld [vmem:[#allocation2 + $0x60] sm:$0xf]  ;;  %v3793_v43 = vld [vmem:[#allocation2 + $0x64] sm:$0x1]  ;;  %v3956_v58 = vrot.slane %v3954_v49, 1  ;;  %7765 = vmatpush3.bf16.msra.mxu0 %v8260_v17  ;;  %v3481_v13 = vpop.f32.mrf.mxu1 }
 0x2c5   :  { %v8430_v55 = vld [vmem:[%s10301_s0 + $0x70] sm:$0xff]  ;;  %v8263_v22 = vld [vmem:[%s10302_s1 + $0x1d8] sm:$0xff]   ;;  %v3803_v34 = vsel %vm8566_vm5, %v3670_v39, %v3802_v57  ;;  %v3806_v23 = vsel %vm8528_vm3, %v3671_v60, %v3805_v30  ;;  %v4816_v4 = vshll.u32 %v7327_v38, 16  ;;  %4372 = vrot.lane.b32.xlu0 %v4350_v16, %s8503_s28  ;;  %v4814_v14 = vshrl.u32 %v7327_v38, 16  ;;  %v8431_v8 = vld [vmem:[%s10301_s0 + $0x60] sm:$0xff] }
 0x2c6   :  { %v9711_v10 = vadd.f32 %v8430_v55, %v7948_v48  ;;  %v3654_v42 = vor.u32 %v3652_v33, %v3651_v52  ;;  %v3655_v31 = vrot.slane %v3651_v52, 4  ;;  %v3834_v15 = vld [vmem:[#allocation2 + $0x10] sm:$0xf]  ;;  %3807 = vst [vmem:[#allocation2 + $0x74] sm:$0x1] %v3806_v23  ;;  %v3957_v26 = vor.u32 %v3956_v58, %v3952_v7  ;;  %7821 = vmatpush3.bf16.msra.mxu1 %v8263_v22  ;;  %v7949_v7 = vpop.f32.mrf.mxu1  ;;  %v8432_v28 = vld [vmem:[%s10301_s0 + $0x78] sm:$0xff] }
 0x2c7   :  { %v8264_v19 = vld [vmem:[%s10302_s1 + $0x170] sm:$0xff]   ;;  %3804 = vst [vmem:[#allocation2 + $0x70] sm:$0xf] %v3803_v34  ;;  %v5449_v27 = vshll.u32 %v7374_v35, 16  ;;  %v4818_v0 = vrot.slane %v4816_v4, 1  ;;  %v9738_v12 = vadd.f32 %v8431_v8, %v3481_v13  ;;  %v9743_v17 = vadd.f32 %v8432_v28, %v7949_v7  ;;  %v8433_v55 = vld [vmem:[%s10301_s0 + $0x68] sm:$0xff] }
 0x2c8   :  { %10343 = vst [vmem:[#allocation19_spill] sm:$0xff] %v9711_v10  ;;  %v3526_v20 = vmax.f32 %v9711_v10, 0.0  ;;  %v3850_v63 = vld [vmem:[#allocation2 + $0x14] sm:$0x1]  ;;  %v3791_v56 = vsel %vm8566_vm5, %v3654_v42, %v3790_v9  ;;  %v3794_v50 = vsel %vm8528_vm3, %v3655_v31, %v3793_v43  ;;  %7766 = vmatprep.subr.bf16.mxu0 %v8264_v19  ;;  %4058 = vrot.lane.b32.xlu1 %v3957_v26, %s8503_s28  ;;  %v5447_v32 = vshrl.u32 %v7374_v35, 16  ;;  %v3484_v51 = vpop.f32.mrf.mxu1 }
 0x2c9   :  { %v8265_v54 = vld [vmem:[%s10302_s1 + $0x130] sm:$0xff]   ;;  %3795 = vst [vmem:[#allocation2 + $0x64] sm:$0x1] %v3794_v50  ;;  %3792 = vst [vmem:[#allocation2 + $0x60] sm:$0xf] %v3791_v56  ;;  %v5451_v33 = vrot.slane %v5449_v27, 1  ;;  %v7214_v61 = vcombine.low %v3834_v15, %v3850_v63  ;;  %v4819_v5 = vor.u32 %v4818_v0, %v4814_v14  ;;  %v9759_v35 = vadd.f32 %v8433_v55, %v3484_v51 }
 0x2ca   :  { %v7604_v21 = vpack.c.bf16 %v3526_v20, %v3526_v20  ;;  %10344 = vst [vmem:[#allocation20_spill] sm:$0xff] %v9738_v12  ;;  %10345 = vst [vmem:[#allocation21_spill] sm:$0xff] %v9743_v17  ;;  %7767 = vmatpush3.bf16.msra.mxu0 %v8265_v54  ;;  %v8266_v45 = vld [vmem:[%s10302_s1 + $0x210] sm:$0xff]   ;;  %v4802_v46 = vshll.u32 %v9713_v6, 16  ;;  %v3524_v57 = vmax.f32 %v9738_v12, 0.0  ;;  %v4800_v30 = vshrl.u32 %v9713_v6, 16 }
 0x2cb   :  { %7822 = vmatprep.subr.bf16.mxu1 %v8266_v45  ;;  %v3820_v16 = vld [vmem:[#allocation2 + $0x88] sm:$0xf]  ;;  %v3823_v39 = vld [vmem:[#allocation2 + $0x8c] sm:$0x1]  ;;  %v5452_v60 = vor.u32 %v5451_v33, %v5447_v32  ;;  %v3527_v52 = vmax.f32 %v9743_v17, 0.0  ;;  %v8268_v38 = vld [vmem:[%s10302_s1 + $0x1d0] sm:$0xff]  }
 0x2cc   :  { %v3689_v11 = vshrl.u32 %v7604_v21, 16  ;;  %v3692_v49 = vshll.u32 %v7604_v21, 16  ;;  %v4804_v48 = vrot.slane %v4802_v46, 1  ;;  %4910 = vrot.lane.b32.xlu1 %v4819_v5, %s8503_s28  ;;  %v7602_v43 = vpack.c.bf16 %v3524_v57, %v3524_v57  ;;  %10346 = vst [vmem:[#allocation22_spill] sm:$0xff] %v9759_v35  ;;  %v5320_v6 = vld [vmem:[#allocation2 + $0x10] sm:$0xf]  ;;  %7823 = vmatpush3.bf16.msra.mxu1 %v8268_v38 }
 0x2cd   :  { %v3961_v58 = vshll.u32 %v7214_v61, 16  ;;  %v5336_v22 = vld [vmem:[#allocation2 + $0x14] sm:$0x1]  ;;  %5548 = vrot.lane.b32.xlu0 %v5452_v60, %s8503_s28  ;;  %v7605_v34 = vpack.c.bf16 %v3527_v52, %v3527_v52  ;;  %v3959_v42 = vshrl.u32 %v7214_v61, 16  ;;  %v8199_v31 = vld [vmem:[#allocation2 + $0x40] ss:$0 sps:$4 sm:$0xff]  }
 0x2ce   :  { %v3691_v9 = vrot.slane %v3689_v11, 7  ;;  %v4805_v23 = vor.u32 %v4804_v48, %v4800_v30  ;;  %v3839_v13 = vld [vmem:[#allocation2 + $0x38] sm:$0xf]  ;;  %v3673_v26 = vshrl.u32 %v7602_v43, 16  ;;  %v3676_v20 = vshll.u32 %v7602_v43, 16  ;;  %v8269_v63 = vld [vmem:[%s10302_s1 + $0x168] sm:$0xff]  }
 0x2cf   :  { %v3855_v4 = vld [vmem:[#allocation2 + $0x3c] sm:$0x1]  ;;  %v3808_v54 = vld [vmem:[#allocation2 + $0x78] sm:$0xf]  ;;  %v3697_v50 = vshrl.u32 %v7605_v34, 16  ;;  %v3700_v14 = vshll.u32 %v7605_v34, 16  ;;  %v9771_v33 = vcombine.low %v5320_v6, %v5336_v22  ;;  %7768 = vmatprep.subr.bf16.mxu0 %v8269_v63 }
 0x2d0   :  { %v3694_v15 = vor.u32 %v3692_v49, %v3691_v9  ;;  %v3695_v19 = vrot.slane %v3691_v9, 4  ;;  %v3811_v56 = vld [vmem:[#allocation2 + $0x7c] sm:$0x1]  ;;  %v3963_v27 = vrot.slane %v3961_v58, 1  ;;  %v3525_v7 = vmax.f32 %v9759_v35, 0.0  ;;  %4906 = vrot.lane.b32.xlu1 %v4805_v23, %s8503_s28  ;;  %v8270_v46 = vld [vmem:[%s10302_s1 + $0x128] sm:$0xff]  }
 0x2d1   :  { %v8198_v21 = vld [vmem:[#allocation2 + $0x28] ss:$0 sps:$4 sm:$0xff]   ;;  %v3675_v28 = vrot.slane %v3673_v26, 7  ;;  %v3826_v45 = vld [vmem:[#allocation2 + $0x90] sm:$0xf]  ;;  %v3699_v61 = vrot.slane %v3697_v50, 7  ;;  %v7219_v5 = vcombine.low %v3839_v13, %v3855_v4  ;;  %7769 = vmatpush3.bf16.msra.mxu0 %v8270_v46 }
 0x2d2   :  { %v3821_v0 = vsel %vm8566_vm5, %v3694_v15, %v3820_v16  ;;  %v3824_v8 = vsel %vm8528_vm3, %v3695_v19, %v3823_v39  ;;  %v3829_v32 = vld [vmem:[#allocation2 + $0x94] sm:$0x1]  ;;  %v3964_v51 = vor.u32 %v3963_v27, %v3959_v42  ;;  %v7603_v11 = vpack.c.bf16 %v3525_v7, %v3525_v7  ;;  %v4629_v57 = vld [vmem:[#allocation2 + $0x3c] sm:$0x1]  ;;  %v4654_v30 = vld [vmem:[#allocation2 + $0x38] sm:$0xe] }
 0x2d3   :  { %3825 = vst [vmem:[#allocation2 + $0x8c] sm:$0x1] %v3824_v8  ;;  %3822 = vst [vmem:[#allocation2 + $0x88] sm:$0xf] %v3821_v0  ;;  %v5325_v49 = vld [vmem:[#allocation2 + $0x38] sm:$0xf]  ;;  %v3678_v60 = vor.u32 %v3676_v20, %v3675_v28  ;;  %v3702_v58 = vor.u32 %v3700_v14, %v3699_v61  ;;  %v7330_v50 = vcombine.low %v4654_v30, %v4629_v57 }
 0x2d4   :  { %v5341_v16 = vld [vmem:[#allocation2 + $0x3c] sm:$0x1]  ;;  %v8271_v39 = vld [vmem:[%s10302_s1 + $0x208] sm:$0xff]   ;;  %v3679_v52 = vrot.slane %v3675_v28, 4  ;;  %v4351_v48 = vrot.slane %v8199_v31, 7  ;;  %v5435_v38 = vshll.u32 %v9771_v33, 16  ;;  %4060 = vrot.lane.b32.xlu0 %v3964_v51, %s8503_s28 }
 0x2d5   :  { %v4625_v9 = vld [vmem:[#allocation2 + $0x2c] sm:$0x1]  ;;  %v3703_v55 = vrot.slane %v3699_v61, 4  ;;  %v3681_v6 = vshrl.u32 %v7603_v11, 16  ;;  %v4348_v22 = vrot.slane %v8198_v21, 7  ;;  %7824 = vmatprep.subr.bf16.mxu1 %v8271_v39  ;;  %v8274_v23 = vld [vmem:[%s10302_s1 + $0x160] sm:$0xff]   ;;  %v3809_v42 = vsel %vm8566_vm5, %v3678_v60, %v3808_v54 }
 0x2d6   :  { %v8273_v43 = vld [vmem:[%s10302_s1 + $0x1c8] sm:$0xff]   ;;  %v3812_v31 = vsel %vm8528_vm3, %v3679_v52, %v3811_v56  ;;  %v3684_v13 = vshll.u32 %v7603_v11, 16  ;;  %4374 = vrot.lane.b32.xlu1 %v4351_v48, %s8503_s28  ;;  %v5437_v15 = vrot.slane %v5435_v38, 1  ;;  %3810 = vst [vmem:[#allocation2 + $0x78] sm:$0xf] %v3809_v42  ;;  %v3827_v19 = vsel %vm8566_vm5, %v3702_v58, %v3826_v45  ;;  %7770 = vmatprep.subr.bf16.mxu0 %v8274_v23  ;;  %v8275_v46 = vld [vmem:[%s10302_s1 + $0x120] sm:$0xff]  }
 0x2d7   :  { %v4652_v34 = vld [vmem:[#allocation2 + $0x28] sm:$0xe]  ;;  %7825 = vmatpush3.bf16.msra.mxu1 %v8273_v43  ;;  %3813 = vst [vmem:[#allocation2 + $0x7c] sm:$0x1] %v3812_v31  ;;  %v3830_v26 = vsel %vm8528_vm3, %v3703_v55, %v3829_v32  ;;  %v3683_v20 = vrot.slane %v3681_v6, 7  ;;  %v3996_v54 = vshll.u32 %v7219_v5, 16  ;;  %v7377_v14 = vcombine.low %v5325_v49, %v5341_v16  ;;  %7771 = vmatpush3.bf16.msra.mxu0 %v8275_v46 }
 0x2d8   :  { %v3814_v4 = vld [vmem:[#allocation2 + $0x80] sm:$0xf]  ;;  %v3817_v63 = vld [vmem:[#allocation2 + $0x84] sm:$0x1]  ;;  %3828 = vst [vmem:[#allocation2 + $0x90] sm:$0xf] %v3827_v19  ;;  %v7328_v27 = vcombine.low %v4652_v34, %v4625_v9  ;;  %4368 = vrot.lane.b32.xlu0 %v4348_v22, %s8503_s28 }
 0x2d9   :  { %3831 = vst [vmem:[#allocation2 + $0x94] sm:$0x1] %v3830_v26  ;;  %v5433_v56 = vshrl.u32 %v9771_v33, 16  ;;  %v3837_v7 = vld [vmem:[#allocation2 + $0x28] sm:$0xf]  ;;  %v3686_v0 = vor.u32 %v3684_v13, %v3683_v20  ;;  %v3687_v8 = vrot.slane %v3683_v20, 4 }
 0x2da   :  { %v3853_v21 = vld [vmem:[#allocation2 + $0x2c] sm:$0x1]  ;;  %v3994_v28 = vshrl.u32 %v7219_v5, 16  ;;  %v3998_v45 = vrot.slane %v3996_v54, 1  ;;  %v5323_v32 = vld [vmem:[#allocation2 + $0x28] sm:$0xf] }
 0x2db   :  { %v4837_v61 = vshll.u32 %v7330_v50, 16  ;;  %v5470_v51 = vshll.u32 %v7377_v14, 16  ;;  %v5339_v11 = vld [vmem:[#allocation2 + $0x2c] sm:$0x1]  ;;  %v3838_v33 = vld [vmem:[#allocation2 + $0x30] sm:$0xf]  ;;  %v3815_v57 = vsel %vm8566_vm5, %v3686_v0, %v3814_v4  ;;  %v3818_v30 = vsel %vm8528_vm3, %v3687_v8, %v3817_v63 }
 0x2dc   :  { %v5438_v49 = vor.u32 %v5437_v15, %v5433_v56  ;;  %v3999_v16 = vor.u32 %v3998_v45, %v3994_v28  ;;  %v3854_v39 = vld [vmem:[#allocation2 + $0x34] sm:$0x1]  ;;  %v8276_v5 = vld [vmem:[%s10302_s1 + $0x200] sm:$0xff]   ;;  %3819 = vst [vmem:[#allocation2 + $0x84] sm:$0x1] %v3818_v30  ;;  %v4823_v48 = vshll.u32 %v7328_v27, 16  ;;  %v7217_v38 = vcombine.low %v3837_v7, %v3853_v21 }
 0x2dd   :  { %3816 = vst [vmem:[#allocation2 + $0x80] sm:$0xf] %v3815_v57  ;;  %v4839_v60 = vrot.slane %v4837_v61, 1  ;;  %v5472_v52 = vrot.slane %v5470_v51, 1  ;;  %v4835_v1 = vshrl.u32 %v7330_v50, 16  ;;  %v5468_v9 = vshrl.u32 %v7377_v14, 16  ;;  %7826 = vmatprep.subr.bf16.mxu1 %v8276_v5 }
 0x2de   :  { %5544 = vrot.lane.b32.xlu0 %v5438_v49, %s8503_s28  ;;  %4070 = vrot.lane.b32.xlu1 %v3999_v16, %s8503_s28  ;;  %v8283_v43 = vld [vmem:[%s10302_s1 + $0x1f8] sm:$0xff]   ;;  %v8205_v58 = vld [vmem:[#allocation2 + $0x30] ss:$0 sps:$4 sm:$0xff]   ;;  %v7375_v55 = vcombine.low %v5323_v32, %v5339_v11  ;;  %v7218_v6 = vcombine.low %v3838_v33, %v3854_v39  ;;  %v4631_v22 = vld [vmem:[#allocation2 + $0x44] sm:$0x1]  ;;  %v4825_v42 = vrot.slane %v4823_v48, 1 }
 0x2df   :  { %v4840_v34 = vor.u32 %v4839_v60, %v4835_v1  ;;  %v5473_v23 = vor.u32 %v5472_v52, %v5468_v9  ;;  %v3982_v31 = vshll.u32 %v7217_v38, 16  ;;  %v4655_v13 = vld [vmem:[#allocation2 + $0x40] sm:$0xe]  ;;  %7827 = vmatpush3.bf16.msra.mxu1 %v8282_v37  ;;  %v8284_v15 = vld [vmem:[%s10302_s1 + $0x1b8] sm:$0xff]   ;;  %v4821_v19 = vshrl.u32 %v7328_v27, 16  ;;  %v8287_v20 = vld [vmem:[%s10302_s1 + $0x1f0] sm:$0xff]  }
 0x2e0   :  { %7828 = vmatprep.subr.bf16.mxu1 %v8283_v43  ;;  %v8207_v26 = vld [vmem:[#allocation2 + $0x68] ss:$0 sps:$4 sm:$0xff]   ;;  %v4349_v4 = vrot.slane %v8205_v58, 7  ;;  %v7331_v63 = vcombine.low %v4655_v13, %v4631_v22  ;;  %v4627_v54 = vld [vmem:[#allocation2 + $0x34] sm:$0x1]  ;;  %v5456_v7 = vshll.u32 %v7375_v55, 16 }
 0x2e1   :  { %v4653_v56 = vld [vmem:[#allocation2 + $0x30] sm:$0xe]  ;;  %v4826_v50 = vor.u32 %v4825_v42, %v4821_v19  ;;  %v3984_v14 = vrot.slane %v3982_v31, 1  ;;  %v3989_v21 = vshll.u32 %v7218_v6, 16  ;;  %v5340_v8 = vld [vmem:[#allocation2 + $0x34] sm:$0x1] }
 0x2e2   :  { %4916 = vrot.lane.b32.xlu0 %v4840_v34, %s8503_s28  ;;  %5554 = vrot.lane.b32.xlu1 %v5473_v23, %s8503_s28  ;;  %v5324_v0 = vld [vmem:[#allocation2 + $0x30] sm:$0xf]  ;;  %v3980_v27 = vshrl.u32 %v7217_v38, 16  ;;  %v4354_v28 = vrot.slane %v8207_v26, 7  ;;  %v4844_v45 = vshll.u32 %v7331_v63, 16  ;;  %v7329_v32 = vcombine.low %v4653_v56, %v4627_v54  ;;  %v8291_v49 = vld [vmem:[%s10302_s1 + $0x1e8] sm:$0xff]  }
 0x2e3   :  { %7829 = vmatpush3.bf16.msra.mxu1 %v8284_v15  ;;  %v4633_v46 = vld [vmem:[#allocation2 + $0x5c] sm:$0x1]  ;;  %v5458_v51 = vrot.slane %v5456_v7, 1  ;;  %v3991_v11 = vrot.slane %v3989_v21, 1  ;;  %v7376_v33 = vcombine.low %v5324_v0, %v5340_v8  ;;  %v4656_v57 = vld [vmem:[#allocation2 + $0x58] sm:$0xe] }
 0x2e4   :  { %7830 = vmatprep.subr.bf16.mxu1 %v8287_v20  ;;  %v3985_v61 = vor.u32 %v3984_v14, %v3980_v27  ;;  %v8289_v30 = vld [vmem:[%s10302_s1 + $0x1b0] sm:$0xff]   ;;  %v5454_v16 = vshrl.u32 %v7375_v55, 16  ;;  %v3987_v39 = vshrl.u32 %v7218_v6, 16  ;;  %v8211_v5 = vld [vmem:[#allocation2 + $0x58] ss:$0 sps:$4 sm:$0xff]   ;;  %v4830_v60 = vshll.u32 %v7329_v32, 16 }
 0x2e5   :  { %v7332_v52 = vcombine.low %v4656_v57, %v4633_v46  ;;  %v8294_v48 = vld [vmem:[%s10302_s1 + $0x1a8] sm:$0xff]   ;;  %v4846_v1 = vrot.slane %v4844_v45, 1  ;;  %v5463_v9 = vshll.u32 %v7376_v33, 16  ;;  %v8295_v58 = vld [vmem:[%s10302_s1 + $0x1e0] sm:$0xff]   ;;  %v3844_v6 = vld [vmem:[#allocation2 + $0x70] sm:$0xf] }
 0x2e6   :  { %4912 = vrot.lane.b32.xlu0 %v4826_v50, %s8503_s28  ;;  %4370 = vrot.lane.b32.xlu1 %v4349_v4, %s8503_s28  ;;  %v5459_v38 = vor.u32 %v5458_v51, %v5454_v16  ;;  %v3992_v37 = vor.u32 %v3991_v11, %v3987_v39  ;;  %v3843_v43 = vld [vmem:[#allocation2 + $0x68] sm:$0xf]  ;;  %v3859_v55 = vld [vmem:[#allocation2 + $0x6c] sm:$0x1]  ;;  %v3860_v22 = vld [vmem:[#allocation2 + $0x74] sm:$0x1] }
 0x2e7   :  { %7831 = vmatpush3.bf16.msra.mxu1 %v8289_v30  ;;  %v4842_v34 = vshrl.u32 %v7331_v63, 16  ;;  %v4352_v23 = vrot.slane %v8211_v5, 7  ;;  %v4832_v42 = vrot.slane %v4830_v60, 1  ;;  %v4851_v31 = vshll.u32 %v7332_v52, 16  ;;  %v8297_v13 = vld [vmem:[%s10302_s1 + $0x1a0] sm:$0xff]   ;;  %v9848_v63 = vld [vmem:[%s10302_s1 + $0x238] sm:$0xff]  }
 0x2e8   :  { %7832 = vmatprep.subr.bf16.mxu1 %v8291_v49  ;;  %v5465_v19 = vrot.slane %v5463_v9, 1  ;;  %v7223_v26 = vcombine.low %v3843_v43, %v3859_v55  ;;  %v7224_v20 = vcombine.low %v3844_v6, %v3860_v22  ;;  %v4828_v4 = vshrl.u32 %v7329_v32, 16  ;;  %v3842_v54 = vld [vmem:[#allocation2 + $0x60] sm:$0xf]  ;;  %v3858_v56 = vld [vmem:[#allocation2 + $0x64] sm:$0x1]  ;;  %7950 = vmatprep.subr.bf16.mxu0 %v9848_v63 }
 0x2e9   :  { %v4847_v15 = vor.u32 %v4846_v1, %v4842_v34  ;;  %v5461_v50 = vshrl.u32 %v7376_v33, 16  ;;  %v4853_v7 = vrot.slane %v4851_v31, 1  ;;  %v8215_v21 = vld [vmem:[#allocation2 + $0x70] ss:$0 sps:$4 sm:$0xff]   ;;  %v3841_v45 = vld [vmem:[#allocation2 + $0x58] sm:$0xf] }
 0x2ea   :  { %4066 = vrot.lane.b32.xlu1 %v3985_v61, %s8503_s28  ;;  %4380 = vrot.lane.b32.xlu0 %v4354_v28, %s8503_s28  ;;  %v4833_v14 = vor.u32 %v4832_v42, %v4828_v4  ;;  %v4024_v8 = vshll.u32 %v7223_v26, 16  ;;  %v4031_v27 = vshll.u32 %v7224_v20, 16  ;;  %v7222_v28 = vcombine.low %v3842_v54, %v3858_v56  ;;  %v3857_v32 = vld [vmem:[#allocation2 + $0x5c] sm:$0x1]  ;;  %v5327_v11 = vld [vmem:[#allocation2 + $0x48] sm:$0xf] }
 0x2eb   :  { %7833 = vmatpush3.bf16.msra.mxu1 %v8294_v48  ;;  %v5466_v0 = vor.u32 %v5465_v19, %v5461_v50  ;;  %v4849_v46 = vshrl.u32 %v7332_v52, 16  ;;  %v4355_v61 = vrot.slane %v8215_v21, 7  ;;  %v7221_v51 = vcombine.low %v3841_v45, %v3857_v32  ;;  %v5343_v33 = vld [vmem:[#allocation2 + $0x4c] sm:$0x1]  ;;  %v4635_v39 = vld [vmem:[#allocation2 + $0x64] sm:$0x1] }
 0x2ec   :  { %7834 = vmatprep.subr.bf16.mxu1 %v8295_v58  ;;  %v4026_v30 = vrot.slane %v4024_v8, 1  ;;  %v4033_v49 = vrot.slane %v4031_v27, 1  ;;  %v4017_v16 = vshll.u32 %v7222_v28, 16  ;;  %v4657_v5 = vld [vmem:[#allocation2 + $0x60] sm:$0xe]  ;;  %v4022_v60 = vshrl.u32 %v7223_v26, 16 }
 0x2ed   :  { %v4854_v57 = vor.u32 %v4853_v7, %v4849_v46  ;;  %v4029_v48 = vshrl.u32 %v7224_v20, 16  ;;  %v9857_v1 = vcombine.low %v5327_v11, %v5343_v33  ;;  %v4010_v52 = vshll.u32 %v7221_v51, 16  ;;  %v8218_v58 = vld [vmem:[#allocation2 + $0x60] ss:$0 sps:$4 sm:$0xff]   ;;  %v9859_v22 = vld [vmem:[#allocation2 + $0x88] ss:$0 sps:$4 sm:$0xff]  }
 0x2ee   :  { %5550 = vrot.lane.b32.xlu1 %v5459_v38, %s8503_s28  ;;  %4068 = vrot.lane.b32.xlu0 %v3992_v37, %s8503_s28  ;;  %v5326_v38 = vld [vmem:[#allocation2 + $0x40] sm:$0xf]  ;;  %v5342_v37 = vld [vmem:[#allocation2 + $0x44] sm:$0x1]  ;;  %v4027_v9 = vor.u32 %v4026_v30, %v4022_v60  ;;  %v4019_v55 = vrot.slane %v4017_v16, 1  ;;  %v7333_v6 = vcombine.low %v4657_v5, %v4635_v39  ;;  %v4353_v54 = vrot.slane %v8218_v58, 7 }
 0x2ef   :  { %7835 = vmatpush3.bf16.msra.mxu1 %v8297_v13  ;;  %v4034_v43 = vor.u32 %v4033_v49, %v4029_v48  ;;  %v7378_v34 = vcombine.low %v5326_v38, %v5342_v37  ;;  %v8221_v42 = vld [vmem:[#allocation2 + $0x78] ss:$0 sps:$4 sm:$0xff]   ;;  %v5484_v31 = vshll.u32 %v9857_v1, 16  ;;  %v9864_v13 = vld [vmem:[#allocation2 + $0x90] ss:$0 sps:$4 sm:$0xff]   ;;  %v4012_v50 = vrot.slane %v4010_v52, 1 }
 0x2f0   :  { %v3862_v19 = vld [vmem:[#allocation2 + $0x84] sm:$0x1]  ;;  %v3845_v26 = vld [vmem:[#allocation2 + $0x78] sm:$0xf]  ;;  %v3861_v20 = vld [vmem:[#allocation2 + $0x7c] sm:$0x1] }
 0x2f1   :  { %v4637_v4 = vld [vmem:[#allocation2 + $0x6c] sm:$0x1]  ;;  %v4658_v7 = vld [vmem:[#allocation2 + $0x68] sm:$0xe]  ;;  %v5477_v21 = vshll.u32 %v7378_v34, 16  ;;  %v5482_v8 = vshrl.u32 %v9857_v1, 16  ;;  %v9876_v16 = vcombine.low %v3845_v26, %v3861_v20 }
 0x2f2   :  { %4918 = vrot.lane.b32.xlu1 %v4847_v15, %s8503_s28  ;;  %4376 = vrot.lane.b32.xlu0 %v4352_v23, %s8503_s28  ;;  %v4015_v23 = vshrl.u32 %v7222_v28, 16  ;;  %v3846_v15 = vld [vmem:[#allocation2 + $0x80] sm:$0xf]  ;;  %v5344_v28 = vld [vmem:[#allocation2 + $0x64] sm:$0x1]  ;;  %v4008_v45 = vshrl.u32 %v7221_v51, 16  ;;  %v9878_v39 = vcombine.low %v4658_v7, %v4637_v4 }
 0x2f3   :  { %v5328_v27 = vld [vmem:[#allocation2 + $0x60] sm:$0xf]  ;;  %v9871_v32 = vcombine.low %v3846_v15, %v3862_v19  ;;  %v9873_v46 = vrot.slane %v5484_v31, 1  ;;  %v4358_v11 = vrot.slane %v9859_v22, 7  ;;  %v3847_v33 = vld [vmem:[#allocation2 + $0x88] sm:$0xf] }
 0x2f4   :  { %v4020_v56 = vor.u32 %v4019_v55, %v4015_v23  ;;  %v4013_v30 = vor.u32 %v4012_v50, %v4008_v45  ;;  %v4641_v5 = vld [vmem:[#allocation2 + $0x7c] sm:$0x1]  ;;  %v4660_v60 = vld [vmem:[#allocation2 + $0x78] sm:$0xe]  ;;  %v5479_v48 = vrot.slane %v5477_v21, 1  ;;  %v4359_v51 = vrot.slane %v9864_v13, 7 }
 0x2f5   :  { %v4639_v38 = vld [vmem:[#allocation2 + $0x74] sm:$0x1]  ;;  %v4659_v37 = vld [vmem:[#allocation2 + $0x70] sm:$0xe]  ;;  %v4856_v52 = vshrl.u32 %v7333_v6, 16  ;;  %v5475_v22 = vshrl.u32 %v7378_v34, 16  ;;  %v9893_v50 = vcombine.low %v4660_v60, %v4641_v5 }
 0x2f6   :  { %4914 = vrot.lane.b32.xlu1 %v4833_v14, %s8503_s28  ;;  %5552 = vrot.lane.b32.xlu0 %v5466_v0, %s8503_s28  ;;  %v4858_v14 = vshll.u32 %v7333_v6, 16  ;;  %v9866_v0 = vld [vmem:[#allocation2 + $0x80] ss:$0 sps:$4 sm:$0xff]   ;;  %v5330_v58 = vld [vmem:[#allocation2 + $0x70] sm:$0xf]  ;;  %v4038_v26 = vshll.u32 %v9876_v16, 16 }
 0x2f7   :  { %v5346_v55 = vld [vmem:[#allocation2 + $0x74] sm:$0x1]  ;;  %v4357_v23 = vrot.slane %v9866_v0, 7  ;;  %v5329_v31 = vld [vmem:[#allocation2 + $0x68] sm:$0xf]  ;;  %v4865_v20 = vshll.u32 %v9878_v39, 16  ;;  %v5480_v4 = vor.u32 %v5479_v48, %v5475_v22 }
 0x2f8   :  { %v4860_v49 = vrot.slane %v4858_v14, 1  ;;  %v5345_v13 = vld [vmem:[#allocation2 + $0x6c] sm:$0x1]  ;;  %v4662_v6 = vld [vmem:[#allocation2 + $0x88] sm:$0xe]  ;;  %v4863_v0 = vshrl.u32 %v9878_v39, 16 }
 0x2f9   :  { %v4645_v15 = vld [vmem:[#allocation2 + $0x8c] sm:$0x1]  ;;  %v4643_v34 = vld [vmem:[#allocation2 + $0x84] sm:$0x1]  ;;  %v4661_v14 = vld [vmem:[#allocation2 + $0x80] sm:$0xe] }
 0x2fa   :  { %4920 = vrot.lane.b32.xlu0 %v4854_v57, %s8503_s28  ;;  %4382 = vrot.lane.b32.xlu1 %v4355_v61, %s8503_s28  ;;  %v4356_v61 = vrot.slane %v8221_v42, 7  ;;  %v3863_v57 = vld [vmem:[#allocation2 + $0x8c] sm:$0x1]  ;;  %v4861_v19 = vor.u32 %v4860_v49, %v4856_v52  ;;  %v5332_v7 = vld [vmem:[#allocation2 + $0x80] sm:$0xf]  ;;  %v4867_v49 = vrot.slane %v4865_v20, 1 }
 0x2fb   :  { %v9887_v42 = vcombine.low %v3847_v33, %v3863_v57  ;;  %v9904_v33 = vcombine.low %v5330_v58, %v5346_v55  ;;  %v5348_v57 = vld [vmem:[#allocation2 + $0x84] sm:$0x1]  ;;  %v4877_v39 = vshrl.u32 %v9893_v50, 16  ;;  %v4879_v5 = vshll.u32 %v9893_v50, 16  ;;  %v5347_v1 = vld [vmem:[#allocation2 + $0x7c] sm:$0x1] }
 0x2fd   :  { %v4881_v22 = vrot.slane %v4879_v5, 1 }
 0x2fe   :  { %4078 = vrot.lane.b32.xlu1 %v4027_v9, %s8503_s28  ;;  %4080 = vrot.lane.b32.xlu0 %v4034_v43, %s8503_s28  ;;  %v4045_v9 = vshll.u32 %v9871_v32, 16  ;;  %v9884_v43 = vcombine.low %v5328_v27, %v5344_v28  ;;  %v9899_v28 = vcombine.low %v4659_v37, %v4639_v38  ;;  %v9915_v38 = vcombine.low %v4661_v14, %v4643_v34 }
 0x2ff   :  { %v9917_v37 = vcombine.low %v5332_v7, %v5348_v57  ;;  %v5656_v7 = vld [vmem:[#allocation2 + $0x10] sm:$0xe]  ;;  %v5659_v57 = vld [vmem:[#allocation2 + $0x1c] sm:$0x1] }
 0x300   :  { %v4047_v21 = vrot.slane %v4045_v9, 1  ;;  %v5491_v27 = vshll.u32 %v9884_v43, 16  ;;  %v5489_v45 = vshrl.u32 %v9884_v43, 16  ;;  %v4872_v48 = vshll.u32 %v9899_v28, 16 }
 0x301   :  { %v5505_v9 = vshll.u32 %v9904_v33, 16  ;;  %v7388_v5 = vrot.slane %v5656_v7, 9  ;;  %v5663_v7 = vld [vmem:[#allocation2 + $0x2c] sm:$0x1] }
 0x302   :  { %4378 = vrot.lane.b32.xlu1 %v4353_v54, %s8503_s28  ;;  %4076 = vrot.lane.b32.xlu0 %v4020_v56, %s8503_s28  ;;  %v4043_v54 = vshrl.u32 %v9871_v32, 16  ;;  %v4036_v56 = vshrl.u32 %v9876_v16, 16  ;;  %v4050_v32 = vshrl.u32 %v9887_v42, 16  ;;  %v9906_v16 = vcombine.low %v5329_v31, %v5345_v13 }
 0x303   :  { %v5493_v60 = vrot.slane %v5491_v27, 1  ;;  %v4870_v31 = vshrl.u32 %v9899_v28, 16  ;;  %v5503_v13 = vshrl.u32 %v9904_v33, 16  ;;  %v5487_v27 = vor.u32 %v9873_v46, %v5482_v8  ;;  %v5661_v46 = vld [vmem:[#allocation2 + $0x24] sm:$0x1] }
 0x304   :  { %v4048_v43 = vor.u32 %v4047_v21, %v4043_v54  ;;  %v5498_v58 = vshll.u32 %v9906_v16, 16  ;;  %v5496_v20 = vshrl.u32 %v9906_v16, 16  ;;  %v5657_v21 = vld [vmem:[#allocation2 + $0x14] sm:$0x1] }
 0x306   :  { %4074 = vrot.lane.b32.xlu1 %v4013_v30, %s8503_s28  ;;  %4384 = vrot.lane.b32.xlu0 %v4356_v61, %s8503_s28  ;;  %v4052_v61 = vshll.u32 %v9887_v42, 16  ;;  %v4040_v30 = vrot.slane %v4038_v26, 1  ;;  %v9930_v26 = vrot.slane %v5505_v9, 1  ;;  %v9935_v34 = vrot.slane %v5498_v58, 1  ;;  %v5660_v9 = vld [vmem:[#allocation2 + $0x20] sm:$0xe] }
 0x307   :  { %v5331_v58 = vld [vmem:[#allocation2 + $0x78] sm:$0xf]  ;;  %v5672_v42 = vld [vmem:[#allocation2 + $0x60] sm:$0xe] }
 0x308   :  { %v4054_v52 = vrot.slane %v4052_v61, 1  ;;  %v4041_v54 = vor.u32 %v4040_v30, %v4036_v56  ;;  %v5658_v61 = vld [vmem:[#allocation2 + $0x18] sm:$0xe] }
 0x309   :  { %v7389_v30 = vrot.slane %v5658_v61, 9 }
 0x30a   :  { %4922 = vrot.lane.b32.xlu1 %v4861_v19, %s8503_s28  ;;  %4388 = vrot.lane.b32.xlu0 %v4358_v11, %s8503_s28  ;;  %v9908_v11 = vcombine.low %v4662_v6, %v4645_v15  ;;  %v4886_v15 = vshll.u32 %v9915_v38, 16  ;;  %v5519_v19 = vshll.u32 %v9917_v37, 16 }
 0x30c   :  { %v4893_v55 = vshll.u32 %v9908_v11, 16  ;;  %v4891_v6 = vshrl.u32 %v9908_v11, 16  ;;  %v9944_v56 = vrot.slane %v4886_v15, 1 }
 0x30e   :  { %5556 = vrot.lane.b32.xlu0 %v5480_v4, %s8503_s28  ;;  %4390 = vrot.lane.b32.xlu1 %v4359_v51, %s8503_s28  ;;  %v9925_v51 = vrot.slane %v4872_v48, 1  ;;  %v9937_v14 = vrot.slane %v4893_v55, 1  ;;  %v5722_v48 = vrot.slane %v5657_v21, 5  ;;  %v5662_v55 = vld [vmem:[#allocation2 + $0x28] sm:$0xe] }
 0x30f   :  { %v5334_v21 = vld [vmem:[#allocation2 + $0x90] sm:$0xf]  ;;  %v7391_v61 = vrot.slane %v5662_v55, 9  ;;  %v5666_v4 = vld [vmem:[#allocation2 + $0x38] sm:$0xe]  ;;  %v4882_v55 = vor.u32 %v4881_v22, %v4877_v39 }
 0x310   :  { %v5723_v8 = vsel %vm9138_vm10, %v7388_v5, %v5722_v48  ;;  %v4055_v48 = vor.u32 %v4054_v52, %v4050_v32  ;;  %v9965_v32 = vcombine.low %v5331_v58, %v5347_v1  ;;  %v4647_v52 = vld [vmem:[#allocation2 + $0x94] sm:$0x1]  ;;  %v5673_v39 = vld [vmem:[#allocation2 + $0x64] sm:$0x1]  ;;  %v5674_v22 = vld [vmem:[#allocation2 + $0x68] sm:$0xe] }
 0x311   :  { %5800 = vst.msk [vmem:[#allocation3 + $0x10] sm:$0xf] %vm16_vm2, %v5723_v8  ;;  %v7393_v8 = vrot.slane %v5666_v4, 9  ;;  %v5675_v58 = vld [vmem:[#allocation2 + $0x6c] sm:$0x1]  ;;  %v5754_v1 = vrot.slane %v5673_v39, 5 }
 0x312   :  { %4386 = vrot.lane.b32.xlu1 %v4357_v23, %s8503_s28  ;;  %4084 = vrot.lane.b32.xlu0 %v4048_v43, %s8503_s28  ;;  %v4868_v23 = vor.u32 %v4867_v49, %v4863_v0  ;;  %v9946_v0 = vrot.slane %v5519_v19, 1  ;;  %v5726_v49 = vrot.slane %v5659_v57, 5  ;;  %v5494_v43 = vor.u32 %v5493_v60, %v5489_v45  ;;  %v5664_v57 = vld [vmem:[#allocation2 + $0x30] sm:$0xe]  ;;  %v5665_v60 = vld [vmem:[#allocation2 + $0x34] sm:$0x1] }
 0x313   :  { %v7390_v19 = vrot.slane %v5660_v9, 9  ;;  %v5734_v45 = vrot.slane %v5663_v7, 5  ;;  %v7392_v5 = vrot.slane %v5664_v57, 9  ;;  %v5738_v9 = vrot.slane %v5665_v60, 5  ;;  %v5676_v60 = vld [vmem:[#allocation2 + $0x70] sm:$0xe] }
 0x314   :  { %v5727_v15 = vsel %vm9138_vm10, %v7389_v30, %v5726_v49  ;;  %v5667_v49 = vld [vmem:[#allocation2 + $0x3c] sm:$0x1] }
 0x315   :  { %5801 = vst.msk [vmem:[#allocation3 + $0x24] sm:$0xf] %vm16_vm2, %v5727_v15  ;;  %v5735_v7 = vsel %vm9138_vm10, %v7391_v61, %v5734_v45  ;;  %v5739_v4 = vsel %vm9138_vm10, %v7392_v5, %v5738_v9  ;;  %v7397_v45 = vrot.slane %v5674_v22, 9  ;;  %v4875_v5 = vor.u32 %v9925_v51, %v4870_v31  ;;  %v5679_v31 = vld [vmem:[#allocation2 + $0x7c] sm:$0x1] }
 0x316   :  { %4082 = vrot.lane.b32.xlu1 %v4041_v54, %s8503_s28  ;;  %4924 = vrot.lane.b32.xlu0 %v4868_v23, %s8503_s28  ;;  %v5350_v54 = vld [vmem:[#allocation2 + $0x94] sm:$0x1]  ;;  %v5730_v23 = vrot.slane %v5661_v46, 5  ;;  %v5668_v46 = vld [vmem:[#allocation2 + $0x40] sm:$0xe]  ;;  %v7398_v9 = vrot.slane %v5676_v60, 9 }
 0x317   :  { %v7394_v15 = vrot.slane %v5668_v46, 9  ;;  %5803 = vst.msk [vmem:[#allocation3 + $0x4c] sm:$0xf] %vm16_vm2, %v5735_v7  ;;  %v9970_v61 = vcombine.low %v5334_v21, %v5350_v54  ;;  %5804 = vst.msk [vmem:[#allocation3 + $0x60] sm:$0xf] %vm16_vm2, %v5739_v4  ;;  %v5758_v54 = vrot.slane %v5675_v58, 5 }
 0x318   :  { %v5731_v30 = vsel %vm9138_vm10, %v7390_v19, %v5730_v23  ;;  %v4663_v19 = vld [vmem:[#allocation2 + $0x90] sm:$0xe]  ;;  %v7396_v23 = vrot.slane %v5672_v42, 9  ;;  %v5517_v7 = vshrl.u32 %v9917_v37, 16  ;;  %v8245_v42 = vld [vmem:[#allocation2] sm:$0x1e]  }
 0x319   :  { %5802 = vst.msk [vmem:[#allocation3 + $0x38] sm:$0xf] %vm16_vm2, %v5731_v30  ;;  %v5677_v30 = vld [vmem:[#allocation2 + $0x74] sm:$0x1]  ;;  %v5759_v33 = vsel %vm9138_vm10, %v7397_v45, %v5758_v54  ;;  %v9998_v4 = vcombine.low %v4663_v19, %v4647_v52  ;;  %v5680_v37 = vld [vmem:[#allocation2 + $0x80] sm:$0xe] }
 0x31a   :  { %5558 = vrot.lane.b32.xlu1 %v5487_v27, %s8503_s28  ;;  %5560 = vrot.lane.b32.xlu0 %v5494_v43, %s8503_s28  ;;  %v5742_v27 = vrot.slane %v5667_v49, 5  ;;  %v5669_v43 = vld [vmem:[#allocation2 + $0x44] sm:$0x1]  ;;  %v5678_v49 = vld [vmem:[#allocation2 + $0x78] sm:$0xe]  ;;  %v5755_v28 = vsel %vm9138_vm10, %v7396_v23, %v5754_v1  ;;  %v5762_v51 = vrot.slane %v5677_v30, 5 }
 0x31b   :  { %v5746_v50 = vrot.slane %v5669_v43, 5  ;;  %v7399_v46 = vrot.slane %v5678_v49, 9  ;;  %v5349_v43 = vld [vmem:[#allocation2 + $0x8c] sm:$0x1]  ;;  %5808 = vst.msk [vmem:[#allocation3 + $0xb0] sm:$0xf] %vm16_vm2, %v5755_v28 }
 0x31c   :  { %v5743_v57 = vsel %vm9138_vm10, %v7393_v8, %v5742_v27  ;;  %v5508_v8 = vor.u32 %v9930_v26, %v5503_v13  ;;  %v5333_v27 = vld [vmem:[#allocation2 + $0x88] sm:$0xf]  ;;  %v5766_v13 = vrot.slane %v5679_v31, 5  ;;  %v5512_v26 = vshll.u32 %v9965_v32, 16  ;;  %5809 = vst.msk [vmem:[#allocation3 + $0xc4] sm:$0xf] %vm16_vm2, %v5759_v33 }
 0x31d   :  { %5805 = vst.msk [vmem:[#allocation3 + $0x74] sm:$0xf] %vm16_vm2, %v5743_v57  ;;  %v5747_v21 = vsel %vm9138_vm10, %v7394_v15, %v5746_v50  ;;  %v5533_v15 = vshll.u32 %v9970_v61, 16  ;;  %v5763_v16 = vsel %vm9138_vm10, %v7398_v9, %v5762_v51  ;;  %v10347_v50 = vshrl.u32 %v9915_v38, 16  ;;  %v5682_v22 = vld [vmem:[#allocation2 + $0x88] sm:$0xe] }
 0x31e   :  { %4086 = vrot.lane.b32.xlu1 %v4055_v48, %s8503_s28  ;;  %4928 = vrot.lane.b32.xlu0 %v4882_v55, %s8503_s28  ;;  %v8240_v48 = vld [vmem:[#allocation2 + $0x10] sm:$0x1e]   ;;  %5806 = vst.msk [vmem:[#allocation3 + $0x88] sm:$0xf] %vm16_vm2, %v5747_v21  ;;  %v5501_v55 = vor.u32 %v9935_v34, %v5496_v20  ;;  %v5681_v20 = vld [vmem:[#allocation2 + $0x84] sm:$0x1]  ;;  %v4896_v34 = vor.u32 %v9937_v14, %v4891_v6  ;;  %v4365_v19 = vpop.permute.xlu0 %4364 }
 0x31f   :  { %v4889_v52 = vor.u32 %v9944_v56, %v10347_v50  ;;  %v5767_v39 = vsel %vm9138_vm10, %v7399_v46, %v5766_v13  ;;  %5810 = vst.msk [vmem:[#allocation3 + $0xd8] sm:$0xf] %vm16_vm2, %v5763_v16  ;;  %v5683_v23 = vld [vmem:[#allocation2 + $0x8c] sm:$0x1]  ;;  %v5522_v57 = vor.u32 %v9946_v0, %v5517_v7  ;;  %v4400_v58 = vsel %vm747_vm7, %v8240_v48, %v4365_v19  ;;  %v8246_v1 = vld [vmem:[#allocation2 + $0x18] sm:$0x1e]  }
 0x320   :  { %5811 = vst.msk [vmem:[#allocation3 + $0xec] sm:$0xf] %vm16_vm2, %v5767_v39  ;;  %v7400_v11 = vrot.slane %v5680_v37, 9  ;;  %v5770_v6 = vrot.slane %v5681_v20, 5  ;;  %v7264_v38 = vcombine.low %v4400_v58, %v4400_v58  ;;  %v7265_v14 = vcombine.high %v4400_v58, %v4400_v58  ;;  %v5684_v60 = vld [vmem:[#allocation2 + $0x90] sm:$0xe] }
 0x321   :  { %v7401_v56 = vrot.slane %v5682_v22, 9  ;;  %v5774_v45 = vrot.slane %v5683_v23, 5  ;;  %v4900_v21 = vshll.u32 %v9998_v4, 16  ;;  %v10018_v54 = vcombine.low %v5333_v27, %v5349_v43  ;;  %v5335_v30 = vld [vmem:[#allocation2 + $0x98] sm:$0xf] }
 0x322   :  { %4926 = vrot.lane.b32.xlu1 %v4875_v5, %s8503_s28  ;;  %5564 = vrot.lane.b32.xlu0 %v5508_v8, %s8503_s28  ;;  %v5514_v5 = vrot.slane %v5512_v26, 1  ;;  %v5771_v0 = vsel %vm9138_vm10, %v7400_v11, %v5770_v6  ;;  %v5685_v49 = vld [vmem:[#allocation2 + $0x94] sm:$0x1]  ;;  %v7294_v9 = vrot.slane %v7264_v38, 9  ;;  %v4530_v8 = vrot.slane %v7265_v14, 5  ;;  %v4361_v28 = vpop.permute.xlu0 %4360  ;;  %v4367_v31 = vpop.permute.xlu1 %4366 }
 0x323   :  { %v5535_v48 = vrot.slane %v5533_v15, 1  ;;  %v5775_v51 = vsel %vm9138_vm10, %v7401_v56, %v5774_v45  ;;  %5812 = vst.msk [vmem:[#allocation3 + $0x100] sm:$0xf] %vm16_vm2, %v5771_v0  ;;  %v4394_v46 = vsel %vm747_vm7, %v8245_v42, %v4361_v28  ;;  %v4403_v7 = vsel %vm747_vm7, %v8246_v1, %v4367_v31  ;;  %v5351_v27 = vld [vmem:[#allocation2 + $0x9c] sm:$0x1] }
 0x324   :  { %5813 = vst.msk [vmem:[#allocation3 + $0x114] sm:$0xf] %vm16_vm2, %v5775_v51  ;;  %v5778_v43 = vrot.slane %v5685_v49, 5  ;;  %v4531_v33 = vsel %vm9138_vm10, %v7294_v9, %v4530_v8  ;;  %v7260_v13 = vcombine.low %v4394_v46, %v4394_v46  ;;  %v7261_v26 = vcombine.high %v4394_v46, %v4394_v46  ;;  %v4620_v16 = vld [vmem:[#allocation2 + $0x18] sm:$0xf] }
 0x325   :  { %v7266_v15 = vcombine.low %v4403_v7, %v4403_v7  ;;  %4602 = vst [vmem:[#allocation3 + $0x2c] sm:$0xf] %v4531_v33  ;;  %v5510_v37 = vshrl.u32 %v9965_v32, 16  ;;  %v5531_v20 = vshrl.u32 %v9970_v61, 16  ;;  %v7267_v42 = vcombine.high %v4403_v7, %v4403_v7  ;;  %v8434_v1 = vld [vmem:[#allocation2 + $0x1c] sm:$0x1] }
 0x326   :  { %5562 = vrot.lane.b32.xlu1 %v5501_v55, %s8503_s28  ;;  %4932 = vrot.lane.b32.xlu0 %v4896_v34, %s8503_s28  ;;  %v7402_v55 = vrot.slane %v5684_v60, 9  ;;  %v7292_v50 = vrot.slane %v7260_v13, 9  ;;  %v4522_v19 = vrot.slane %v7261_v26, 5  ;;  %v7387_v22 = vcombine.low %v5335_v30, %v5351_v27  ;;  %v8435_v60 = vld [vmem:[#allocation2 + $0x18] sm:$0xf] }
 0x327   :  { %v7295_v39 = vrot.slane %v7266_v15, 9  ;;  %v5515_v23 = vor.u32 %v5514_v5, %v5510_v37  ;;  %v4534_v58 = vrot.slane %v7267_v42, 5  ;;  %v7310_v32 = vcombine.low %v4620_v16, %v8434_v1  ;;  %v8436_v31 = vld [vmem:[#allocation2 + $0xc] sm:$0x1]  ;;  %v8437_v42 = vld [vmem:[#allocation2 + $0x18] sm:$0xf] }
 0x328   :  { %v5779_v34 = vsel %vm9138_vm10, %v7402_v55, %v5778_v43  ;;  %v5536_v11 = vor.u32 %v5535_v48, %v5531_v20  ;;  %v4523_v61 = vsel %vm9138_vm10, %v7292_v50, %v4522_v19  ;;  %v4902_v6 = vrot.slane %v4900_v21, 1  ;;  %v4616_v21 = vld [vmem:[#allocation2 + $0x8] sm:$0xf] }
 0x329   :  { %5814 = vst.msk [vmem:[#allocation3 + $0x128] sm:$0xf] %vm16_vm2, %v5779_v34  ;;  %v5526_v38 = vshll.u32 %v10018_v54, 16  ;;  %4600 = vst [vmem:[#allocation3 + $0x4] sm:$0xf] %v4523_v61  ;;  %v4898_v56 = vshrl.u32 %v9998_v4, 16  ;;  %v7308_v51 = vcombine.low %v4616_v21, %v8436_v31 }
 0x32a   :  { %4930 = vrot.lane.b32.xlu1 %v4889_v52, %s8503_s28  ;;  %5568 = vrot.lane.b32.xlu0 %v5522_v57, %s8503_s28  ;;  %v4535_v52 = vsel %vm9138_vm10, %v7295_v39, %v4534_v58  ;;  %v4909_v57 = vpop.permute.xlu0 %4908  ;;  %v4063_v14 = vpop.permute.xlu1 %4062  ;;  %v5540_v30 = vshll.u32 %v7387_v22, 16  ;;  %v5524_v4 = vshrl.u32 %v10018_v54, 16  ;;  %v5538_v7 = vshrl.u32 %v7387_v22, 16 }
 0x32b   :  { %4603 = vst [vmem:[#allocation3 + $0x40] sm:$0xf] %v4535_v52  ;;  %v4944_v45 = vsel %vm747_vm7, %v7310_v32, %v4909_v57  ;;  %v4102_v5 = vsel %vm747_vm7, %v8435_v60, %v4063_v14  ;;  %v4903_v9 = vor.u32 %v4902_v6, %v4898_v56  ;;  %v5528_v8 = vrot.slane %v5526_v38, 1  ;;  %v8438_v38 = vld [vmem:[#allocation2 + $0x20] sm:$0xf] }
 0x32c   :  { %v7344_v0 = vcombine.low %v4944_v45, %v4944_v45  ;;  %v7345_v49 = vcombine.high %v4944_v45, %v4944_v45  ;;  %4155 = vst [vmem:[#allocation3 + $0x3c] sm:$0xf] %v4102_v5  ;;  %v5542_v27 = vrot.slane %v5540_v30, 1  ;;  %v8262_v60 = vld [vmem:[#allocation2 + $0x30] sm:$0x1e]  }
 0x32d   :  { %v5529_v26 = vor.u32 %v5528_v8, %v5524_v4 }
 0x32e   :  { %5566 = vrot.lane.b32.xlu1 %v5515_v23, %s8503_s28  ;;  %5572 = vrot.lane.b32.xlu0 %v5536_v11, %s8503_s28  ;;  %v5093_v48 = vshrl.u32 %v7344_v0, 16  ;;  %v5096_v28 = vshll.u32 %v7344_v0, 16  ;;  %v4905_v46 = vpop.permute.xlu0 %4904  ;;  %v5102_v33 = vshll.u32 %v7345_v49, 16  ;;  %v5543_v19 = vor.u32 %v5542_v27, %v5538_v7  ;;  %v8257_v23 = vld [vmem:[#allocation2 + $0x8] sm:$0x1e]  }
 0x32f   :  { %v4938_v13 = vsel %vm747_vm7, %v7308_v51, %v4905_v46  ;;  %v8439_v51 = vld [vmem:[#allocation2 + $0x8] sm:$0xf] }
 0x330   :  { %v5095_v55 = vrot.slane %v5093_v48, 4  ;;  %v5098_v43 = vrot.slane %v5096_v28, 5  ;;  %v7340_v15 = vcombine.low %v4938_v13, %v4938_v13  ;;  %v7341_v16 = vcombine.high %v4938_v13, %v4938_v13  ;;  %v4622_v48 = vld [vmem:[#allocation2 + $0x20] sm:$0xf] }
 0x331   :  { %v5547_v37 = vpop.permute.xlu1 %5546  ;;  %v5104_v22 = vrot.slane %v5102_v33, 5 }
 0x332   :  { %4934 = vrot.lane.b32.xlu1 %v4903_v9, %s8503_s28  ;;  %v5099_v20 = vor.u32 %v5098_v43, %v5095_v55  ;;  %v5582_v34 = vsel %vm747_vm7, %v8437_v42, %v5547_v37  ;;  %v5065_v50 = vshrl.u32 %v7340_v15, 16  ;;  %v5068_v54 = vshll.u32 %v7340_v15, 16  ;;  %v8440_v55 = vld [vmem:[#allocation2 + $0x24] sm:$0x1] }
 0x333   :  { %5641 = vst [vmem:[#allocation3 + $0x20] sm:$0xf] %v5582_v34  ;;  %v5074_v32 = vshll.u32 %v7341_v16, 16  ;;  %v4065_v11 = vpop.permute.xlu0 %4064  ;;  %v7311_v43 = vcombine.low %v4622_v48, %v8440_v55  ;;  %v8441_v34 = vld [vmem:[#allocation2 + $0x20] sm:$0xf] }
 0x334   :  { %v5100_v39 = vrot.slane %v5099_v20, 4  ;;  %v5067_v58 = vrot.slane %v5065_v50, 4  ;;  %v5070_v1 = vrot.slane %v5068_v54, 5  ;;  %v4106_v52 = vsel %vm747_vm7, %v8438_v38, %v4065_v11  ;;  %v8442_v54 = vld [vmem:[#allocation2 + $0x14] sm:$0x1] }
 0x335   :  { %v4363_v61 = vpop.permute.xlu1 %4362  ;;  %4156 = vst [vmem:[#allocation3 + $0x50] sm:$0xf] %v4106_v52  ;;  %v5076_v21 = vrot.slane %v5074_v32, 5  ;;  %v8317_v52 = vld [vmem:[%s10302_s1 + $0x230] sm:$0xff]  }
 0x336   :  { %5570 = vrot.lane.b32.xlu1 %v5529_v26, %s8503_s28  ;;  %v5105_v6 = vsel %vm9309_vm13, %v5100_v39, %v5104_v22  ;;  %v4397_v57 = vsel %vm747_vm7, %v8257_v23, %v4363_v61  ;;  %v5071_v14 = vor.u32 %v5070_v1, %v5067_v58  ;;  %v4618_v26 = vld [vmem:[#allocation2 + $0x10] sm:$0xf] }
 0x337   :  { %5306 = vst [vmem:[#allocation3 + $0x30] sm:$0xf] %v5105_v6  ;;  %v7262_v56 = vcombine.low %v4397_v57, %v4397_v57  ;;  %v7263_v45 = vcombine.high %v4397_v57, %v4397_v57  ;;  %v4373_v49 = vpop.permute.xlu0 %4372 }
 0x338   :  { %v5072_v5 = vrot.slane %v5071_v14, 4  ;;  %v4412_v8 = vsel %vm747_vm7, %v8262_v60, %v4373_v49 }
 0x339   :  { %v7293_v30 = vrot.slane %v7262_v56, 9  ;;  %v4526_v0 = vrot.slane %v7263_v45, 5  ;;  %v7272_v46 = vcombine.low %v4412_v8, %v4412_v8  ;;  %v7273_v7 = vcombine.high %v4412_v8, %v4412_v8  ;;  %v8278_v56 = vld [vmem:[#allocation2 + $0x38] sm:$0x1e]   ;;  %v8277_v8 = vld [vmem:[#allocation2 + $0x20] sm:$0x1e]  }
 0x33a   :  { %5574 = vrot.lane.b32.xlu1 %v5543_v19, %s8503_s28  ;;  %v4059_v9 = vpop.permute.xlu1 %4058  ;;  %v5077_v28 = vsel %vm9309_vm13, %v5072_v5, %v5076_v21  ;;  %v7309_v19 = vcombine.low %v4618_v26, %v8442_v54  ;;  %v8443_v21 = vld [vmem:[#allocation2 + $0x10] sm:$0xf] }
 0x33b   :  { %v4527_v31 = vsel %vm9138_vm10, %v7293_v30, %v4526_v0  ;;  %v4094_v4 = vsel %vm747_vm7, %v8439_v51, %v4059_v9  ;;  %5304 = vst [vmem:[#allocation3 + $0x8] sm:$0xf] %v5077_v28  ;;  %v7298_v27 = vrot.slane %v7272_v46, 9  ;;  %v4546_v33 = vrot.slane %v7273_v7, 5  ;;  %v8331_v46 = vld [vmem:[%s10302_s1 + $0x228] sm:$0xff]  }
 0x33c   :  { %4601 = vst [vmem:[#allocation3 + $0x18] sm:$0xf] %v4527_v31  ;;  %4153 = vst [vmem:[#allocation3 + $0x14] sm:$0xf] %v4094_v4 }
 0x33d   :  { %v4547_v37 = vsel %vm9138_vm10, %v7298_v27, %v4546_v33 }
 0x33e   :  { %v4911_v13 = vpop.permute.xlu1 %4910  ;;  %4606 = vst [vmem:[#allocation3 + $0x7c] sm:$0xf] %v4547_v37 }
 0x33f   :  { %v4947_v15 = vsel %vm747_vm7, %v7311_v43, %v4911_v13  ;;  %v5549_v16 = vpop.permute.xlu0 %5548 }
 0x340   :  { %v7346_v20 = vcombine.low %v4947_v15, %v4947_v15  ;;  %v7347_v42 = vcombine.high %v4947_v15, %v4947_v15  ;;  %v5586_v50 = vsel %vm747_vm7, %v8441_v34, %v5549_v16 }
 0x341   :  { %5642 = vst [vmem:[#allocation3 + $0x34] sm:$0xf] %v5586_v50 }
 0x342   :  { %v5107_v39 = vshrl.u32 %v7346_v20, 16  ;;  %v5110_v22 = vshll.u32 %v7346_v20, 16  ;;  %v4907_v23 = vpop.permute.xlu1 %4906  ;;  %v5116_v58 = vshll.u32 %v7347_v42, 16  ;;  %v8339_v20 = vld [vmem:[%s10302_s1 + $0x220] sm:$0xff]  }
 0x343   :  { %v4941_v1 = vsel %vm747_vm7, %v7309_v19, %v4907_v23  ;;  %v8279_v32 = vld [vmem:[#allocation3] ss:$20 sps:$4 sm:$0xff]   ;;  %v8281_v11 = vld [vmem:[#allocation3 + $0x4] ss:$20 sps:$4 sm:$0xff]   ;;  %v8444_v23 = vld [vmem:[#allocation2 + $0x10] sm:$0xf] }
 0x344   :  { %v5109_v61 = vrot.slane %v5107_v39, 4  ;;  %v5112_v6 = vrot.slane %v5110_v22, 5  ;;  %v7342_v38 = vcombine.low %v4941_v1, %v4941_v1  ;;  %v7343_v57 = vcombine.high %v4941_v1, %v4941_v1  ;;  %6409 = vmatprep.mubr.bf16.mxu0 %v8281_v11  ;;  %v4628_v39 = vld [vmem:[#allocation2 + $0x38] sm:$0xf]  ;;  %v8285_v11 = vld [vmem:[#allocation3 + $0x2c] ss:$20 sps:$4 sm:$0xff]  }
 0x345   :  { %6410 = vmatmul.mubr.bf16.vlgmr.msra.gmra.mxu0 %v8279_v32  ;;  %v5118_v49 = vrot.slane %v5116_v58, 5  ;;  %v8445_v1 = vld [vmem:[#allocation2 + $0x38] sm:$0xf] }
 0x346   :  { %v4061_v14 = vpop.permute.xlu0 %4060  ;;  %v5113_v45 = vor.u32 %v5112_v6, %v5109_v61  ;;  %v5079_v60 = vshrl.u32 %v7342_v38, 16  ;;  %v5082_v5 = vshll.u32 %v7342_v38, 16  ;;  %v5088_v9 = vshll.u32 %v7343_v57, 16  ;;  %7951 = vmatpush3.bf16.msra.mxu0 %v9848_v63  ;;  %6417 = vmatprep.mubr.bf16.mxu0 %v8285_v11  ;;  %v8446_v38 = vld [vmem:[#allocation2 + $0x3c] sm:$0x1] }
 0x347   :  { %v4098_v30 = vsel %vm747_vm7, %v8443_v21, %v4061_v14  ;;  %7952 = vmatprep.subr.bf16.mxu0 %v8317_v52 }
 0x348   :  { %v4375_v0 = vpop.permute.xlu1 %4374  ;;  %4154 = vst [vmem:[#allocation3 + $0x28] sm:$0xf] %v4098_v30  ;;  %v5114_v28 = vrot.slane %v5113_v45, 4  ;;  %v5081_v31 = vrot.slane %v5079_v60, 4  ;;  %v5084_v51 = vrot.slane %v5082_v5, 5  ;;  %v5090_v37 = vrot.slane %v5088_v9, 5 }
 0x349   :  { %v4415_v48 = vsel %vm747_vm7, %v8278_v56, %v4375_v0  ;;  %v4624_v56 = vld [vmem:[#allocation2 + $0x28] sm:$0xf]  ;;  %v8447_v60 = vld [vmem:[#allocation2 + $0x38] sm:$0xf]  ;;  %v8448_v0 = vld [vmem:[#allocation2 + $0x2c] sm:$0x1] }
 0x34a   :  { %v7274_v4 = vcombine.low %v4415_v48, %v4415_v48  ;;  %v4369_v7 = vpop.permute.xlu0 %4368  ;;  %v7275_v27 = vcombine.high %v4415_v48, %v4415_v48  ;;  %v5119_v55 = vsel %vm9309_vm13, %v5114_v28, %v5118_v49  ;;  %v5085_v43 = vor.u32 %v5084_v51, %v5081_v31  ;;  %7953 = vmatpush3.bf16.msra.mxu0 %v8317_v52  ;;  %v8293_v9 = vld [vmem:[#allocation2 + $0x28] sm:$0x1e]  }
 0x34b   :  { %v4406_v33 = vsel %vm747_vm7, %v8277_v8, %v4369_v7  ;;  %5307 = vst [vmem:[#allocation3 + $0x44] sm:$0xf] %v5119_v55  ;;  %7954 = vmatprep.subr.bf16.mxu0 %v8331_v46  ;;  %v7314_v52 = vcombine.low %v4628_v39, %v8446_v38  ;;  %v7312_v49 = vcombine.low %v4624_v56, %v8448_v0  ;;  %v8451_v0 = vld [vmem:[#allocation2 + $0x30] sm:$0xf] }
 0x34c   :  { %v7299_v13 = vrot.slane %v7274_v4, 9  ;;  %v7268_v63 = vcombine.low %v4406_v33, %v4406_v33  ;;  %v7269_v26 = vcombine.high %v4406_v33, %v4406_v33  ;;  %v4550_v15 = vrot.slane %v7275_v27, 5 }
 0x34d   :  { %v5086_v16 = vrot.slane %v5085_v43, 4 }
 0x34e   :  { %v7296_v42 = vrot.slane %v7268_v63, 9  ;;  %v4538_v34 = vrot.slane %v7269_v26, 5  ;;  %v4551_v50 = vsel %vm9138_vm10, %v7299_v13, %v4550_v15  ;;  %7955 = vmatpush3.bf16.msra.mxu0 %v8331_v46 }
 0x34f   :  { %v5091_v22 = vsel %vm9309_vm13, %v5086_v16, %v5090_v37  ;;  %4607 = vst [vmem:[#allocation3 + $0x90] sm:$0xf] %v4551_v50  ;;  %v8290_v6 = vld [vmem:[#allocation3 + $0x28] ss:$20 sps:$4 sm:$0xff]   ;;  %7956 = vmatprep.subr.bf16.mxu0 %v8339_v20  ;;  %v8296_v50 = vld [vmem:[#allocation2 + $0x60] sm:$0x1e]  }
 0x350   :  { %v5545_v54 = vpop.permute.xlu0 %5544  ;;  %v4071_v19 = vpop.permute.xlu1 %4070  ;;  %5305 = vst [vmem:[#allocation3 + $0x1c] sm:$0xf] %v5091_v22  ;;  %v4539_v61 = vsel %vm9138_vm10, %v7296_v42, %v4538_v34  ;;  %6418 = vmatmul.mubr.bf16.gmra.mxu0 %v8290_v6  ;;  %v8449_v22 = vld [vmem:[#allocation2 + $0x28] sm:$0xf] }
 0x351   :  { %v5578_v58 = vsel %vm747_vm7, %v8444_v23, %v5545_v54  ;;  %v4118_v32 = vsel %vm747_vm7, %v8445_v1, %v4071_v19  ;;  %4604 = vst [vmem:[#allocation3 + $0x54] sm:$0xf] %v4539_v61 }
 0x352   :  { %5640 = vst [vmem:[#allocation3 + $0xc] sm:$0xf] %v5578_v58  ;;  %4159 = vst [vmem:[#allocation3 + $0x8c] sm:$0xf] %v4118_v32  ;;  %7957 = vmatpush3.bf16.msra.mxu0 %v8339_v20 }
 0x354   :  { %v4917_v57 = vpop.permute.xlu0 %4916  ;;  %v5555_v14 = vpop.permute.xlu1 %5554 }
 0x355   :  { %v4956_v45 = vsel %vm747_vm7, %v7314_v52, %v4917_v57  ;;  %v5598_v5 = vsel %vm747_vm7, %v8447_v60, %v5555_v14 }
 0x356   :  { %v7352_v21 = vcombine.low %v4956_v45, %v4956_v45  ;;  %v7353_v30 = vcombine.high %v4956_v45, %v4956_v45  ;;  %5645 = vst [vmem:[#allocation3 + $0x70] sm:$0xf] %v5598_v5  ;;  %v4630_v45 = vld [vmem:[#allocation2 + $0x40] sm:$0xf] }
 0x357   :  { %v8298_v7 = vld [vmem:[#allocation3 + $0x8] ss:$20 sps:$4 sm:$0xff]  }
 0x358   :  { %v5149_v8 = vshrl.u32 %v7352_v21, 16  ;;  %v5152_v48 = vshll.u32 %v7352_v21, 16  ;;  %v5158_v28 = vshll.u32 %v7353_v30, 16  ;;  %v4913_v31 = vpop.permute.xlu0 %4912  ;;  %v4371_v51 = vpop.permute.xlu1 %4370  ;;  %v8450_v21 = vld [vmem:[#allocation2 + $0x28] sm:$0xf] }
 0x359   :  { %v4950_v4 = vsel %vm747_vm7, %v7312_v49, %v4913_v31  ;;  %v4409_v46 = vsel %vm747_vm7, %v8293_v9, %v4371_v51  ;;  %v8300_v33 = vld [vmem:[#allocation3 + $0xc] ss:$20 sps:$4 sm:$0xff]   ;;  %v8302_v9 = vld [vmem:[#allocation2 + $0x50] sm:$0x1e]   ;;  %v8452_v31 = vld [vmem:[#allocation2 + $0x44] sm:$0x1] }
 0x35a   :  { %v5151_v27 = vrot.slane %v5149_v8, 4  ;;  %v5154_v55 = vrot.slane %v5152_v48, 5  ;;  %v7348_v43 = vcombine.low %v4950_v4, %v4950_v4  ;;  %v7349_v13 = vcombine.high %v4950_v4, %v4950_v4  ;;  %6506 = vmatprep.mubr.bf16.mxu1 %v8300_v33 }
 0x35b   :  { %v7270_v63 = vcombine.low %v4409_v46, %v4409_v46  ;;  %v7271_v26 = vcombine.high %v4409_v46, %v4409_v46  ;;  %v5160_v16 = vrot.slane %v5158_v28, 5  ;;  %6507 = vmatmul.mubr.bf16.vlgmr.msra.gmra.mxu1 %v8298_v7  ;;  %v7315_v51 = vcombine.low %v4630_v45, %v8452_v31 }
 0x35c   :  { %v5155_v15 = vor.u32 %v5154_v55, %v5151_v27  ;;  %v5121_v37 = vshrl.u32 %v7348_v43, 16  ;;  %v5124_v20 = vshll.u32 %v7348_v43, 16  ;;  %v4067_v42 = vpop.permute.xlu1 %4066  ;;  %v4381_v34 = vpop.permute.xlu0 %4380  ;;  %v5130_v54 = vshll.u32 %v7349_v13, 16  ;;  %v4626_v27 = vld [vmem:[#allocation2 + $0x30] sm:$0xf] }
 0x35d   :  { %v7297_v19 = vrot.slane %v7270_v63, 9  ;;  %v4542_v39 = vrot.slane %v7271_v26, 5  ;;  %v4110_v23 = vsel %vm747_vm7, %v8449_v22, %v4067_v42  ;;  %v4424_v11 = vsel %vm747_vm7, %v8296_v50, %v4381_v34 }
 0x35e   :  { %v5156_v58 = vrot.slane %v5155_v15, 4  ;;  %v5123_v1 = vrot.slane %v5121_v37, 4  ;;  %v5126_v32 = vrot.slane %v5124_v20, 5  ;;  %4157 = vst [vmem:[#allocation3 + $0x64] sm:$0xf] %v4110_v23  ;;  %v7280_v6 = vcombine.low %v4424_v11, %v4424_v11 }
 0x35f   :  { %v4543_v61 = vsel %vm9138_vm10, %v7297_v19, %v4542_v39  ;;  %v7281_v38 = vcombine.high %v4424_v11, %v4424_v11  ;;  %v5132_v48 = vrot.slane %v5130_v54, 5  ;;  %v8453_v15 = vld [vmem:[#allocation2 + $0x34] sm:$0x1]  ;;  %v4632_v39 = vld [vmem:[#allocation2 + $0x58] sm:$0xf] }
 0x360   :  { %v5161_v52 = vsel %vm9309_vm13, %v5156_v58, %v5160_v16  ;;  %v5127_v57 = vor.u32 %v5126_v32, %v5123_v1  ;;  %4605 = vst [vmem:[#allocation3 + $0x68] sm:$0xf] %v4543_v61  ;;  %v5551_v14 = vpop.permute.xlu1 %5550  ;;  %v4069_v56 = vpop.permute.xlu0 %4068  ;;  %v7302_v60 = vrot.slane %v7280_v6, 9  ;;  %v7313_v16 = vcombine.low %v4626_v27, %v8453_v15  ;;  %v8454_v1 = vld [vmem:[#allocation2 + $0x30] sm:$0xf] }
 0x361   :  { %5310 = vst [vmem:[#allocation3 + $0x80] sm:$0xf] %v5161_v52  ;;  %v4562_v5 = vrot.slane %v7281_v38, 5  ;;  %v5590_v30 = vsel %vm747_vm7, %v8450_v21, %v5551_v14  ;;  %v4114_v49 = vsel %vm747_vm7, %v8451_v0, %v4069_v56  ;;  %v8308_v11 = vld [vmem:[#allocation3 + $0x7c] ss:$20 sps:$4 sm:$0xff]  }
 0x362   :  { %v5128_v8 = vrot.slane %v5127_v57, 4  ;;  %5643 = vst [vmem:[#allocation3 + $0x48] sm:$0xf] %v5590_v30  ;;  %4158 = vst [vmem:[#allocation3 + $0x78] sm:$0xf] %v4114_v49 }
 0x363   :  { %v4563_v28 = vsel %vm9138_vm10, %v7302_v60, %v4562_v5  ;;  %v8455_v56 = vld [vmem:[#allocation2 + $0x5c] sm:$0x1]  ;;  %v8311_v60 = vld [vmem:[#allocation2 + $0x68] sm:$0x1e]   ;;  %v8314_v5 = vld [vmem:[#allocation3 + $0x30] ss:$20 sps:$4 sm:$0xff]  }
 0x364   :  { %v5133_v4 = vsel %vm9309_vm13, %v5128_v8, %v5132_v48  ;;  %4610 = vst [vmem:[#allocation3 + $0xcc] sm:$0xf] %v4563_v28  ;;  %v4919_v46 = vpop.permute.xlu1 %4918  ;;  %v4377_v7 = vpop.permute.xlu0 %4376  ;;  %v7316_v45 = vcombine.low %v4632_v39, %v8455_v56 }
 0x365   :  { %5308 = vst [vmem:[#allocation3 + $0x58] sm:$0xf] %v5133_v4  ;;  %v4959_v55 = vsel %vm747_vm7, %v7315_v51, %v4919_v46  ;;  %v4418_v43 = vsel %vm747_vm7, %v8302_v9, %v4377_v7  ;;  %v8307_v20 = vld [vmem:[#allocation3 + $0x50] ss:$20 sps:$4 sm:$0xff]  }
 0x366   :  { %v7354_v33 = vcombine.low %v4959_v55, %v4959_v55  ;;  %v7355_v13 = vcombine.high %v4959_v55, %v4959_v55  ;;  %v7276_v63 = vcombine.low %v4418_v43, %v4418_v43  ;;  %v7277_v26 = vcombine.high %v4418_v43, %v4418_v43 }
 0x367   :  { %v8305_v37 = vld [vmem:[#allocation3 + $0x54] ss:$20 sps:$4 sm:$0xff]  }
 0x368   :  { %v5163_v42 = vshrl.u32 %v7354_v33, 16  ;;  %v5166_v34 = vshll.u32 %v7354_v33, 16  ;;  %v7300_v50 = vrot.slane %v7276_v63, 9  ;;  %v4915_v54 = vpop.permute.xlu1 %4914  ;;  %v5553_v19 = vpop.permute.xlu0 %5552  ;;  %v5172_v22 = vshll.u32 %v7355_v13, 16  ;;  %6425 = vmatprep.mubr.bf16.mxu0 %v8305_v37 }
 0x369   :  { %v4554_v23 = vrot.slane %v7277_v26, 5  ;;  %v4953_v58 = vsel %vm747_vm7, %v7313_v16, %v4915_v54  ;;  %v5594_v32 = vsel %vm747_vm7, %v8454_v1, %v5553_v19  ;;  %6426 = vmatmul.mubr.bf16.gmra.mxu0 %v8307_v20  ;;  %v8312_v52 = vld [vmem:[#allocation3 + $0x34] ss:$20 sps:$4 sm:$0xff]   ;;  %v8315_v20 = vld [vmem:[#allocation3 + $0x78] ss:$20 sps:$4 sm:$0xff]  }
 0x36a   :  { %v5165_v61 = vrot.slane %v5163_v42, 4  ;;  %v5168_v6 = vrot.slane %v5166_v34, 5  ;;  %v7350_v38 = vcombine.low %v4953_v58, %v4953_v58  ;;  %5644 = vst [vmem:[#allocation3 + $0x5c] sm:$0xf] %v5594_v32  ;;  %v7351_v14 = vcombine.high %v4953_v58, %v4953_v58  ;;  %6433 = vmatprep.mubr.bf16.mxu0 %v8308_v11  ;;  %6514 = vmatprep.mubr.bf16.mxu1 %v8312_v52  ;;  %v8456_v54 = vld [vmem:[#allocation2 + $0x68] sm:$0xf] }
 0x36b   :  { %v4555_v57 = vsel %vm9138_vm10, %v7300_v50, %v4554_v23  ;;  %v5174_v8 = vrot.slane %v5172_v22, 5  ;;  %6515 = vmatmul.mubr.bf16.gmra.mxu1 %v8314_v5  ;;  %v8457_v58 = vld [vmem:[#allocation2 + $0x70] sm:$0xf]  ;;  %v8316_v11 = vld [vmem:[#allocation2 + $0x58] sm:$0x1e]  }
 0x36c   :  { %v5169_v21 = vor.u32 %v5168_v6, %v5165_v61  ;;  %4608 = vst [vmem:[#allocation3 + $0xa4] sm:$0xf] %v4555_v57  ;;  %v5135_v30 = vshrl.u32 %v7350_v38, 16  ;;  %v5138_v0 = vshll.u32 %v7350_v38, 16  ;;  %v4921_v49 = vpop.permute.xlu0 %4920  ;;  %v4383_v9 = vpop.permute.xlu1 %4382  ;;  %v5144_v48 = vshll.u32 %v7351_v14, 16 }
 0x36d   :  { %v4962_v28 = vsel %vm747_vm7, %v7316_v45, %v4921_v49  ;;  %v4427_v31 = vsel %vm747_vm7, %v8311_v60, %v4383_v9  ;;  %v8458_v14 = vld [vmem:[#allocation2 + $0x60] sm:$0xf] }
 0x36e   :  { %v5170_v51 = vrot.slane %v5169_v21, 4  ;;  %v5137_v4 = vrot.slane %v5135_v30, 4  ;;  %v5140_v46 = vrot.slane %v5138_v0, 5  ;;  %v7356_v7 = vcombine.low %v4962_v28, %v4962_v28  ;;  %v8318_v30 = vld [vmem:[#allocation2 + $0x70] sm:$0x1e]  }
 0x36f   :  { %v5146_v27 = vrot.slane %v5144_v48, 5  ;;  %v7357_v55 = vcombine.high %v4962_v28, %v4962_v28  ;;  %v7282_v43 = vcombine.low %v4427_v31, %v4427_v31  ;;  %v7283_v33 = vcombine.high %v4427_v31, %v4427_v31  ;;  %v4634_v28 = vld [vmem:[#allocation2 + $0x60] sm:$0xf]  ;;  %v8459_v31 = vld [vmem:[#allocation2 + $0x58] sm:$0xf] }
 0x370   :  { %v5175_v13 = vsel %vm9309_vm13, %v5170_v51, %v5174_v8  ;;  %v5141_v63 = vor.u32 %v5140_v46, %v5137_v4  ;;  %v5177_v26 = vshrl.u32 %v7356_v7, 16  ;;  %v5180_v15 = vshll.u32 %v7356_v7, 16  ;;  %v4079_v16 = vpop.permute.xlu1 %4078  ;;  %v4081_v37 = vpop.permute.xlu0 %4080 }
 0x371   :  { %5311 = vst [vmem:[#allocation3 + $0x94] sm:$0xf] %v5175_v13  ;;  %v5186_v42 = vshll.u32 %v7357_v55, 16  ;;  %v7303_v34 = vrot.slane %v7282_v43, 9  ;;  %v4566_v50 = vrot.slane %v7283_v33, 5  ;;  %v4134_v19 = vsel %vm747_vm7, %v8456_v54, %v4079_v16  ;;  %6434 = vmatmul.mubr.bf16.gmra.mxu0 %v8315_v20 }
 0x372   :  { %v5142_v39 = vrot.slane %v5141_v63, 4  ;;  %v5179_v22 = vrot.slane %v5177_v26, 4  ;;  %v5182_v23 = vrot.slane %v5180_v15, 5  ;;  %4163 = vst [vmem:[#allocation3 + $0xdc] sm:$0xf] %v4134_v19  ;;  %v4138_v1 = vsel %vm747_vm7, %v8457_v58, %v4081_v37 }
 0x373   :  { %v4567_v32 = vsel %vm9138_vm10, %v7303_v34, %v4566_v50  ;;  %4164 = vst [vmem:[#allocation3 + $0xf0] sm:$0xf] %v4138_v1  ;;  %v5188_v60 = vrot.slane %v5186_v42, 5  ;;  %v8460_v55 = vld [vmem:[#allocation2 + $0x64] sm:$0x1] }
 0x374   :  { %v5147_v61 = vsel %vm9309_vm13, %v5142_v39, %v5146_v27  ;;  %v5183_v6 = vor.u32 %v5182_v23, %v5179_v22  ;;  %4611 = vst [vmem:[#allocation3 + $0xe0] sm:$0xf] %v4567_v32  ;;  %v4379_v38 = vpop.permute.xlu1 %4378  ;;  %v4077_v52 = vpop.permute.xlu0 %4076  ;;  %v7317_v43 = vcombine.low %v4634_v28, %v8460_v55  ;;  %v8320_v33 = vld [vmem:[#allocation2 + $0x80] sm:$0x1e]   ;;  %v8321_v16 = vld [vmem:[#allocation3 + $0x5c] ss:$20 sps:$4 sm:$0xff]  }
 0x375   :  { %5309 = vst [vmem:[#allocation3 + $0x6c] sm:$0xf] %v5147_v61  ;;  %v4421_v57 = vsel %vm747_vm7, %v8316_v11, %v4379_v38  ;;  %v4130_v56 = vsel %vm747_vm7, %v8458_v14, %v4077_v52  ;;  %6522 = vmatprep.mubr.bf16.mxu1 %v8321_v16  ;;  %v8324_v22 = vld [vmem:[#allocation2 + $0x88] sm:$0x1e]  }
 0x376   :  { %v5184_v45 = vrot.slane %v5183_v6, 4  ;;  %v7278_v5 = vcombine.low %v4421_v57, %v4421_v57  ;;  %v7279_v21 = vcombine.high %v4421_v57, %v4421_v57  ;;  %4162 = vst [vmem:[#allocation3 + $0xc8] sm:$0xf] %v4130_v56  ;;  %v8461_v6 = vld [vmem:[#allocation2 + $0x40] sm:$0xf] }
 0x378   :  { %v5189_v0 = vsel %vm9309_vm13, %v5184_v45, %v5188_v60  ;;  %v7301_v49 = vrot.slane %v7278_v5, 9  ;;  %v4558_v9 = vrot.slane %v7279_v21, 5  ;;  %v4075_v8 = vpop.permute.xlu1 %4074  ;;  %v4385_v48 = vpop.permute.xlu0 %4384 }
 0x379   :  { %5312 = vst [vmem:[#allocation3 + $0xa8] sm:$0xf] %v5189_v0  ;;  %v4126_v51 = vsel %vm747_vm7, %v8459_v31, %v4075_v8  ;;  %v4430_v4 = vsel %vm747_vm7, %v8318_v30, %v4385_v48  ;;  %v8325_v30 = vld [vmem:[#allocation2 + $0x78] sm:$0x1e]   ;;  %v4636_v31 = vld [vmem:[#allocation2 + $0x68] sm:$0xf] }
 0x37a   :  { %v4559_v46 = vsel %vm9138_vm10, %v7301_v49, %v4558_v9  ;;  %4161 = vst [vmem:[#allocation3 + $0xb4] sm:$0xf] %v4126_v51  ;;  %v7284_v7 = vcombine.low %v4430_v4, %v4430_v4  ;;  %v7285_v27 = vcombine.high %v4430_v4, %v4430_v4 }
 0x37b   :  { %4609 = vst [vmem:[#allocation3 + $0xb8] sm:$0xf] %v4559_v46  ;;  %v8329_v28 = vld [vmem:[#allocation3 + $0xcc] ss:$20 sps:$4 sm:$0xff]  }
 0x37c   :  { %v7304_v13 = vrot.slane %v7284_v7, 9  ;;  %v4570_v63 = vrot.slane %v7285_v27, 5  ;;  %v4923_v26 = vpop.permute.xlu1 %4922  ;;  %v4389_v15 = vpop.permute.xlu0 %4388  ;;  %v8323_v42 = vld [vmem:[#allocation3 + $0x58] ss:$20 sps:$4 sm:$0xff]   ;;  %v8462_v46 = vld [vmem:[#allocation2 + $0x80] sm:$0xf] }
 0x37d   :  { %v4965_v37 = vsel %vm747_vm7, %v7317_v43, %v4923_v26  ;;  %v4436_v20 = vsel %vm747_vm7, %v8320_v33, %v4389_v15  ;;  %6523 = vmatmul.mubr.bf16.gmra.mxu1 %v8323_v42 }
 0x37e   :  { %v4571_v34 = vsel %vm9138_vm10, %v7304_v13, %v4570_v63  ;;  %v7358_v50 = vcombine.low %v4965_v37, %v4965_v37  ;;  %v7359_v54 = vcombine.high %v4965_v37, %v4965_v37  ;;  %v7288_v19 = vcombine.low %v4436_v20, %v4436_v20  ;;  %v8463_v63 = vld [vmem:[#allocation2 + $0x6c] sm:$0x1] }
 0x37f   :  { %4612 = vst [vmem:[#allocation3 + $0xf4] sm:$0xf] %v4571_v34  ;;  %v7289_v39 = vcombine.high %v4436_v20, %v4436_v20  ;;  %v7318_v26 = vcombine.low %v4636_v31, %v8463_v63  ;;  %v8464_v34 = vld [vmem:[#allocation2 + $0x78] sm:$0xf] }
 0x380   :  { %v5191_v23 = vshrl.u32 %v7358_v50, 16  ;;  %v5194_v58 = vshll.u32 %v7358_v50, 16  ;;  %v7306_v1 = vrot.slane %v7288_v19, 9  ;;  %v5557_v32 = vpop.permute.xlu0 %5556  ;;  %v4391_v11 = vpop.permute.xlu1 %4390  ;;  %v5200_v56 = vshll.u32 %v7359_v54, 16 }
 0x381   :  { %v4578_v61 = vrot.slane %v7289_v39, 5  ;;  %v5602_v38 = vsel %vm747_vm7, %v8461_v6, %v5557_v32  ;;  %v4439_v52 = vsel %vm747_vm7, %v8324_v22, %v4391_v11  ;;  %v8328_v0 = vld [vmem:[#allocation3 + $0xa0] ss:$20 sps:$4 sm:$0xff]  }
 0x382   :  { %v5193_v57 = vrot.slane %v5191_v23, 4  ;;  %v5196_v14 = vrot.slane %v5194_v58, 5  ;;  %5646 = vst [vmem:[#allocation3 + $0x84] sm:$0xf] %v5602_v38  ;;  %v7290_v45 = vcombine.low %v4439_v52, %v4439_v52  ;;  %v8326_v60 = vld [vmem:[#allocation3 + $0xa4] ss:$20 sps:$4 sm:$0xff]   ;;  %v7291_v21 = vcombine.high %v4439_v52, %v4439_v52 }
 0x383   :  { %v4579_v5 = vsel %vm9138_vm10, %v7306_v1, %v4578_v61  ;;  %6441 = vmatprep.mubr.bf16.mxu0 %v8326_v60  ;;  %v5202_v55 = vrot.slane %v5200_v56, 5  ;;  %v8333_v23 = vld [vmem:[#allocation3 + $0xc8] ss:$20 sps:$4 sm:$0xff]   ;;  %v4640_v61 = vld [vmem:[#allocation2 + $0x78] sm:$0xf] }
 0x384   :  { %v5197_v49 = vor.u32 %v5196_v14, %v5193_v57  ;;  %4614 = vst [vmem:[#allocation3 + $0x11c] sm:$0xf] %v4579_v5  ;;  %v7307_v9 = vrot.slane %v7290_v45, 9  ;;  %v4387_v8 = vpop.permute.xlu1 %4386  ;;  %v4085_v48 = vpop.permute.xlu0 %4084  ;;  %v4582_v51 = vrot.slane %v7291_v21, 5  ;;  %6442 = vmatmul.mubr.bf16.gmra.mxu0 %v8328_v0  ;;  %v8465_v38 = vld [vmem:[#allocation2 + $0x48] sm:$0xf] }
 0x385   :  { %v4433_v4 = vsel %vm747_vm7, %v8325_v30, %v4387_v8  ;;  %v4146_v7 = vsel %vm747_vm7, %v8462_v46, %v4085_v48  ;;  %6449 = vmatprep.mubr.bf16.mxu0 %v8329_v28  ;;  %v8466_v57 = vld [vmem:[#allocation2 + $0x60] sm:$0xf]  ;;  %v8467_v45 = vld [vmem:[#allocation2 + $0x7c] sm:$0x1]  ;;  %v4638_v0 = vld [vmem:[#allocation2 + $0x70] sm:$0xf] }
 0x386   :  { %v5198_v27 = vrot.slane %v5197_v49, 4  ;;  %v7286_v43 = vcombine.low %v4433_v4, %v4433_v4  ;;  %v7287_v33 = vcombine.high %v4433_v4, %v4433_v4  ;;  %4166 = vst [vmem:[#allocation3 + $0x118] sm:$0xf] %v4146_v7  ;;  %v4583_v13 = vsel %vm9138_vm10, %v7307_v9, %v4582_v51  ;;  %v8468_v9 = vld [vmem:[#allocation2 + $0x88] sm:$0xf] }
 0x387   :  { %4615 = vst [vmem:[#allocation3 + $0x130] sm:$0xf] %v4583_v13  ;;  %v7320_v60 = vcombine.low %v4640_v61, %v8467_v45  ;;  %v8469_v7 = vld [vmem:[#allocation2 + $0x74] sm:$0x1] }
 0x388   :  { %v5203_v15 = vsel %vm9309_vm13, %v5198_v27, %v5202_v55  ;;  %v7305_v16 = vrot.slane %v7286_v43, 9  ;;  %v4574_v37 = vrot.slane %v7287_v33, 5  ;;  %v4083_v20 = vpop.permute.xlu1 %4082  ;;  %v4925_v42 = vpop.permute.xlu0 %4924  ;;  %v7319_v27 = vcombine.low %v4638_v0, %v8469_v7  ;;  %v8473_v0 = vld [vmem:[#allocation2 + $0x84] sm:$0x1] }
 0x389   :  { %5313 = vst [vmem:[#allocation3 + $0xbc] sm:$0xf] %v5203_v15  ;;  %v4142_v50 = vsel %vm747_vm7, %v8464_v34, %v4083_v20  ;;  %v4968_v54 = vsel %vm747_vm7, %v7318_v26, %v4925_v42  ;;  %v4644_v26 = vld [vmem:[#allocation2 + $0x88] sm:$0xf]  ;;  %v8343_v34 = vld [vmem:[#allocation3 + $0x80] ss:$20 sps:$4 sm:$0xff]  }
 0x38a   :  { %v4575_v19 = vsel %vm9138_vm10, %v7305_v16, %v4574_v37  ;;  %4165 = vst [vmem:[#allocation3 + $0x104] sm:$0xf] %v4142_v50  ;;  %v7360_v39 = vcombine.low %v4968_v54, %v4968_v54  ;;  %v7361_v22 = vcombine.high %v4968_v54, %v4968_v54  ;;  %v8470_v37 = vld [vmem:[#allocation2 + $0x70] sm:$0xf] }
 0x38b   :  { %4613 = vst [vmem:[#allocation3 + $0x108] sm:$0xf] %v4575_v19 }
 0x38c   :  { %v5205_v58 = vshrl.u32 %v7360_v39, 16  ;;  %v5208_v1 = vshll.u32 %v7360_v39, 16  ;;  %v5559_v32 = vpop.permute.xlu1 %5558  ;;  %v5561_v11 = vpop.permute.xlu0 %5560  ;;  %v5214_v6 = vshll.u32 %v7361_v22, 16  ;;  %6450 = vmatmul.mubr.bf16.gmra.mxu0 %v8333_v23  ;;  %v8471_v22 = vld [vmem:[#allocation2 + $0x8c] sm:$0x1] }
 0x38d   :  { %v5606_v52 = vsel %vm747_vm7, %v8465_v38, %v5559_v32  ;;  %v5610_v14 = vsel %vm747_vm7, %v8466_v57, %v5561_v11  ;;  %v7322_v23 = vcombine.low %v4644_v26, %v8471_v22  ;;  %v8472_v57 = vld [vmem:[#allocation2 + $0x68] sm:$0xf]  ;;  %v8475_v22 = vld [vmem:[#allocation2 + $0x78] sm:$0xf] }
 0x38e   :  { %v5207_v25 = vrot.slane %v5205_v58, 4  ;;  %v5210_v56 = vrot.slane %v5208_v1, 5  ;;  %5647 = vst [vmem:[#allocation3 + $0x98] sm:$0xf] %v5606_v52  ;;  %5648 = vst [vmem:[#allocation3 + $0xac] sm:$0xf] %v5610_v14 }
 0x38f   :  { %v5216_v49 = vrot.slane %v5214_v6, 5  ;;  %v4642_v6 = vld [vmem:[#allocation2 + $0x80] sm:$0xf] }
 0x390   :  { %v5211_v5 = vor.u32 %v5210_v56, %v5207_v25  ;;  %v4087_v21 = vpop.permute.xlu1 %4086  ;;  %v4929_v30 = vpop.permute.xlu0 %4928  ;;  %v8345_v56 = vld [vmem:[#allocation3 + $0x11c] ss:$20 sps:$4 sm:$0xff]  }
 0x391   :  { %v4150_v8 = vsel %vm747_vm7, %v8468_v9, %v4087_v21  ;;  %v4974_v48 = vsel %vm747_vm7, %v7320_v60, %v4929_v30  ;;  %v8338_v46 = vld [vmem:[#allocation3 + $0xf0] ss:$20 sps:$4 sm:$0xff]  }
 0x392   :  { %v5212_v28 = vrot.slane %v5211_v5, 4  ;;  %4167 = vst [vmem:[#allocation3 + $0x12c] sm:$0xf] %v4150_v8  ;;  %v7364_v31 = vcombine.low %v4974_v48, %v4974_v48  ;;  %v7365_v51 = vcombine.high %v4974_v48, %v4974_v48  ;;  %v8336_v4 = vld [vmem:[#allocation3 + $0xf4] ss:$20 sps:$4 sm:$0xff]  }
 0x393   :  { %6457 = vmatprep.mubr.bf16.mxu0 %v8336_v4 }
 0x394   :  { %v5217_v55 = vsel %vm9309_vm13, %v5212_v28, %v5216_v49  ;;  %v5233_v43 = vshrl.u32 %v7364_v31, 16  ;;  %v5236_v33 = vshll.u32 %v7364_v31, 16  ;;  %v4927_v13 = vpop.permute.xlu1 %4926  ;;  %v5565_v63 = vpop.permute.xlu0 %5564  ;;  %v5242_v15 = vshll.u32 %v7365_v51, 16  ;;  %6458 = vmatmul.mubr.bf16.gmra.mxu0 %v8338_v46  ;;  %v8348_v46 = vld [vmem:[#allocation3 + $0x10] ss:$20 sps:$4 sm:$0xff]  }
 0x395   :  { %5314 = vst [vmem:[#allocation3 + $0xd0] sm:$0xf] %v5217_v55  ;;  %v4971_v16 = vsel %vm747_vm7, %v7319_v27, %v4927_v13  ;;  %v5618_v20 = vsel %vm747_vm7, %v8470_v37, %v5565_v63  ;;  %v8340_v42 = vld [vmem:[#allocation3 + $0x84] ss:$20 sps:$4 sm:$0xff]   ;;  %v7321_v49 = vcombine.low %v4642_v6, %v8473_v0  ;;  %6465 = vmatprep.mubr.bf16.mxu0 %v8345_v56 }
 0x396   :  { %v5235_v50 = vrot.slane %v5233_v43, 4  ;;  %v5238_v54 = vrot.slane %v5236_v33, 5  ;;  %v7362_v19 = vcombine.low %v4971_v16, %v4971_v16  ;;  %5650 = vst [vmem:[#allocation3 + $0xd4] sm:$0xf] %v5618_v20  ;;  %v7363_v39 = vcombine.high %v4971_v16, %v4971_v16  ;;  %6530 = vmatprep.mubr.bf16.mxu1 %v8340_v42  ;;  %v8474_v43 = vld [vmem:[#allocation2 + $0x80] sm:$0xf] }
 0x397   :  { %6531 = vmatmul.mubr.bf16.gmra.mxu1 %v8343_v34  ;;  %v5244_v38 = vrot.slane %v5242_v15, 5 }
 0x398   :  { %v5239_v58 = vor.u32 %v5238_v54, %v5235_v50  ;;  %v5219_v1 = vshrl.u32 %v7362_v19, 16  ;;  %v5222_v32 = vshll.u32 %v7362_v19, 16  ;;  %v5563_v11 = vpop.permute.xlu1 %5562  ;;  %v4933_v61 = vpop.permute.xlu0 %4932  ;;  %v5228_v52 = vshll.u32 %v7363_v39, 16  ;;  %v4646_v19 = vld [vmem:[#allocation2 + $0x90] sm:$0xf] }
 0x399   :  { %v5614_v14 = vsel %vm747_vm7, %v8472_v57, %v5563_v11  ;;  %v4980_v25 = vsel %vm747_vm7, %v7322_v23, %v4933_v61  ;;  %v8347_v9 = vld [vmem:[#allocation3 + $0x118] ss:$20 sps:$4 sm:$0xff]   ;;  %v8351_v11 = vld [vmem:[#allocation3 + $0xa8] ss:$20 sps:$4 sm:$0xff]   ;;  %v8477_v57 = vld [vmem:[#allocation2 + $0x94] sm:$0x1] }
 0x39a   :  { %v5240_v45 = vrot.slane %v5239_v58, 4  ;;  %v5221_v60 = vrot.slane %v5219_v1, 4  ;;  %v5224_v5 = vrot.slane %v5222_v32, 5  ;;  %5649 = vst [vmem:[#allocation3 + $0xc0] sm:$0xf] %v5614_v14  ;;  %v7368_v21 = vcombine.low %v4980_v25, %v4980_v25 }
 0x39b   :  { %v7369_v30 = vcombine.high %v4980_v25, %v4980_v25  ;;  %v5230_v7 = vrot.slane %v5228_v52, 5  ;;  %v8476_v58 = vld [vmem:[#allocation2 + $0x90] sm:$0xf]  ;;  %v7323_v14 = vcombine.low %v4646_v19, %v8477_v57  ;;  %v8352_v25 = vld [vmem:[#allocation3 + $0x38] ss:$20 sps:$4 sm:$0xff]  }
 0x39c   :  { %v5245_v8 = vsel %vm9309_vm13, %v5240_v45, %v5244_v38  ;;  %v5225_v48 = vor.u32 %v5224_v5, %v5221_v60  ;;  %v5261_v28 = vshrl.u32 %v7368_v21, 16  ;;  %v5264_v31 = vshll.u32 %v7368_v21, 16  ;;  %v4931_v51 = vpop.permute.xlu1 %4930  ;;  %v5569_v4 = vpop.permute.xlu0 %5568  ;;  %6466 = vmatmul.mubr.bf16.gmra.mxu0 %v8347_v9  ;;  %v8353_v5 = vld [vmem:[#allocation3 + $0x60] ss:$20 sps:$4 sm:$0xff]  }
 0x39d   :  { %5316 = vst [vmem:[#allocation3 + $0xf8] sm:$0xf] %v5245_v8  ;;  %v5270_v27 = vshll.u32 %v7369_v30, 16  ;;  %v4977_v55 = vsel %vm747_vm7, %v7321_v49, %v4931_v51  ;;  %v5626_v33 = vsel %vm747_vm7, %v8474_v43, %v5569_v4  ;;  %7958 = vmatprep.mubr.msk.bf16.mxu0 %vm747_vm7, %v8348_v46  ;;  %v8478_v51 = vld [vmem:[#allocation2 + $0x88] sm:$0xf] }
 0x39e   :  { %v5226_v13 = vrot.slane %v5225_v48, 4  ;;  %v5263_v63 = vrot.slane %v5261_v28, 4  ;;  %v5266_v26 = vrot.slane %v5264_v31, 5  ;;  %v7366_v15 = vcombine.low %v4977_v55, %v4977_v55  ;;  %5652 = vst [vmem:[#allocation3 + $0xfc] sm:$0xf] %v5626_v33 }
 0x39f   :  { %v7367_v16 = vcombine.high %v4977_v55, %v4977_v55  ;;  %v5272_v39 = vrot.slane %v5270_v27, 5  ;;  %v8357_v33 = vld [vmem:[#allocation3 + $0x88] ss:$20 sps:$4 sm:$0xff]   ;;  %v8363_v19 = vld [vmem:[#allocation3 + $0x100] ss:$20 sps:$4 sm:$0xff]  }
 0x3a0   :  { %v5231_v37 = vsel %vm9309_vm13, %v5226_v13, %v5230_v7  ;;  %v5267_v20 = vor.u32 %v5266_v26, %v5263_v63  ;;  %v5247_v42 = vshrl.u32 %v7366_v15, 16  ;;  %v5250_v34 = vshll.u32 %v7366_v15, 16  ;;  %v5567_v50 = vpop.permute.xlu1 %5566  ;;  %v5573_v54 = vpop.permute.xlu0 %5572  ;;  %v8358_v26 = vld [vmem:[#allocation3 + $0xb0] ss:$20 sps:$4 sm:$0xff]   ;;  %v8479_v15 = vld [vmem:[#allocation2 + $0x98] sm:$0xf] }
 0x3a1   :  { %5315 = vst [vmem:[#allocation3 + $0xe4] sm:$0xf] %v5231_v37  ;;  %v5622_v23 = vsel %vm747_vm7, %v8475_v22, %v5567_v50  ;;  %v5634_v1 = vsel %vm747_vm7, %v8476_v58, %v5573_v54  ;;  %v8349_v32 = vld [vmem:[#allocation3 + $0xac] ss:$20 sps:$4 sm:$0xff]   ;;  %v5256_v52 = vshll.u32 %v7367_v16, 16  ;;  %v8369_v58 = vld [vmem:[%s10303_s2 + $0x10] sm:$0xff]  }
 0x3a2   :  { %v5268_v61 = vrot.slane %v5267_v20, 4  ;;  %v5249_v6 = vrot.slane %v5247_v42, 4  ;;  %v5252_v38 = vrot.slane %v5250_v34, 5  ;;  %5651 = vst [vmem:[#allocation3 + $0xe8] sm:$0xf] %v5622_v23  ;;  %6538 = vmatprep.mubr.bf16.mxu1 %v8349_v32 }
 0x3a3   :  { %5654 = vst [vmem:[#allocation3 + $0x124] sm:$0xf] %v5634_v1  ;;  %6539 = vmatmul.mubr.bf16.gmra.mxu1 %v8351_v11  ;;  %v5258_v0 = vrot.slane %v5256_v52, 5  ;;  %v8362_v54 = vld [vmem:[#allocation3 + $0xd8] ss:$20 sps:$4 sm:$0xff]  }
 0x3a4   :  { %v5273_v56 = vsel %vm9309_vm13, %v5268_v61, %v5272_v39  ;;  %v5253_v45 = vor.u32 %v5252_v38, %v5249_v6  ;;  %v4935_v60 = vpop.permute.xlu1 %4934  ;;  %7959 = vmatmul.mubr.msk.bf16.vlgmr.msra.gmra.mxu0 %vm747_vm7, %v8352_v25  ;;  %v8368_v39 = vld [vmem:[%s10303_s2 + $0x18] sm:$0xff]   ;;  %s8504_s2 = smov [#allocation4]  }
 0x3a5   :  { %5318 = vst [vmem:[#allocation3 + $0x120] sm:$0xf] %v5273_v56  ;;  %v4983_v21 = vsel %vm747_vm7, %v7323_v14, %v4935_v60  ;;  %7962 = vmatprep.mubr.msk.bf16.mxu0 %vm747_vm7, %v8353_v5  ;;  %7974 = vmatprep.subr.bf16.mxu1 %v8368_v39  ;;  %v8367_v23 = vld [vmem:[#allocation3 + $0x128] ss:$20 sps:$4 sm:$0xff]   ;;  %s6883_s16 = sshll.u32 %s8504_s2, 4  ;;  %s6884_s16 = int_to_ptr.vmem [resolvable:$true] %s6883_s16 }
 0x3a6   :  { %v5254_v30 = vrot.slane %v5253_v45, 4  ;;  %v7370_v49 = vcombine.low %v4983_v21, %v4983_v21  ;;  %v7371_v9 = vcombine.high %v4983_v21, %v4983_v21  ;;  %7975 = vmatpush3.bf16.msra.mxu1 %v8368_v39  ;;  %s8480_s17 = scalar_lea.vmem %s6884_s16, 2048  ;;  %p8485_p1 = scmp.lt.s32.totalorder %s6884_s16, %s6884_s16 }
 0x3a7   :  { %7976 = vmatprep.subr.bf16.mxu1 %v8369_v58  ;;  %p8481_p0 = scmp.ne.s32.totalorder %s6884_s16, %s8480_s17  ;;  %p8486_p2 = scmp.lt.s32.totalorder %s8480_s17, %s8480_s17 }
 0x3a8   :  { %v5259_v8 = vsel %vm9309_vm13, %v5254_v30, %v5258_v0  ;;  %v5275_v48 = vshrl.u32 %v7370_v49, 16  ;;  %v5278_v28 = vshll.u32 %v7370_v49, 16  ;;  %v5571_v31 = vpop.permute.xlu1 %5570  ;;  %v8356_v7 = vld [vmem:[#allocation3 + $0xd0] ss:$20 sps:$4 sm:$0xff]   ;;  %v5284_v43 = vshll.u32 %v7371_v9, 16 }
 0x3a9   :  { %5317 = vst [vmem:[#allocation3 + $0x10c] sm:$0xf] %v5259_v8  ;;  %v5630_v4 = vsel %vm747_vm7, %v8478_v51, %v5571_v31  ;;  %v8354_v46 = vld [vmem:[#allocation3 + $0xd4] ss:$20 sps:$4 sm:$0xff]   ;;  %p8487_p3 = por %p8486_p2, %p8485_p1 }
 0x3aa   :  { %v5277_v27 = vrot.slane %v5275_v48, 4  ;;  %v5280_v55 = vrot.slane %v5278_v28, 5  ;;  %5653 = vst [vmem:[#allocation3 + $0x110] sm:$0xf] %v5630_v4  ;;  %6546 = vmatprep.mubr.bf16.mxu1 %v8354_v46  ;;  %v5286_v20 = vrot.slane %v5284_v43, 5  ;;  %7977 = vmatpush3.bf16.msra.mxu1 %v8369_v58 }
 0x3ab   :  { %6547 = vmatmul.mubr.bf16.gmra.mxu1 %v8356_v7  ;;  %p8488_p4 = pnand %p8487_p3, %p8481_p0 }
 0x3ac   :  { %v5281_v13 = vor.u32 %v5280_v55, %v5277_v27  ;;  %v5575_v63 = vpop.permute.xlu1 %5574  ;;  %7963 = vmatmul.mubr.msk.bf16.gmra.mxu0 %vm747_vm7, %v8357_v33 }
 0x3ad   :  { %v5638_v16 = vsel %vm747_vm7, %v8479_v15, %v5575_v63  ;;  %7966 = vmatprep.mubr.msk.bf16.mxu0 %vm747_vm7, %v8358_v26 }
 0x3ae   :  { %v5282_v37 = vrot.slane %v5281_v13, 4  ;;  %5655 = vst [vmem:[#allocation3 + $0x138] sm:$0xf] %v5638_v16 }
 0x3b0   :  { %v5287_v42 = vsel %vm9309_vm13, %v5282_v37, %v5286_v20  ;;  %v8361_v50 = vld [vmem:[#allocation3 + $0xf8] ss:$20 sps:$4 sm:$0xff]  }
 0x3b1   :  { %5319 = vst [vmem:[#allocation3 + $0x134] sm:$0xf] %v5287_v42  ;;  %v8359_v34 = vld [vmem:[#allocation3 + $0xfc] ss:$20 sps:$4 sm:$0xff]  }
 0x3b2   :  { %6554 = vmatprep.mubr.bf16.mxu1 %v8359_v34 }
 0x3b3   :  { %6555 = vmatmul.mubr.bf16.gmra.mxu1 %v8361_v50 }
 0x3b4   :  { %7967 = vmatmul.mubr.msk.bf16.gmra.mxu0 %vm747_vm7, %v8362_v54 }
 0x3b5   :  { %7970 = vmatprep.mubr.msk.bf16.mxu0 %vm747_vm7, %v8363_v19  ;;  %v8364_v22 = vld [vmem:[#allocation3 + $0x124] ss:$20 sps:$4 sm:$0xff]  }
 0x3b6   :  { %6562 = vmatprep.mubr.bf16.mxu1 %v8364_v22 }
 0x3b8   :  { %v8366_v53 = vld [vmem:[#allocation3 + $0x120] ss:$20 sps:$4 sm:$0xff]  }
 0x3bb   :  { %6563 = vmatmul.mubr.bf16.gmra.mxu1 %v8366_v53 }
 0x3bc   :  { %7971 = vmatmul.mubr.msk.bf16.gmra.mxu0 %vm747_vm7, %v8367_v23 }
 0x405   :  { %v7772_v1 = vpop.f32.mrf.mxu0 }
 0x407   :  { %v7773_v32 = vpop.f32.mrf.mxu0 }
 0x408   :  { %v7774_v11 = vadd.f32 %v7773_v32, %v7772_v1 }
 0x409   :  { %v7775_v61 = vpop.f32.mrf.mxu0 }
 0x40b   :  { %v7776_v6 = vpop.f32.mrf.mxu0 }
 0x40c   :  { %v7777_v29 = vadd.f32 %v7776_v6, %v7775_v61 }
 0x410   :  { %v7778_v38 = vpop.f32.mrf.mxu0 }
 0x412   :  { %v7779_v52 = vpop.f32.mrf.mxu0 }
 0x413   :  { %v7780_v47 = vadd.f32 %v7779_v52, %v7778_v38 }
 0x414   :  { %v7781_v57 = vpop.f32.mrf.mxu0 }
 0x416   :  { %v7782_v14 = vpop.f32.mrf.mxu0 }
 0x417   :  { %v7783_v44 = vadd.f32 %v7782_v14, %v7781_v57 }
 0x41b   :  { %v7836_v45 = vpop.f32.mrf.mxu1 }
 0x41d   :  { %v7837_v5 = vpop.f32.mrf.mxu1 }
 0x41e   :  { %v7838_v32 = vadd.f32 %v7837_v5, %v7836_v45 }
 0x41f   :  { %v7839_v30 = vpop.f32.mrf.mxu1 }
 0x420   :  { %v6509_v24 = vadd.f32 %v7838_v32, %v7774_v11 }
 0x421   :  { %v7840_v49 = vpop.f32.mrf.mxu1 }
 0x422   :  { %v7841_v59 = vadd.f32 %v7840_v49, %v7839_v30 }
 0x429   :  { %v10192_v25 = vpop.f32.mrf.mxu0 }
 0x42b   :  { %v10194_v56 = vpop.f32.mrf.mxu0  ;;  %v7842_v8 = vpop.f32.mrf.mxu1 }
 0x42c   :  { %v7786_v38 = vadd.f32 %v10194_v56, %v10192_v25 }
 0x42d   :  { %v10196_v60 = vpop.f32.mrf.mxu0  ;;  %v7843_v28 = vpop.f32.mrf.mxu1 }
 0x42e   :  { %v7844_v12 = vadd.f32 %v7843_v28, %v7842_v8 }
 0x42f   :  { %v10198_v21 = vpop.f32.mrf.mxu0  ;;  %v7845_v51 = vpop.f32.mrf.mxu1 }
 0x430   :  { %v6517_v2 = vadd.f32 %v7844_v12, %v7780_v47 }
 0x431   :  { %v10200_v0 = vpop.f32.mrf.mxu0  ;;  %v7846_v7 = vpop.f32.mrf.mxu1 }
 0x432   :  { %v7847_v35 = vadd.f32 %v7846_v7, %v7845_v51 }
 0x433   :  { %v10202_v9 = vpop.f32.mrf.mxu0 }
 0x434   :  { %v6520_v62 = vadd.f32 %v7847_v35, %v7783_v44 }
 0x435   :  { %v7793_v48 = vpop.f32.mrf.mxu0 }
 0x437   :  { %v7794_v31 = vpop.f32.mrf.mxu0 }
 0x438   :  { %v7795_v6 = vadd.f32 %v7794_v31, %v7793_v48 }
 0x43d   :  { %v7848_v55 = vpop.f32.mrf.mxu1 }
 0x43f   :  { %v7849_v13 = vpop.f32.mrf.mxu1 }
 0x440   :  { %v7850_v51 = vadd.f32 %v7849_v13, %v7848_v55 }
 0x441   :  { %v7851_v15 = vpop.f32.mrf.mxu1 }
 0x443   :  { %v7852_v20 = vpop.f32.mrf.mxu1 }
 0x444   :  { %v10204_v4 = vpop.f32.mrf.mxu0  ;;  %v7853_v44 = vadd.f32 %v7852_v20, %v7851_v15 }
 0x446   :  { %v10206_v46 = vpop.f32.mrf.mxu0 }
 0x447   :  { %v7798_v55 = vadd.f32 %v10206_v46, %v10204_v4 }
 0x448   :  { %v10208_v27 = vpop.f32.mrf.mxu0 }
 0x44a   :  { %v10210_v43 = vpop.f32.mrf.mxu0 }
 0x44b   :  { %v7801_v32 = vadd.f32 %v10210_v43, %v10208_v27 }
 0x44c   :  { %v10212_v33 = vpop.f32.mrf.mxu0 }
 0x44e   :  { %v10214_v63 = vpop.f32.mrf.mxu0 }
 0x450   :  { %v10216_v26 = vpop.f32.mrf.mxu0 }
 0x452   :  { %v10218_v16 = vpop.f32.mrf.mxu0 }
 0x454   :  { %v10220_v37 = vpop.f32.mrf.mxu0 }
 0x456   :  { %v10222_v42 = vpop.f32.mrf.mxu0 }
 0x457   :  { %v7854_v34 = vpop.f32.mrf.mxu1 }
 0x458   :  { %v10224_v50 = vpop.f32.mrf.mxu0 }
 0x459   :  { %v7855_v54 = vpop.f32.mrf.mxu1 }
 0x45a   :  { %v10226_v19 = vpop.f32.mrf.mxu0  ;;  %v7856_v52 = vadd.f32 %v7855_v54, %v7854_v34  ;;  %v7807_v34 = vadd.f32 %v10218_v16, %v10216_v26 }
 0x45b   :  { %10348 = vst [vmem:[#allocation23_spill] sm:$0xff] %v10226_v19  ;;  %v7857_v22 = vpop.f32.mrf.mxu1 }
 0x45c   :  { %v10228_v39 = vpop.f32.mrf.mxu0 }
 0x45d   :  { %v7858_v58 = vpop.f32.mrf.mxu1 }
 0x45e   :  { %v10230_v53 = vpop.f32.mrf.mxu0  ;;  %v7859_v8 = vadd.f32 %v7858_v58, %v7857_v22 }
 0x460   :  { %v10232_v23 = vpop.f32.mrf.mxu0  ;;  %v6536_v35 = vadd.f32 %v7859_v8, %v7795_v6 }
 0x461   :  { %10349 = vst [vmem:[#allocation24_spill] sm:$0xff] %v10232_v23 }
 0x462   :  { %v10234_v1 = vpop.f32.mrf.mxu0 }
 0x463   :  { %10350 = vst [vmem:[#allocation25_spill] sm:$0xff] %v10234_v1  ;;  %v7860_v17 = vpop.f32.mrf.mxu1  ;;  %v6512_v1 = vadd.f32 %v7841_v59, %v7777_v29  ;;  %v7789_v29 = vadd.f32 %v10198_v21, %v10196_v60  ;;  %v6525_v59 = vadd.f32 %v7850_v51, %v7786_v38 }
 0x464   :  { %v7960_v10 = vpop.f32.mrf.mxu0 }
 0x465   :  { %v7861_v41 = vpop.f32.mrf.mxu1  ;;  %v6614_v45 = vadd.f32 %v7960_v10, %v6517_v2  ;;  %v6528_v48 = vadd.f32 %v7853_v44, %v7789_v29 }
 0x466   :  { %v6605_v36 = vpop.f32.mrf.mxu0 }
 0x467   :  { %v7863_v3 = vpop.f32.mrf.mxu1  ;;  %v6606_v18 = vadd.f32 %v6605_v36, %v6509_v24  ;;  %v6670_v2 = vmax.f32 %v6614_v45, 0.0 }
 0x468   :  { %v7961_v40 = vpop.f32.mrf.mxu0 }
 0x469   :  { %v6617_v23 = vadd.f32 %v7961_v40, %v6520_v62  ;;  %v7864_v19 = vpop.f32.mrf.mxu1  ;;  %v6668_v47 = vmax.f32 %v6606_v18, 0.0  ;;  %v7792_v40 = vadd.f32 %v10202_v9, %v10200_v0  ;;  %v7862_v9 = vadd.f32 %v7861_v41, %v7860_v17 }
 0x46a   :  { %v6608_v5 = vpop.f32.mrf.mxu0  ;;  %v7865_v54 = vadd.f32 %v7864_v19, %v7863_v3 }
 0x46b   :  { %v6609_v28 = vadd.f32 %v6608_v5, %v6512_v1  ;;  %v7866_v57 = vpop.f32.mrf.mxu1  ;;  %v6671_v61 = vmax.f32 %v6617_v23, 0.0  ;;  %v6533_v25 = vadd.f32 %v7856_v52, %v7792_v40  ;;  %v7804_v1 = vadd.f32 %v10214_v63, %v10212_v33 }
 0x46c   :  { %v7964_v11 = vpop.f32.mrf.mxu0  ;;  %v6541_v4 = vadd.f32 %v7862_v9, %v7798_v55  ;;  %v6544_v19 = vadd.f32 %v7865_v54, %v7801_v32 }
 0x46d   :  { %v6669_v12 = vmax.f32 %v6609_v28, 0.0  ;;  %v7867_v24 = vpop.f32.mrf.mxu1  ;;  %v6685_v14 = vpack.c.bf16 %v6671_v61, %v6670_v2  ;;  %v6630_v31 = vadd.f32 %v7964_v11, %v6533_v25  ;;  %v7810_v61 = vadd.f32 %v10222_v42, %v10220_v37 }
 0x46e   :  { %v6621_v62 = vpop.f32.mrf.mxu0  ;;  %v7868_v13 = vadd.f32 %v7867_v24, %v7866_v57 }
 0x46f   :  { %v6684_v36 = vpack.c.bf16 %v6669_v12, %v6668_v47  ;;  %v7869_v10 = vpop.f32.mrf.mxu1  ;;  %v6622_v30 = vadd.f32 %v6621_v62, %v6525_v59  ;;  %v6674_v41 = vmax.f32 %v6630_v31, 0.0  ;;  %v7816_v12 = vadd.f32 %v10230_v53, %v10228_v39  ;;  %v10351_v62 = vld [vmem:[#allocation23_spill] sm:$0xff] }
 0x470   :  { %v7965_v56 = vpop.f32.mrf.mxu0  ;;  %v6549_v8 = vadd.f32 %v7868_v13, %v7804_v1  ;;  %v7813_v29 = vadd.f32 %v10351_v62, %v10224_v50 }
 0x471   :  { %v6633_v49 = vadd.f32 %v7965_v56, %v6536_v35  ;;  %v7870_v18 = vpop.f32.mrf.mxu1  ;;  %7978 = vmatprep.mubr.msk.bf16.mxu1 %vm3374_vm14, %v6684_v36  ;;  %v6672_v22 = vmax.f32 %v6622_v30, 0.0  ;;  %v10352_v30 = vld [vmem:[#allocation24_spill] sm:$0xff] }
 0x472   :  { %v6624_v0 = vpop.f32.mrf.mxu0  ;;  %7979 = vmatmul.mubr.msk.bf16.vlgmr.msra.gmra.mxu1 %vm3374_vm14, %v6685_v14  ;;  %v7871_v7 = vadd.f32 %v7870_v18, %v7869_v10 }
 0x473   :  { %v6625_v60 = vadd.f32 %v6624_v0, %v6528_v48  ;;  %v7872_v21 = vpop.f32.mrf.mxu1  ;;  %v6675_v15 = vmax.f32 %v6633_v49, 0.0  ;;  %v10353_v49 = vld [vmem:[#allocation25_spill] sm:$0xff] }
 0x474   :  { %v7968_v20 = vpop.f32.mrf.mxu0  ;;  %v6552_v5 = vadd.f32 %v7871_v7, %v7807_v34  ;;  %v7819_v39 = vadd.f32 %v10353_v49, %v10352_v30  ;;  %v10366_v30 = vld [vmem:[#allocation19_spill] sm:$0xff] }
 0x475   :  { %v6673_v23 = vmax.f32 %v6625_v60, 0.0  ;;  %v7873_v58 = vpop.f32.mrf.mxu1  ;;  %v6687_v51 = vpack.c.bf16 %v6675_v15, %v6674_v41  ;;  %v6646_v57 = vadd.f32 %v7968_v20, %v6549_v8  ;;  %v10354_v20 = vld [vmem:[#allocation7_spill] sm:$0xff] }
 0x476   :  { %v6637_v17 = vpop.f32.mrf.mxu0  ;;  %v7874_v63 = vadd.f32 %v7873_v58, %v7872_v21 }
 0x477   :  { %v6686_v45 = vpack.c.bf16 %v6673_v23, %v6672_v22  ;;  %v7875_v46 = vpop.f32.mrf.mxu1  ;;  %v6638_v26 = vadd.f32 %v6637_v17, %v6541_v4  ;;  %v6678_v24 = vmax.f32 %v6646_v57, 0.0  ;;  %v10355_v23 = vld [vmem:[#allocation8_spill] sm:$0xff]  ;;  %v10356_v17 = vld [vmem:[#allocation9_spill] sm:$0xff] }
 0x478   :  { %v7969_v28 = vpop.f32.mrf.mxu0  ;;  %v6557_v59 = vadd.f32 %v7874_v63, %v7810_v61  ;;  %v10361_v61 = vld [vmem:[#allocation14_spill] sm:$0xff] }
 0x479   :  { %v6649_v3 = vadd.f32 %v7969_v28, %v6552_v5  ;;  %v7876_v16 = vpop.f32.mrf.mxu1  ;;  %7982 = vmatprep.mubr.msk.bf16.mxu1 %vm3374_vm14, %v6686_v45  ;;  %v6676_v11 = vmax.f32 %v6638_v26, 0.0  ;;  %v10358_v28 = vld [vmem:[#allocation11_spill] sm:$0xff] }
 0x47a   :  { %v6640_v33 = vpop.f32.mrf.mxu0  ;;  %7983 = vmatmul.mubr.msk.bf16.gmra.mxu1 %vm3374_vm14, %v6687_v51  ;;  %v7877_v6 = vadd.f32 %v7876_v16, %v7875_v46  ;;  %v10357_v46 = vld [vmem:[#allocation10_spill] sm:$0xff] }
 0x47b   :  { %v6641_v38 = vadd.f32 %v6640_v33, %v6544_v19  ;;  %v7878_v27 = vpop.f32.mrf.mxu1  ;;  %v6679_v43 = vmax.f32 %v6649_v3, 0.0  ;;  %v10359_v19 = vld [vmem:[#allocation12_spill] sm:$0xff] }
 0x47c   :  { %v7972_v52 = vpop.f32.mrf.mxu0  ;;  %v6560_v56 = vadd.f32 %v7877_v6, %v7813_v29 }
 0x47d   :  { %v6677_v44 = vmax.f32 %v6641_v38, 0.0  ;;  %v7879_v47 = vpop.f32.mrf.mxu1  ;;  %v6689_v35 = vpack.c.bf16 %v6679_v43, %v6678_v24  ;;  %v10360_v38 = vld [vmem:[#allocation13_spill] sm:$0xff] }
 0x47e   :  { %v7880_v40 = vadd.f32 %v7879_v47, %v7878_v27  ;;  %v6653_v2 = vpop.f32.mrf.mxu0  ;;  %v10362_v47 = vld [vmem:[#allocation15_spill] sm:$0xff] }
 0x47f   :  { %v6688_v36 = vpack.c.bf16 %v6677_v44, %v6676_v11  ;;  %v7881_v10 = vpop.f32.mrf.mxu1  ;;  %v6654_v37 = vadd.f32 %v6653_v2, %v6557_v59  ;;  %v10363_v2 = vld [vmem:[#allocation16_spill] sm:$0xff]  ;;  %v10364_v59 = vld [vmem:[#allocation17_spill] sm:$0xff] }
 0x480   :  { %v6565_v14 = vadd.f32 %v7880_v40, %v7816_v12  ;;  %v7973_v25 = vpop.f32.mrf.mxu0 }
 0x481   :  { %v7882_v42 = vpop.f32.mrf.mxu1  ;;  %7986 = vmatprep.mubr.msk.bf16.mxu1 %vm3374_vm14, %v6688_v36  ;;  %v6680_v0 = vmax.f32 %v6654_v37, 0.0 }
 0x482   :  { %v7883_v53 = vadd.f32 %v7882_v42, %v7881_v10  ;;  %v6656_v18 = vpop.f32.mrf.mxu0  ;;  %7987 = vmatmul.mubr.msk.bf16.gmra.mxu1 %vm3374_vm14, %v6689_v35  ;;  %v6662_v50 = vadd.f32 %v7972_v52, %v6565_v14 }
 0x483   :  { %v6657_v48 = vadd.f32 %v6656_v18, %v6560_v56  ;;  %v10367_v18 = vld [vmem:[#allocation20_spill] sm:$0xff] }
 0x484   :  { %v6568_v31 = vadd.f32 %v7883_v53, %v7819_v39  ;;  %v6682_v21 = vmax.f32 %v6662_v50, 0.0 }
 0x485   :  { %v6681_v9 = vmax.f32 %v6657_v48, 0.0 }
 0x486   :  { %v6665_v7 = vadd.f32 %v7973_v25, %v6568_v31  ;;  %v10365_v25 = vld [vmem:[#allocation18_spill] sm:$0xff] }
 0x487   :  { %v6690_v60 = vpack.c.bf16 %v6681_v9, %v6680_v0  ;;  %v10368_v0 = vld [vmem:[#allocation21_spill] sm:$0xff] }
 0x488   :  { %v6683_v55 = vmax.f32 %v6665_v7, 0.0 }
 0x489   :  { %7990 = vmatprep.mubr.msk.bf16.mxu1 %vm3374_vm14, %v6690_v60 }
 0x48a   :  { %v6691_v13 = vpack.c.bf16 %v6683_v55, %v6682_v21  ;;  %v10369_v21 = vld [vmem:[#allocation22_spill] sm:$0xff] }
 0x48c   :  { %7991 = vmatmul.mubr.msk.bf16.gmra.mxu1 %vm3374_vm14, %v6691_v13 }
 0x532   :  { %v7980_v15 = vpop.f32.mrf.mxu1 }
 0x533   :  { %v6832_v34 = vadd.f32 %v7980_v15, %v10354_v20 }
 0x534   :  { %v6767_v54 = vpop.f32.mrf.mxu1 }
 0x535   :  { %v6848_v22 = vmax.f32 %v6832_v34, 0.0  ;;  %v6830_v58 = vadd.f32 %v6767_v54, %v10355_v23 }
 0x536   :  { %v7981_v1 = vpop.f32.mrf.mxu1 }
 0x537   :  { %6864 = vst.msk [vmem:[#allocation4 + $0x10] sm:$0xff] %vm747_vm7, %v6848_v22  ;;  %v6846_v41 = vmax.f32 %v6830_v58, 0.0  ;;  %v6833_v32 = vadd.f32 %v7981_v1, %v10356_v17 }
 0x538   :  { %v6770_v45 = vpop.f32.mrf.mxu1 }
 0x539   :  { %6862 = vst.msk [vmem:[#allocation4] sm:$0xff] %vm747_vm7, %v6846_v41  ;;  %v6849_v4 = vmax.f32 %v6833_v32, 0.0  ;;  %v6831_v5 = vadd.f32 %v6770_v45, %v10357_v46 }
 0x53a   :  { %v7984_v51 = vpop.f32.mrf.mxu1 }
 0x53b   :  { %6865 = vst.msk [vmem:[#allocation4 + $0x18] sm:$0xff] %vm747_vm7, %v6849_v4  ;;  %v6847_v8 = vmax.f32 %v6831_v5, 0.0  ;;  %v6836_v26 = vadd.f32 %v7984_v51, %v10358_v28 }
 0x53c   :  { %v6783_v3 = vpop.f32.mrf.mxu1 }
 0x53d   :  { %6863 = vst.msk [vmem:[#allocation4 + $0x8] sm:$0xff] %vm747_vm7, %v6847_v8  ;;  %v6852_v16 = vmax.f32 %v6836_v26, 0.0  ;;  %v6834_v57 = vadd.f32 %v6783_v3, %v10359_v19 }
 0x53e   :  { %v7985_v33 = vpop.f32.mrf.mxu1 }
 0x53f   :  { %6868 = vst.msk [vmem:[#allocation4 + $0x30] sm:$0xff] %vm747_vm7, %v6852_v16  ;;  %v6850_v63 = vmax.f32 %v6834_v57, 0.0  ;;  %v6837_v27 = vadd.f32 %v7985_v33, %v10360_v38 }
 0x540   :  { %v6786_v43 = vpop.f32.mrf.mxu1 }
 0x541   :  { %6866 = vst.msk [vmem:[#allocation4 + $0x20] sm:$0xff] %vm747_vm7, %v6850_v63  ;;  %v6853_v52 = vmax.f32 %v6837_v27, 0.0  ;;  %v6835_v11 = vadd.f32 %v6786_v43, %v10361_v61 }
 0x542   :  { %v7988_v6 = vpop.f32.mrf.mxu1 }
 0x543   :  { %6869 = vst.msk [vmem:[#allocation4 + $0x38] sm:$0xff] %vm747_vm7, %v6853_v52  ;;  %v6851_v44 = vmax.f32 %v6835_v11, 0.0  ;;  %v6840_v12 = vadd.f32 %v7988_v6, %v10362_v47 }
 0x544   :  { %v6799_v24 = vpop.f32.mrf.mxu1 }
 0x545   :  { %6867 = vst.msk [vmem:[#allocation4 + $0x28] sm:$0xff] %vm747_vm7, %v6851_v44  ;;  %v6856_v40 = vmax.f32 %v6840_v12, 0.0  ;;  %v6838_v62 = vadd.f32 %v6799_v24, %v10363_v2 }
 0x546   :  { %v7989_v29 = vpop.f32.mrf.mxu1 }
 0x547   :  { %6872 = vst.msk [vmem:[#allocation4 + $0x50] sm:$0xff] %vm747_vm7, %v6856_v40  ;;  %v6854_v36 = vmax.f32 %v6838_v62, 0.0  ;;  %v6841_v10 = vadd.f32 %v7989_v29, %v10364_v59 }
 0x548   :  { %v6802_v35 = vpop.f32.mrf.mxu1 }
 0x549   :  { %6870 = vst.msk [vmem:[#allocation4 + $0x40] sm:$0xff] %vm747_vm7, %v6854_v36  ;;  %v6857_v14 = vmax.f32 %v6841_v10, 0.0  ;;  %v6839_v37 = vadd.f32 %v6802_v35, %v10365_v25 }
 0x54b   :  { %6873 = vst.msk [vmem:[#allocation4 + $0x58] sm:$0xff] %vm747_vm7, %v6857_v14  ;;  %v6855_v42 = vmax.f32 %v6839_v37, 0.0 }
 0x54c   :  { %v7992_v56 = vpop.f32.mrf.mxu1 }
 0x54d   :  { %6871 = vst.msk [vmem:[#allocation4 + $0x48] sm:$0xff] %vm747_vm7, %v6855_v42  ;;  %v6844_v49 = vadd.f32 %v7992_v56, %v10366_v30 }
 0x54e   :  { %v6815_v39 = vpop.f32.mrf.mxu1 }
 0x54f   :  { %v6860_v53 = vmax.f32 %v6844_v49, 0.0  ;;  %v6842_v48 = vadd.f32 %v6815_v39, %v10367_v18 }
 0x550   :  { %v7993_v50 = vpop.f32.mrf.mxu1 }
 0x551   :  { %6876 = vst.msk [vmem:[#allocation4 + $0x70] sm:$0xff] %vm747_vm7, %v6860_v53  ;;  %v6858_v31 = vmax.f32 %v6842_v48, 0.0  ;;  %v6845_v9 = vadd.f32 %v7993_v50, %v10368_v0 }
 0x552   :  { %v6818_v7 = vpop.f32.mrf.mxu1 }
 0x553   :  { %6874 = vst.msk [vmem:[#allocation4 + $0x60] sm:$0xff] %vm747_vm7, %v6858_v31  ;;  %v6861_v60 = vmax.f32 %v6845_v9, 0.0  ;;  %v6843_v55 = vadd.f32 %v6818_v7, %v10369_v21 }
 0x555   :  { %6877 = vst.msk [vmem:[#allocation4 + $0x78] sm:$0xff] %vm747_vm7, %v6861_v60  ;;  %v6859_v13 = vmax.f32 %v6843_v55, 0.0 }
 0x557   :  { %6875 = vst.msk [vmem:[#allocation4 + $0x68] sm:$0xff] %vm747_vm7, %v6859_v13 }
 0x558   :  { %8491 = shalt.err (!%p8488_p4)
}
 0x559   :  { %s8505_s18 = smov 128   ;;  %s8506_s19 = smov 8  }
 0x55a   :  { %6889 = dma.vmem_to_hbm [thread:$0]  %s6884_s16, 2048, %s10304_s3, [#allocation5], %s8505_s18, %s8505_s18, %s8506_s19  }
 0x55b   :  { %8500 = dma.done.wait [#allocation5], 2048  }
 0x55c   :  { %8501 = vsyncadd [#allocation5], 4294965248 }
 0x55d   :  { %6893 = vsyncpa [#allocation5], 1 }

</bundles_post_ra>
